<compile_context>
chip_gen: v6e
topology: v6e:2x2x1
jax: 0.10.0
libtpu: 0.0.40
codegen_flags: <defaults>
</compile_context>

<pallas_src>
import functools

import jax
import jax.numpy as jnp
import numpy as np
from jax import lax
from jax.experimental import pallas as pl
from jax.experimental.pallas import tpu as pltpu

LEAKY_SLOPE = 0.01  # torch.nn.LeakyReLU default negative_slope


# ----------------------------------------------------------------------------
# Fused kernel: 4 x (depthwise 3x3 dilated -> pointwise 1x1 [-> LeakyReLU])
# ----------------------------------------------------------------------------
def _midlevel_kernel(x_ref, dw1_ref, pw1_ref, b1_ref, dwr_ref, pwr_ref, br_ref,
                     o_ref, pad1_ref, padA_ref, padB_ref, *,
                     padding, dilation, h_chunk):
    # x_ref:    (bb, H, W, Cin0)        input tile (batch block)
    # dw1_ref:  (3, 3, Cin0)            layer-1 depthwise weights (act dtype)
    # pw1_ref:  (Cin0, C)               layer-1 pointwise weights (MXU dtype)
    # b1_ref:   (1, C)                  layer-1 folded bias (f32)
    # dwr_ref:  (3, 3, 3, C)            layers 2..4 depthwise weights
    # pwr_ref:  (3, C, C)               layers 2..4 pointwise weights
    # br_ref:   (3, 1, C)               layers 2..4 folded biases
    # o_ref:    (bb, H, W, C)           output tile
    # pad1_ref: (bb, Hp, Wp, Cin0)      padded layer-1 input (scratch)
    # padA/B:   (bb, Hp, Wp, C)         ping-pong padded resident activations
    bb, H, W, Cin0 = x_ref.shape
    C = o_ref.shape[-1]
    p, d = padding, dilation
    Hp, Wp = H + 2 * p, W + 2 * p
    Hc = h_chunk
    n_chunks = H // Hc
    Mc = bb * Hc * W
    f32 = jnp.float32

    def leaky(v):
        return jnp.where(v >= 0, v, jnp.float32(LEAKY_SLOPE) * v)

    def zero_border(ref):
        # Zero only the 4 halo strips; the interior is always fully overwritten
        # by the producing layer, so no full-scratch fill is needed.
        cw = ref.shape[-1]
        zt = ref.dtype
        ref[:, 0:p, :, :] = jnp.zeros((bb, p, Wp, cw), zt)              # top
        ref[:, p + H:Hp, :, :] = jnp.zeros((bb, p, Wp, cw), zt)         # bottom
        ref[:, p:p + H, 0:p, :] = jnp.zeros((bb, H, p, cw), zt)         # left
        ref[:, p:p + H, p + W:Wp, :] = jnp.zeros((bb, H, p, cw), zt)    # right

    zero_border(pad1_ref)
    zero_border(padA_ref)
    zero_border(padB_ref)
    # Stage this grid step's input into the padded layer-1 scratch interior.
    pad1_ref[:, p:p + H, p:p + W, :] = x_ref[...].astype(pad1_ref.dtype)

    def run_layer(src_ref, dw, pw, bias, relu, write_chunk):
        # src_ref: (bb, Hp, Wp, cin)  padded activation (act dtype)
        # dw:      (3, 3, cin)        depthwise weights (act dtype)
        # pw:      (cin, C)           pointwise weights (MXU dtype)
        # bias:    (1, C)             folded bias (f32)
        cin = dw.shape[-1]

        def chunk_body(ci, carry):
            row0 = pl.multiple_of(ci * Hc, Hc)
            # Depthwise 3x3 dilated: 9 shifted windows, acc init with tap 0.
            acc = src_ref[:, pl.ds(row0, Hc), 0:W, :] * dw[0, 0]
            for kh in range(3):
                for kw in range(3):
                    if kh == 0 and kw == 0:
                        continue
                    win = src_ref[:, pl.ds(row0 + kh * d, Hc),
                                  kw * d:kw * d + W, :]
                    acc = acc + win * dw[kh, kw]
            # Pointwise 1x1 == channel matmul on the MXU (f32 accumulation).
            m = acc.reshape(Mc, cin).astype(pw.dtype)
            y = jnp.dot(m, pw, preferred_element_type=f32) + bias
            if relu:
                y = leaky(y)
            write_chunk(row0, y)
            return carry

        lax.fori_loop(0, n_chunks, chunk_body, 0)

    def write_pad(dst_ref):
        def write(row0, y):
            dst_ref[:, pl.ds(p + row0, Hc), p:p + W, :] = (
                y.reshape(bb, Hc, W, C).astype(dst_ref.dtype))
        return write

    def write_out(row0, y):
        o_ref[:, pl.ds(row0, Hc), :, :] = (
            y.reshape(bb, Hc, W, C).astype(o_ref.dtype))

    # layer 1 (Cin0 -> C) + LeakyReLU        pad1 -> padA
    run_layer(pad1_ref, dw1_ref[...], pw1_ref[...], b1_ref[...], True,
              write_pad(padA_ref))
    # layer 2 (C -> C) + LeakyReLU           padA -> padB
    run_layer(padA_ref, dwr_ref[0], pwr_ref[0], br_ref[0], True,
              write_pad(padB_ref))
    # layer 3 (C -> C) + LeakyReLU           padB -> padA
    run_layer(padB_ref, dwr_ref[1], pwr_ref[1], br_ref[1], True,
              write_pad(padA_ref))
    # layer 4 (C -> C), no activation        padA -> output
    run_layer(padA_ref, dwr_ref[2], pwr_ref[2], br_ref[2], False, write_out)


# ----------------------------------------------------------------------------
# Wrapper: packs/pre-casts parameters, folds biases, builds the pallas_call
# ----------------------------------------------------------------------------
def _tile_padded_bytes(shape, dtype):
    """Pessimistic VMEM footprint of one buffer after (sublane, lane) tiling."""
    item = jnp.dtype(dtype).itemsize
    sublane = {4: 8, 2: 16, 1: 32}.get(item, 8)
    dims = list(shape) if len(shape) >= 2 else [1] + list(shape)
    dims[-1] = -(-dims[-1] // 128) * 128
    dims[-2] = -(-dims[-2] // sublane) * sublane
    n = 1
    for v in dims:
        n *= int(v)
    return n * item


def midlevel_forward(x, params, *, padding=2, dilation=2, batch_block=None,
                     h_chunk=None, mxu_dtype=jnp.bfloat16,
                     act_dtype=jnp.float32, data_format="NCHW"):
    """Matches MidLevel.forward: relu(c1) -> relu(c2) -> relu(c3) -> c4.

    params: 4 tuples (dw_w (3,3,cin), dw_b (cin,), pw_w (cin,cout), pw_b (cout,)).
    batch_block: batch elements per grid step.  Default B//2 so the grid has
      >= 2 "parallel" steps and both v7x TensorCores are fed.
    act_dtype: resident activation / depthwise dtype.  float32 (default) matches
      the f32 module; bfloat16 halves VMEM/VALU work on v6e/v7x (not for v5e).
    mxu_dtype: pointwise matmul input dtype (bf16 MXU inputs, f32 accumulation).
    """
    assert data_format in ("NCHW", "NHWC")
    x_nhwc = jnp.transpose(x, (0, 2, 3, 1)) if data_format == "NCHW" else x
    # TODO(synk): if the surrounding model can stay NHWC end-to-end, call with
    # data_format="NHWC" to skip both boundary transposes (a full HBM pass each).

    B, H, W, Cin0 = x_nhwc.shape
    Cout = params[0][2].shape[1]
    Hp, Wp = H + 2 * padding, W + 2 * padding

    if batch_block is None:
        bb = B // 2 if (B >= 2 and B % 2 == 0) else 1
    else:
        bb = batch_block
    assert B % bb == 0, (B, bb)
    if h_chunk is None:
        h_chunk = 8 if H % 8 == 0 else H
    assert H % h_chunk == 0, (H, h_chunk)

    # Fold depthwise bias into pointwise bias: y = dw(x)@Wpw + (dw_b@Wpw + pw_b),
    # and pre-cast all weights so the kernel does no per-step recasts.
    folded = [(dw_b @ pw_w + pw_b).astype(jnp.float32)
              for (dw_w, dw_b, pw_w, pw_b) in params]
    dw1 = params[0][0].astype(act_dtype)                              # (3,3,Cin0)
    pw1 = params[0][2].astype(mxu_dtype)                              # (Cin0,Cout)
    b1 = folded[0].reshape(1, Cout)                                   # (1,Cout) f32
    dwr = jnp.stack([params[i][0] for i in range(1, 4)]).astype(act_dtype)
    pwr = jnp.stack([params[i][2] for i in range(1, 4)]).astype(mxu_dtype)
    br = jnp.stack([folded[i] for i in range(1, 4)]).reshape(3, 1, Cout)

    # VMEM budget: double-buffered in/out blocks + 3 padded scratches + weights.
    est = (2 * _tile_padded_bytes((bb, H, W, Cin0), x_nhwc.dtype)
           + 2 * _tile_padded_bytes((bb, H, W, Cout), x_nhwc.dtype)
           + _tile_padded_bytes((bb, Hp, Wp, Cin0), act_dtype)
           + 2 * _tile_padded_bytes((bb, Hp, Wp, Cout), act_dtype)
           + 2 * (_tile_padded_bytes((3, 3, Cin0), act_dtype)
                  + _tile_padded_bytes((Cin0, Cout), mxu_dtype)
                  + _tile_padded_bytes((1, Cout), jnp.float32)
                  + _tile_padded_bytes((3, 3, 3, Cout), act_dtype)
                  + _tile_padded_bytes((3, Cout, Cout), mxu_dtype)
                  + _tile_padded_bytes((3, 1, Cout), jnp.float32)))
    # v7x has 64 MiB VMEM per core (v5e/v6e: 128 MiB) - keep headroom.
    assert est <= 48 * 1024 * 1024, (
        f"VMEM estimate {est / 2**20:.1f} MiB too large for v7x; "
        "reduce batch_block or use act_dtype=jnp.bfloat16")
    vmem_limit = int(min(100 * 2**20, max(32 * 2**20, 2 * est)))

    kernel = functools.partial(_midlevel_kernel, padding=padding,
                               dilation=dilation, h_chunk=h_chunk)

    y_nhwc = pl.pallas_call(
        kernel,
        out_shape=jax.ShapeDtypeStruct((B, H, W, Cout), x_nhwc.dtype),
        grid=(B // bb,),
        in_specs=[
            pl.BlockSpec((bb, H, W, Cin0), lambda b: (b, 0, 0, 0)),
            pl.BlockSpec((3, 3, Cin0), lambda b: (0, 0, 0)),
            pl.BlockSpec((Cin0, Cout), lambda b: (0, 0)),
            pl.BlockSpec((1, Cout), lambda b: (0, 0)),
            pl.BlockSpec((3, 3, 3, Cout), lambda b: (0, 0, 0, 0)),
            pl.BlockSpec((3, Cout, Cout), lambda b: (0, 0, 0)),
            pl.BlockSpec((3, 1, Cout), lambda b: (0, 0, 0)),
        ],
        out_specs=pl.BlockSpec((bb, H, W, Cout), lambda b: (b, 0, 0, 0)),
        scratch_shapes=[
            pltpu.VMEM((bb, Hp, Wp, Cin0), act_dtype),
            pltpu.VMEM((bb, Hp, Wp, Cout), act_dtype),
            pltpu.VMEM((bb, Hp, Wp, Cout), act_dtype),
        ],
        compiler_params=pltpu.CompilerParams(
            dimension_semantics=("parallel",),
            vmem_limit_bytes=vmem_limit),
    )(x_nhwc, dw1, pw1, b1, dwr, pwr, br)

    if data_format == "NCHW":
        return jnp.transpose(y_nhwc, (0, 3, 1, 2))
    return y_nhwc


# ----------------------------------------------------------------------------
# Parameter init (deterministic synthetic params for 4 DS-conv layers)
# ----------------------------------------------------------------------------
def init_midlevel_params(key, in_channels, out_channels=64):
    params = []
    cin = in_channels
    for i in range(4):
        k = jax.random.fold_in(key, i)
        k1, k2, k3, k4 = jax.random.split(k, 4)
        dw_w = jax.random.normal(k1, (3, 3, cin), jnp.float32) * 0.1
        dw_b = jax.random.normal(k2, (cin,), jnp.float32) * 0.1
        pw_w = jax.random.normal(k3, (cin, out_channels), jnp.float32) * 0.1
        pw_b = jax.random.normal(k4, (out_channels,), jnp.float32) * 0.1
        params.append((dw_w, dw_b, pw_w, pw_b))
        cin = out_channels
    return params


# ----------------------------------------------------------------------------
# Pure-JAX reference mirroring the kernel's math (f32 depthwise, bf16 MXU
# pointwise with f32 accumulation).  With mxu_dtype=float32 this is the exact
# f32 module semantics.
# ----------------------------------------------------------------------------
def _ref_forward(x_nchw, params, *, padding=2, dilation=2, mxu_dtype=jnp.bfloat16):
    x = jnp.transpose(x_nchw, (0, 2, 3, 1)).astype(jnp.float32)
    for i, (dw_w, dw_b, pw_w, pw_b) in enumerate(params):
        cin = x.shape[-1]
        dw = dw_w.reshape(3, 3, 1, cin)  # HWIO, feature_group_count=cin
        y = lax.conv_general_dilated(
            x, dw, window_strides=(1, 1),
            padding=[(padding, padding), (padding, padding)],
            rhs_dilation=(dilation, dilation),
            dimension_numbers=("NHWC", "HWIO", "NHWC"),
            feature_group_count=cin,
            precision=lax.Precision.HIGHEST)
        b_eff = dw_b @ pw_w + pw_b
        y = jnp.einsum("bhwc,cd->bhwd", y.astype(mxu_dtype), pw_w.astype(mxu_dtype),
                       preferred_element_type=jnp.float32) + b_eff
        if i < 3:
            y = jnp.where(y >= 0, y, LEAKY_SLOPE * y)
        x = y
    return jnp.transpose(x, (0, 3, 1, 2))


if __name__ == "__main__":
    key = jax.random.PRNGKey(0)
    k_x, k_p = jax.random.split(key)

    B, Cin, H, W = 2, 4, 16, 16
    Cout = 64
    x = jax.random.normal(k_x, (B, Cin, H, W), jnp.float32)  # NCHW like PyTorch
    params = init_midlevel_params(k_p, Cin, Cout)

    out = jax.block_until_ready(midlevel_forward(x, params))
    assert out.shape == (B, Cout, H, W), out.shape

    ref = jax.block_until_ready(_ref_forward(x, params))
    np.testing.assert_allclose(np.asarray(out), np.asarray(ref),
                               rtol=2e-3, atol=2e-3)

    print("KERNEL_OK")
</pallas_src>

<mosaic_0001>
module attributes {stable_mosaic.version = 11 : i64} {
  func.func @_midlevel_kernel(%arg0: i32, %arg1: memref<1x16x16x4xf32, #tpu.memory_space<vmem>>, %arg2: memref<3x3x4xf32, #tpu.memory_space<vmem>>, %arg3: memref<4x64xbf16, #tpu.memory_space<vmem>>, %arg4: memref<1x64xf32, #tpu.memory_space<vmem>>, %arg5: memref<3x3x3x64xf32, #tpu.memory_space<vmem>>, %arg6: memref<3x64x64xbf16, #tpu.memory_space<vmem>>, %arg7: memref<3x1x64xf32, #tpu.memory_space<vmem>>, %arg8: memref<1x16x16x64xf32, #tpu.memory_space<vmem>>, %arg9: memref<1x20x20x4xf32, #tpu.memory_space<vmem>>, %arg10: memref<1x20x20x64xf32, #tpu.memory_space<vmem>>, %arg11: memref<1x20x20x64xf32, #tpu.memory_space<vmem>>) attributes {dimension_semantics = [#tpu.dimension_semantics<parallel>], iteration_bounds = array<i64: 2>, scalar_prefetch = 0 : i64, scratch_operands = 3 : i64, tpu.core_type = #tpu.core_type<tc>, window_params = [{transform_indices = @transform_0, window_bounds = array<i64: 1, 16, 16, 4>}, {pipeline_mode = #tpu.pipeline_mode<synchronous>, transform_indices = @transform_1, window_bounds = array<i64: 3, 3, 4>}, {pipeline_mode = #tpu.pipeline_mode<synchronous>, transform_indices = @transform_2, window_bounds = array<i64: 4, 64>}, {pipeline_mode = #tpu.pipeline_mode<synchronous>, transform_indices = @transform_3, window_bounds = array<i64: 1, 64>}, {pipeline_mode = #tpu.pipeline_mode<synchronous>, transform_indices = @transform_4, window_bounds = array<i64: 3, 3, 3, 64>}, {pipeline_mode = #tpu.pipeline_mode<synchronous>, transform_indices = @transform_5, window_bounds = array<i64: 3, 64, 64>}, {pipeline_mode = #tpu.pipeline_mode<synchronous>, transform_indices = @transform_6, window_bounds = array<i64: 3, 1, 64>}, {transform_indices = @transform_7, window_bounds = array<i64: 1, 16, 16, 64>}]} {
    %cst = arith.constant 0.000000e+00 : f32
    %0 = vector.broadcast %cst : f32 to vector<1x2x20x4xf32>
    %c0 = arith.constant 0 : index
    %c0_0 = arith.constant 0 : index
    %c0_1 = arith.constant 0 : index
    %c0_2 = arith.constant 0 : index
    %1 = vector.load %arg9[%c0, %c0_0, %c0_1, %c0_2] : memref<1x20x20x4xf32, #tpu.memory_space<vmem>>, vector<1x2x20x4xf32>
    tpu.vector_store %arg9[%c0, %c0_0, %c0_1, %c0_2], %0 {strides = array<i32>} : memref<1x20x20x4xf32, #tpu.memory_space<vmem>>, vector<1x2x20x4xf32>,
    %cst_3 = arith.constant 0.000000e+00 : f32
    %2 = vector.broadcast %cst_3 : f32 to vector<1x2x20x4xf32>
    %c0_4 = arith.constant 0 : index
    %c18 = arith.constant 18 : index
    %c0_5 = arith.constant 0 : index
    %c0_6 = arith.constant 0 : index
    %3 = vector.load %arg9[%c0_4, %c18, %c0_5, %c0_6] : memref<1x20x20x4xf32, #tpu.memory_space<vmem>>, vector<1x2x20x4xf32>
    tpu.vector_store %arg9[%c0_4, %c18, %c0_5, %c0_6], %2 {strides = array<i32>} : memref<1x20x20x4xf32, #tpu.memory_space<vmem>>, vector<1x2x20x4xf32>,
    %cst_7 = arith.constant 0.000000e+00 : f32
    %4 = vector.broadcast %cst_7 : f32 to vector<1x16x2x4xf32>
    %c0_8 = arith.constant 0 : index
    %c2 = arith.constant 2 : index
    %c0_9 = arith.constant 0 : index
    %c0_10 = arith.constant 0 : index
    %5 = vector.load %arg9[%c0_8, %c2, %c0_9, %c0_10] : memref<1x20x20x4xf32, #tpu.memory_space<vmem>>, vector<1x16x2x4xf32>
    tpu.vector_store %arg9[%c0_8, %c2, %c0_9, %c0_10], %4 {strides = array<i32>} : memref<1x20x20x4xf32, #tpu.memory_space<vmem>>, vector<1x16x2x4xf32>,
    %cst_11 = arith.constant 0.000000e+00 : f32
    %6 = vector.broadcast %cst_11 : f32 to vector<1x16x2x4xf32>
    %c0_12 = arith.constant 0 : index
    %c2_13 = arith.constant 2 : index
    %c18_14 = arith.constant 18 : index
    %c0_15 = arith.constant 0 : index
    %7 = vector.load %arg9[%c0_12, %c2_13, %c18_14, %c0_15] : memref<1x20x20x4xf32, #tpu.memory_space<vmem>>, vector<1x16x2x4xf32>
    tpu.vector_store %arg9[%c0_12, %c2_13, %c18_14, %c0_15], %6 {strides = array<i32>} : memref<1x20x20x4xf32, #tpu.memory_space<vmem>>, vector<1x16x2x4xf32>,
    %cst_16 = arith.constant 0.000000e+00 : f32
    %8 = vector.broadcast %cst_16 : f32 to vector<1x2x20x64xf32>
    %c0_17 = arith.constant 0 : index
    %c0_18 = arith.constant 0 : index
    %c0_19 = arith.constant 0 : index
    %c0_20 = arith.constant 0 : index
    %9 = vector.load %arg10[%c0_17, %c0_18, %c0_19, %c0_20] : memref<1x20x20x64xf32, #tpu.memory_space<vmem>>, vector<1x2x20x64xf32>
    tpu.vector_store %arg10[%c0_17, %c0_18, %c0_19, %c0_20], %8 {strides = array<i32>} : memref<1x20x20x64xf32, #tpu.memory_space<vmem>>, vector<1x2x20x64xf32>,
    %cst_21 = arith.constant 0.000000e+00 : f32
    %10 = vector.broadcast %cst_21 : f32 to vector<1x2x20x64xf32>
    %c0_22 = arith.constant 0 : index
    %c18_23 = arith.constant 18 : index
    %c0_24 = arith.constant 0 : index
    %c0_25 = arith.constant 0 : index
    %11 = vector.load %arg10[%c0_22, %c18_23, %c0_24, %c0_25] : memref<1x20x20x64xf32, #tpu.memory_space<vmem>>, vector<1x2x20x64xf32>
    tpu.vector_store %arg10[%c0_22, %c18_23, %c0_24, %c0_25], %10 {strides = array<i32>} : memref<1x20x20x64xf32, #tpu.memory_space<vmem>>, vector<1x2x20x64xf32>,
    %cst_26 = arith.constant 0.000000e+00 : f32
    %12 = vector.broadcast %cst_26 : f32 to vector<1x16x2x64xf32>
    %c0_27 = arith.constant 0 : index
    %c2_28 = arith.constant 2 : index
    %c0_29 = arith.constant 0 : index
    %c0_30 = arith.constant 0 : index
    %13 = vector.load %arg10[%c0_27, %c2_28, %c0_29, %c0_30] : memref<1x20x20x64xf32, #tpu.memory_space<vmem>>, vector<1x16x2x64xf32>
    tpu.vector_store %arg10[%c0_27, %c2_28, %c0_29, %c0_30], %12 {strides = array<i32>} : memref<1x20x20x64xf32, #tpu.memory_space<vmem>>, vector<1x16x2x64xf32>,
    %cst_31 = arith.constant 0.000000e+00 : f32
    %14 = vector.broadcast %cst_31 : f32 to vector<1x16x2x64xf32>
    %c0_32 = arith.constant 0 : index
    %c2_33 = arith.constant 2 : index
    %c18_34 = arith.constant 18 : index
    %c0_35 = arith.constant 0 : index
    %15 = vector.load %arg10[%c0_32, %c2_33, %c18_34, %c0_35] : memref<1x20x20x64xf32, #tpu.memory_space<vmem>>, vector<1x16x2x64xf32>
    tpu.vector_store %arg10[%c0_32, %c2_33, %c18_34, %c0_35], %14 {strides = array<i32>} : memref<1x20x20x64xf32, #tpu.memory_space<vmem>>, vector<1x16x2x64xf32>,
    %cst_36 = arith.constant 0.000000e+00 : f32
    %16 = vector.broadcast %cst_36 : f32 to vector<1x2x20x64xf32>
    %c0_37 = arith.constant 0 : index
    %c0_38 = arith.constant 0 : index
    %c0_39 = arith.constant 0 : index
    %c0_40 = arith.constant 0 : index
    %17 = vector.load %arg11[%c0_37, %c0_38, %c0_39, %c0_40] : memref<1x20x20x64xf32, #tpu.memory_space<vmem>>, vector<1x2x20x64xf32>
    tpu.vector_store %arg11[%c0_37, %c0_38, %c0_39, %c0_40], %16 {strides = array<i32>} : memref<1x20x20x64xf32, #tpu.memory_space<vmem>>, vector<1x2x20x64xf32>,
    %cst_41 = arith.constant 0.000000e+00 : f32
    %18 = vector.broadcast %cst_41 : f32 to vector<1x2x20x64xf32>
    %c0_42 = arith.constant 0 : index
    %c18_43 = arith.constant 18 : index
    %c0_44 = arith.constant 0 : index
    %c0_45 = arith.constant 0 : index
    %19 = vector.load %arg11[%c0_42, %c18_43, %c0_44, %c0_45] : memref<1x20x20x64xf32, #tpu.memory_space<vmem>>, vector<1x2x20x64xf32>
    tpu.vector_store %arg11[%c0_42, %c18_43, %c0_44, %c0_45], %18 {strides = array<i32>} : memref<1x20x20x64xf32, #tpu.memory_space<vmem>>, vector<1x2x20x64xf32>,
    %cst_46 = arith.constant 0.000000e+00 : f32
    %20 = vector.broadcast %cst_46 : f32 to vector<1x16x2x64xf32>
    %c0_47 = arith.constant 0 : index
    %c2_48 = arith.constant 2 : index
    %c0_49 = arith.constant 0 : index
    %c0_50 = arith.constant 0 : index
    %21 = vector.load %arg11[%c0_47, %c2_48, %c0_49, %c0_50] : memref<1x20x20x64xf32, #tpu.memory_space<vmem>>, vector<1x16x2x64xf32>
    tpu.vector_store %arg11[%c0_47, %c2_48, %c0_49, %c0_50], %20 {strides = array<i32>} : memref<1x20x20x64xf32, #tpu.memory_space<vmem>>, vector<1x16x2x64xf32>,
    %cst_51 = arith.constant 0.000000e+00 : f32
    %22 = vector.broadcast %cst_51 : f32 to vector<1x16x2x64xf32>
    %c0_52 = arith.constant 0 : index
    %c2_53 = arith.constant 2 : index
    %c18_54 = arith.constant 18 : index
    %c0_55 = arith.constant 0 : index
    %23 = vector.load %arg11[%c0_52, %c2_53, %c18_54, %c0_55] : memref<1x20x20x64xf32, #tpu.memory_space<vmem>>, vector<1x16x2x64xf32>
    tpu.vector_store %arg11[%c0_52, %c2_53, %c18_54, %c0_55], %22 {strides = array<i32>} : memref<1x20x20x64xf32, #tpu.memory_space<vmem>>, vector<1x16x2x64xf32>,
    %c0_56 = arith.constant 0 : index
    %c0_57 = arith.constant 0 : index
    %c0_58 = arith.constant 0 : index
    %c0_59 = arith.constant 0 : index
    %24 = vector.load %arg1[%c0_56, %c0_57, %c0_58, %c0_59] : memref<1x16x16x4xf32, #tpu.memory_space<vmem>>, vector<1x16x16x4xf32>
    %c0_60 = arith.constant 0 : index
    %c2_61 = arith.constant 2 : index
    %c2_62 = arith.constant 2 : index
    %c0_63 = arith.constant 0 : index
    %25 = vector.load %arg9[%c0_60, %c2_61, %c2_62, %c0_63] : memref<1x20x20x4xf32, #tpu.memory_space<vmem>>, vector<1x16x16x4xf32>
    tpu.vector_store %arg9[%c0_60, %c2_61, %c2_62, %c0_63], %24 {strides = array<i32>} : memref<1x20x20x4xf32, #tpu.memory_space<vmem>>, vector<1x16x16x4xf32>,
    %c0_64 = arith.constant 0 : index
    %c0_65 = arith.constant 0 : index
    %c0_66 = arith.constant 0 : index
    %26 = vector.load %arg2[%c0_64, %c0_65, %c0_66] : memref<3x3x4xf32, #tpu.memory_space<vmem>>, vector<3x3x4xf32>
    %c0_67 = arith.constant 0 : index
    %c0_68 = arith.constant 0 : index
    %27 = vector.load %arg3[%c0_67, %c0_68] : memref<4x64xbf16, #tpu.memory_space<vmem>>, vector<4x64xbf16>
    %c0_69 = arith.constant 0 : index
    %c0_70 = arith.constant 0 : index
    %28 = vector.load %arg4[%c0_69, %c0_70] : memref<1x64xf32, #tpu.memory_space<vmem>>, vector<1x64xf32>
    %c0_i32 = arith.constant 0 : i32
    %c2_i32 = arith.constant 2 : i32
    %29 = arith.addi %c0_i32, %c2_i32 : i32
    %c1_i32 = arith.constant 1 : i32
    scf.for %arg12 = %c0_i32 to %29 step %c1_i32  : i32 {
      %c8_i32 = arith.constant 8 : i32
      %51 = arith.muli %arg12, %c8_i32 : i32
      %52 = tpu.assume_multiple %51, 8 : i32
      %c0_113 = arith.constant 0 : index
      %53 = arith.index_cast %52 : i32 to index
      %c0_114 = arith.constant 0 : index
      %c0_115 = arith.constant 0 : index
      %54 = vector.load %arg9[%c0_113, %53, %c0_114, %c0_115] : memref<1x20x20x4xf32, #tpu.memory_space<vmem>>, vector<1x8x16x4xf32>
      %55 = vector.extract_strided_slice %26 {offsets = [0, 0, 0], sizes = [1, 1, 4], strides = [1, 1, 1]} : vector<3x3x4xf32> to vector<1x1x4xf32>
      %56 = vector.shape_cast %55 : vector<1x1x4xf32> to vector<4xf32>
      %57 = vector.shape_cast %56 : vector<4xf32> to vector<1x1x1x4xf32>
      %58 = vector.broadcast %57 : vector<1x1x1x4xf32> to vector<1x8x16x4xf32>
      %59 = arith.mulf %54, %58 : vector<1x8x16x4xf32>
      %c0_i32_116 = arith.constant 0 : i32
      %60 = arith.addi %52, %c0_i32_116 : i32
      %c0_117 = arith.constant 0 : index
      %61 = arith.index_cast %60 : i32 to index
      %c2_118 = arith.constant 2 : index
      %c0_119 = arith.constant 0 : index
      %62 = vector.load %arg9[%c0_117, %61, %c2_118, %c0_119] : memref<1x20x20x4xf32, #tpu.memory_space<vmem>>, vector<1x8x16x4xf32>
      %63 = vector.extract_strided_slice %26 {offsets = [0, 1, 0], sizes = [1, 1, 4], strides = [1, 1, 1]} : vector<3x3x4xf32> to vector<1x1x4xf32>
      %64 = vector.shape_cast %63 : vector<1x1x4xf32> to vector<4xf32>
      %65 = vector.shape_cast %64 : vector<4xf32> to vector<1x1x1x4xf32>
      %66 = vector.broadcast %65 : vector<1x1x1x4xf32> to vector<1x8x16x4xf32>
      %67 = arith.mulf %62, %66 : vector<1x8x16x4xf32>
      %68 = arith.addf %59, %67 : vector<1x8x16x4xf32>
      %c0_i32_120 = arith.constant 0 : i32
      %69 = arith.addi %52, %c0_i32_120 : i32
      %c0_121 = arith.constant 0 : index
      %70 = arith.index_cast %69 : i32 to index
      %c4 = arith.constant 4 : index
      %c0_122 = arith.constant 0 : index
      %71 = vector.load %arg9[%c0_121, %70, %c4, %c0_122] : memref<1x20x20x4xf32, #tpu.memory_space<vmem>>, vector<1x8x16x4xf32>
      %72 = vector.extract_strided_slice %26 {offsets = [0, 2, 0], sizes = [1, 1, 4], strides = [1, 1, 1]} : vector<3x3x4xf32> to vector<1x1x4xf32>
      %73 = vector.shape_cast %72 : vector<1x1x4xf32> to vector<4xf32>
      %74 = vector.shape_cast %73 : vector<4xf32> to vector<1x1x1x4xf32>
      %75 = vector.broadcast %74 : vector<1x1x1x4xf32> to vector<1x8x16x4xf32>
      %76 = arith.mulf %71, %75 : vector<1x8x16x4xf32>
      %77 = arith.addf %68, %76 : vector<1x8x16x4xf32>
      %c2_i32_123 = arith.constant 2 : i32
      %78 = arith.addi %52, %c2_i32_123 : i32
      %c0_124 = arith.constant 0 : index
      %79 = arith.index_cast %78 : i32 to index
      %c0_125 = arith.constant 0 : index
      %c0_126 = arith.constant 0 : index
      %80 = vector.load %arg9[%c0_124, %79, %c0_125, %c0_126] : memref<1x20x20x4xf32, #tpu.memory_space<vmem>>, vector<1x8x16x4xf32>
      %81 = vector.extract_strided_slice %26 {offsets = [1, 0, 0], sizes = [1, 1, 4], strides = [1, 1, 1]} : vector<3x3x4xf32> to vector<1x1x4xf32>
      %82 = vector.shape_cast %81 : vector<1x1x4xf32> to vector<4xf32>
      %83 = vector.shape_cast %82 : vector<4xf32> to vector<1x1x1x4xf32>
      %84 = vector.broadcast %83 : vector<1x1x1x4xf32> to vector<1x8x16x4xf32>
      %85 = arith.mulf %80, %84 : vector<1x8x16x4xf32>
      %86 = arith.addf %77, %85 : vector<1x8x16x4xf32>
      %c2_i32_127 = arith.constant 2 : i32
      %87 = arith.addi %52, %c2_i32_127 : i32
      %c0_128 = arith.constant 0 : index
      %88 = arith.index_cast %87 : i32 to index
      %c2_129 = arith.constant 2 : index
      %c0_130 = arith.constant 0 : index
      %89 = vector.load %arg9[%c0_128, %88, %c2_129, %c0_130] : memref<1x20x20x4xf32, #tpu.memory_space<vmem>>, vector<1x8x16x4xf32>
      %90 = vector.extract_strided_slice %26 {offsets = [1, 1, 0], sizes = [1, 1, 4], strides = [1, 1, 1]} : vector<3x3x4xf32> to vector<1x1x4xf32>
      %91 = vector.shape_cast %90 : vector<1x1x4xf32> to vector<4xf32>
      %92 = vector.shape_cast %91 : vector<4xf32> to vector<1x1x1x4xf32>
      %93 = vector.broadcast %92 : vector<1x1x1x4xf32> to vector<1x8x16x4xf32>
      %94 = arith.mulf %89, %93 : vector<1x8x16x4xf32>
      %95 = arith.addf %86, %94 : vector<1x8x16x4xf32>
      %c2_i32_131 = arith.constant 2 : i32
      %96 = arith.addi %52, %c2_i32_131 : i32
      %c0_132 = arith.constant 0 : index
      %97 = arith.index_cast %96 : i32 to index
      %c4_133 = arith.constant 4 : index
      %c0_134 = arith.constant 0 : index
      %98 = vector.load %arg9[%c0_132, %97, %c4_133, %c0_134] : memref<1x20x20x4xf32, #tpu.memory_space<vmem>>, vector<1x8x16x4xf32>
      %99 = vector.extract_strided_slice %26 {offsets = [1, 2, 0], sizes = [1, 1, 4], strides = [1, 1, 1]} : vector<3x3x4xf32> to vector<1x1x4xf32>
      %100 = vector.shape_cast %99 : vector<1x1x4xf32> to vector<4xf32>
      %101 = vector.shape_cast %100 : vector<4xf32> to vector<1x1x1x4xf32>
      %102 = vector.broadcast %101 : vector<1x1x1x4xf32> to vector<1x8x16x4xf32>
      %103 = arith.mulf %98, %102 : vector<1x8x16x4xf32>
      %104 = arith.addf %95, %103 : vector<1x8x16x4xf32>
      %c4_i32 = arith.constant 4 : i32
      %105 = arith.addi %52, %c4_i32 : i32
      %c0_135 = arith.constant 0 : index
      %106 = arith.index_cast %105 : i32 to index
      %c0_136 = arith.constant 0 : index
      %c0_137 = arith.constant 0 : index
      %107 = vector.load %arg9[%c0_135, %106, %c0_136, %c0_137] : memref<1x20x20x4xf32, #tpu.memory_space<vmem>>, vector<1x8x16x4xf32>
      %108 = vector.extract_strided_slice %26 {offsets = [2, 0, 0], sizes = [1, 1, 4], strides = [1, 1, 1]} : vector<3x3x4xf32> to vector<1x1x4xf32>
      %109 = vector.shape_cast %108 : vector<1x1x4xf32> to vector<4xf32>
      %110 = vector.shape_cast %109 : vector<4xf32> to vector<1x1x1x4xf32>
      %111 = vector.broadcast %110 : vector<1x1x1x4xf32> to vector<1x8x16x4xf32>
      %112 = arith.mulf %107, %111 : vector<1x8x16x4xf32>
      %113 = arith.addf %104, %112 : vector<1x8x16x4xf32>
      %c4_i32_138 = arith.constant 4 : i32
      %114 = arith.addi %52, %c4_i32_138 : i32
      %c0_139 = arith.constant 0 : index
      %115 = arith.index_cast %114 : i32 to index
      %c2_140 = arith.constant 2 : index
      %c0_141 = arith.constant 0 : index
      %116 = vector.load %arg9[%c0_139, %115, %c2_140, %c0_141] : memref<1x20x20x4xf32, #tpu.memory_space<vmem>>, vector<1x8x16x4xf32>
      %117 = vector.extract_strided_slice %26 {offsets = [2, 1, 0], sizes = [1, 1, 4], strides = [1, 1, 1]} : vector<3x3x4xf32> to vector<1x1x4xf32>
      %118 = vector.shape_cast %117 : vector<1x1x4xf32> to vector<4xf32>
      %119 = vector.shape_cast %118 : vector<4xf32> to vector<1x1x1x4xf32>
      %120 = vector.broadcast %119 : vector<1x1x1x4xf32> to vector<1x8x16x4xf32>
      %121 = arith.mulf %116, %120 : vector<1x8x16x4xf32>
      %122 = arith.addf %113, %121 : vector<1x8x16x4xf32>
      %c4_i32_142 = arith.constant 4 : i32
      %123 = arith.addi %52, %c4_i32_142 : i32
      %c0_143 = arith.constant 0 : index
      %124 = arith.index_cast %123 : i32 to index
      %c4_144 = arith.constant 4 : index
      %c0_145 = arith.constant 0 : index
      %125 = vector.load %arg9[%c0_143, %124, %c4_144, %c0_145] : memref<1x20x20x4xf32, #tpu.memory_space<vmem>>, vector<1x8x16x4xf32>
      %126 = vector.extract_strided_slice %26 {offsets = [2, 2, 0], sizes = [1, 1, 4], strides = [1, 1, 1]} : vector<3x3x4xf32> to vector<1x1x4xf32>
      %127 = vector.shape_cast %126 : vector<1x1x4xf32> to vector<4xf32>
      %128 = vector.shape_cast %127 : vector<4xf32> to vector<1x1x1x4xf32>
      %129 = vector.broadcast %128 : vector<1x1x1x4xf32> to vector<1x8x16x4xf32>
      %130 = arith.mulf %125, %129 : vector<1x8x16x4xf32>
      %131 = arith.addf %122, %130 : vector<1x8x16x4xf32>
      %132 = vector.shape_cast %131 : vector<1x8x16x4xf32> to vector<128x4xf32>
      %133 = arith.truncf %132 : vector<128x4xf32> to vector<128x4xbf16>
      %cst_146 = arith.constant dense<0.000000e+00> : vector<128x64xf32>
      %134 = tpu.matmul %133, %27, %cst_146 {dimension_numbers = #tpu.dot_dimension_numbers<[1], [0], [0], [1], [0, 0, 1, 1], [], []>} : vector<128x4xbf16>, vector<4x64xbf16>, vector<128x64xf32> -> vector<128x64xf32>
      %135 = vector.broadcast %28 : vector<1x64xf32> to vector<128x64xf32>
      %136 = arith.addf %134, %135 : vector<128x64xf32>
      %cst_147 = arith.constant 0.000000e+00 : f32
      %137 = vector.broadcast %cst_147 : f32 to vector<128x64xf32>
      %138 = arith.cmpf oge, %136, %137 : vector<128x64xf32>
      %cst_148 = arith.constant 0.00999999977 : f32
      %139 = vector.broadcast %cst_148 : f32 to vector<128x64xf32>
      %140 = arith.mulf %139, %136 : vector<128x64xf32>
      %141 = arith.select %138, %136, %140 : vector<128x64xi1>, vector<128x64xf32>
      %142 = vector.shape_cast %141 : vector<128x64xf32> to vector<1x8x16x64xf32>
      %c2_i32_149 = arith.constant 2 : i32
      %143 = arith.addi %c2_i32_149, %52 : i32
      %c0_150 = arith.constant 0 : index
      %144 = arith.index_cast %143 : i32 to index
      %c2_151 = arith.constant 2 : index
      %c0_152 = arith.constant 0 : index
      %145 = vector.load %arg10[%c0_150, %144, %c2_151, %c0_152] : memref<1x20x20x64xf32, #tpu.memory_space<vmem>>, vector<1x8x16x64xf32>
      tpu.vector_store %arg10[%c0_150, %144, %c2_151, %c0_152], %142 {strides = array<i32>} : memref<1x20x20x64xf32, #tpu.memory_space<vmem>>, vector<1x8x16x64xf32>,
    }
    %c2_i32_71 = arith.constant 2 : i32
    %c0_72 = arith.constant 0 : index
    %c0_73 = arith.constant 0 : index
    %c0_74 = arith.constant 0 : index
    %c0_75 = arith.constant 0 : index
    %30 = vector.load %arg5[%c0_72, %c0_73, %c0_74, %c0_75] : memref<3x3x3x64xf32, #tpu.memory_space<vmem>>, vector<1x3x3x64xf32>
    %31 = vector.shape_cast %30 : vector<1x3x3x64xf32> to vector<3x3x64xf32>
    %c0_76 = arith.constant 0 : index
    %c0_77 = arith.constant 0 : index
    %c0_78 = arith.constant 0 : index
    %32 = vector.load %arg6[%c0_76, %c0_77, %c0_78] : memref<3x64x64xbf16, #tpu.memory_space<vmem>>, vector<1x64x64xbf16>
    %33 = vector.shape_cast %32 : vector<1x64x64xbf16> to vector<64x64xbf16>
    %c0_79 = arith.constant 0 : index
    %c0_80 = arith.constant 0 : index
    %c0_81 = arith.constant 0 : index
    %34 = vector.load %arg7[%c0_79, %c0_80, %c0_81] : memref<3x1x64xf32, #tpu.memory_space<vmem>>, vector<1x1x64xf32>
    %35 = vector.shape_cast %34 : vector<1x1x64xf32> to vector<1x64xf32>
    %c0_i32_82 = arith.constant 0 : i32
    %c2_i32_83 = arith.constant 2 : i32
    %36 = arith.addi %c0_i32_82, %c2_i32_83 : i32
    %c1_i32_84 = arith.constant 1 : i32
    scf.for %arg12 = %c0_i32_82 to %36 step %c1_i32_84  : i32 {
      %c8_i32 = arith.constant 8 : i32
      %51 = arith.muli %arg12, %c8_i32 : i32
      %52 = tpu.assume_multiple %51, 8 : i32
      %c0_113 = arith.constant 0 : index
      %53 = arith.index_cast %52 : i32 to index
      %c0_114 = arith.constant 0 : index
      %c0_115 = arith.constant 0 : index
      %54 = vector.load %arg10[%c0_113, %53, %c0_114, %c0_115] : memref<1x20x20x64xf32, #tpu.memory_space<vmem>>, vector<1x8x16x64xf32>
      %55 = vector.extract_strided_slice %31 {offsets = [0, 0, 0], sizes = [1, 1, 64], strides = [1, 1, 1]} : vector<3x3x64xf32> to vector<1x1x64xf32>
      %56 = vector.shape_cast %55 : vector<1x1x64xf32> to vector<64xf32>
      %57 = vector.shape_cast %56 : vector<64xf32> to vector<1x1x1x64xf32>
      %58 = vector.broadcast %57 : vector<1x1x1x64xf32> to vector<1x8x16x64xf32>
      %59 = arith.mulf %54, %58 : vector<1x8x16x64xf32>
      %c0_i32_116 = arith.constant 0 : i32
      %60 = arith.addi %52, %c0_i32_116 : i32
      %c0_117 = arith.constant 0 : index
      %61 = arith.index_cast %60 : i32 to index
      %c2_118 = arith.constant 2 : index
      %c0_119 = arith.constant 0 : index
      %62 = vector.load %arg10[%c0_117, %61, %c2_118, %c0_119] : memref<1x20x20x64xf32, #tpu.memory_space<vmem>>, vector<1x8x16x64xf32>
      %63 = vector.extract_strided_slice %31 {offsets = [0, 1, 0], sizes = [1, 1, 64], strides = [1, 1, 1]} : vector<3x3x64xf32> to vector<1x1x64xf32>
      %64 = vector.shape_cast %63 : vector<1x1x64xf32> to vector<64xf32>
      %65 = vector.shape_cast %64 : vector<64xf32> to vector<1x1x1x64xf32>
      %66 = vector.broadcast %65 : vector<1x1x1x64xf32> to vector<1x8x16x64xf32>
      %67 = arith.mulf %62, %66 : vector<1x8x16x64xf32>
      %68 = arith.addf %59, %67 : vector<1x8x16x64xf32>
      %c0_i32_120 = arith.constant 0 : i32
      %69 = arith.addi %52, %c0_i32_120 : i32
      %c0_121 = arith.constant 0 : index
      %70 = arith.index_cast %69 : i32 to index
      %c4 = arith.constant 4 : index
      %c0_122 = arith.constant 0 : index
      %71 = vector.load %arg10[%c0_121, %70, %c4, %c0_122] : memref<1x20x20x64xf32, #tpu.memory_space<vmem>>, vector<1x8x16x64xf32>
      %72 = vector.extract_strided_slice %31 {offsets = [0, 2, 0], sizes = [1, 1, 64], strides = [1, 1, 1]} : vector<3x3x64xf32> to vector<1x1x64xf32>
      %73 = vector.shape_cast %72 : vector<1x1x64xf32> to vector<64xf32>
      %74 = vector.shape_cast %73 : vector<64xf32> to vector<1x1x1x64xf32>
      %75 = vector.broadcast %74 : vector<1x1x1x64xf32> to vector<1x8x16x64xf32>
      %76 = arith.mulf %71, %75 : vector<1x8x16x64xf32>
      %77 = arith.addf %68, %76 : vector<1x8x16x64xf32>
      %c2_i32_123 = arith.constant 2 : i32
      %78 = arith.addi %52, %c2_i32_123 : i32
      %c0_124 = arith.constant 0 : index
      %79 = arith.index_cast %78 : i32 to index
      %c0_125 = arith.constant 0 : index
      %c0_126 = arith.constant 0 : index
      %80 = vector.load %arg10[%c0_124, %79, %c0_125, %c0_126] : memref<1x20x20x64xf32, #tpu.memory_space<vmem>>, vector<1x8x16x64xf32>
      %81 = vector.extract_strided_slice %31 {offsets = [1, 0, 0], sizes = [1, 1, 64], strides = [1, 1, 1]} : vector<3x3x64xf32> to vector<1x1x64xf32>
      %82 = vector.shape_cast %81 : vector<1x1x64xf32> to vector<64xf32>
      %83 = vector.shape_cast %82 : vector<64xf32> to vector<1x1x1x64xf32>
      %84 = vector.broadcast %83 : vector<1x1x1x64xf32> to vector<1x8x16x64xf32>
      %85 = arith.mulf %80, %84 : vector<1x8x16x64xf32>
      %86 = arith.addf %77, %85 : vector<1x8x16x64xf32>
      %c2_i32_127 = arith.constant 2 : i32
      %87 = arith.addi %52, %c2_i32_127 : i32
      %c0_128 = arith.constant 0 : index
      %88 = arith.index_cast %87 : i32 to index
      %c2_129 = arith.constant 2 : index
      %c0_130 = arith.constant 0 : index
      %89 = vector.load %arg10[%c0_128, %88, %c2_129, %c0_130] : memref<1x20x20x64xf32, #tpu.memory_space<vmem>>, vector<1x8x16x64xf32>
      %90 = vector.extract_strided_slice %31 {offsets = [1, 1, 0], sizes = [1, 1, 64], strides = [1, 1, 1]} : vector<3x3x64xf32> to vector<1x1x64xf32>
      %91 = vector.shape_cast %90 : vector<1x1x64xf32> to vector<64xf32>
      %92 = vector.shape_cast %91 : vector<64xf32> to vector<1x1x1x64xf32>
      %93 = vector.broadcast %92 : vector<1x1x1x64xf32> to vector<1x8x16x64xf32>
      %94 = arith.mulf %89, %93 : vector<1x8x16x64xf32>
      %95 = arith.addf %86, %94 : vector<1x8x16x64xf32>
      %c2_i32_131 = arith.constant 2 : i32
      %96 = arith.addi %52, %c2_i32_131 : i32
      %c0_132 = arith.constant 0 : index
      %97 = arith.index_cast %96 : i32 to index
      %c4_133 = arith.constant 4 : index
      %c0_134 = arith.constant 0 : index
      %98 = vector.load %arg10[%c0_132, %97, %c4_133, %c0_134] : memref<1x20x20x64xf32, #tpu.memory_space<vmem>>, vector<1x8x16x64xf32>
      %99 = vector.extract_strided_slice %31 {offsets = [1, 2, 0], sizes = [1, 1, 64], strides = [1, 1, 1]} : vector<3x3x64xf32> to vector<1x1x64xf32>
      %100 = vector.shape_cast %99 : vector<1x1x64xf32> to vector<64xf32>
      %101 = vector.shape_cast %100 : vector<64xf32> to vector<1x1x1x64xf32>
      %102 = vector.broadcast %101 : vector<1x1x1x64xf32> to vector<1x8x16x64xf32>
      %103 = arith.mulf %98, %102 : vector<1x8x16x64xf32>
      %104 = arith.addf %95, %103 : vector<1x8x16x64xf32>
      %c4_i32 = arith.constant 4 : i32
      %105 = arith.addi %52, %c4_i32 : i32
      %c0_135 = arith.constant 0 : index
      %106 = arith.index_cast %105 : i32 to index
      %c0_136 = arith.constant 0 : index
      %c0_137 = arith.constant 0 : index
      %107 = vector.load %arg10[%c0_135, %106, %c0_136, %c0_137] : memref<1x20x20x64xf32, #tpu.memory_space<vmem>>, vector<1x8x16x64xf32>
      %108 = vector.extract_strided_slice %31 {offsets = [2, 0, 0], sizes = [1, 1, 64], strides = [1, 1, 1]} : vector<3x3x64xf32> to vector<1x1x64xf32>
      %109 = vector.shape_cast %108 : vector<1x1x64xf32> to vector<64xf32>
      %110 = vector.shape_cast %109 : vector<64xf32> to vector<1x1x1x64xf32>
      %111 = vector.broadcast %110 : vector<1x1x1x64xf32> to vector<1x8x16x64xf32>
      %112 = arith.mulf %107, %111 : vector<1x8x16x64xf32>
      %113 = arith.addf %104, %112 : vector<1x8x16x64xf32>
      %c4_i32_138 = arith.constant 4 : i32
      %114 = arith.addi %52, %c4_i32_138 : i32
      %c0_139 = arith.constant 0 : index
      %115 = arith.index_cast %114 : i32 to index
      %c2_140 = arith.constant 2 : index
      %c0_141 = arith.constant 0 : index
      %116 = vector.load %arg10[%c0_139, %115, %c2_140, %c0_141] : memref<1x20x20x64xf32, #tpu.memory_space<vmem>>, vector<1x8x16x64xf32>
      %117 = vector.extract_strided_slice %31 {offsets = [2, 1, 0], sizes = [1, 1, 64], strides = [1, 1, 1]} : vector<3x3x64xf32> to vector<1x1x64xf32>
      %118 = vector.shape_cast %117 : vector<1x1x64xf32> to vector<64xf32>
      %119 = vector.shape_cast %118 : vector<64xf32> to vector<1x1x1x64xf32>
      %120 = vector.broadcast %119 : vector<1x1x1x64xf32> to vector<1x8x16x64xf32>
      %121 = arith.mulf %116, %120 : vector<1x8x16x64xf32>
      %122 = arith.addf %113, %121 : vector<1x8x16x64xf32>
      %c4_i32_142 = arith.constant 4 : i32
      %123 = arith.addi %52, %c4_i32_142 : i32
      %c0_143 = arith.constant 0 : index
      %124 = arith.index_cast %123 : i32 to index
      %c4_144 = arith.constant 4 : index
      %c0_145 = arith.constant 0 : index
      %125 = vector.load %arg10[%c0_143, %124, %c4_144, %c0_145] : memref<1x20x20x64xf32, #tpu.memory_space<vmem>>, vector<1x8x16x64xf32>
      %126 = vector.extract_strided_slice %31 {offsets = [2, 2, 0], sizes = [1, 1, 64], strides = [1, 1, 1]} : vector<3x3x64xf32> to vector<1x1x64xf32>
      %127 = vector.shape_cast %126 : vector<1x1x64xf32> to vector<64xf32>
      %128 = vector.shape_cast %127 : vector<64xf32> to vector<1x1x1x64xf32>
      %129 = vector.broadcast %128 : vector<1x1x1x64xf32> to vector<1x8x16x64xf32>
      %130 = arith.mulf %125, %129 : vector<1x8x16x64xf32>
      %131 = arith.addf %122, %130 : vector<1x8x16x64xf32>
      %132 = vector.shape_cast %131 : vector<1x8x16x64xf32> to vector<128x64xf32>
      %133 = arith.truncf %132 : vector<128x64xf32> to vector<128x64xbf16>
      %cst_146 = arith.constant dense<0.000000e+00> : vector<128x64xf32>
      %134 = tpu.matmul %133, %33, %cst_146 {dimension_numbers = #tpu.dot_dimension_numbers<[1], [0], [0], [1], [0, 0, 1, 1], [], []>} : vector<128x64xbf16>, vector<64x64xbf16>, vector<128x64xf32> -> vector<128x64xf32>
      %135 = vector.broadcast %35 : vector<1x64xf32> to vector<128x64xf32>
      %136 = arith.addf %134, %135 : vector<128x64xf32>
      %cst_147 = arith.constant 0.000000e+00 : f32
      %137 = vector.broadcast %cst_147 : f32 to vector<128x64xf32>
      %138 = arith.cmpf oge, %136, %137 : vector<128x64xf32>
      %cst_148 = arith.constant 0.00999999977 : f32
      %139 = vector.broadcast %cst_148 : f32 to vector<128x64xf32>
      %140 = arith.mulf %139, %136 : vector<128x64xf32>
      %141 = arith.select %138, %136, %140 : vector<128x64xi1>, vector<128x64xf32>
      %142 = vector.shape_cast %141 : vector<128x64xf32> to vector<1x8x16x64xf32>
      %c2_i32_149 = arith.constant 2 : i32
      %143 = arith.addi %c2_i32_149, %52 : i32
      %c0_150 = arith.constant 0 : index
      %144 = arith.index_cast %143 : i32 to index
      %c2_151 = arith.constant 2 : index
      %c0_152 = arith.constant 0 : index
      %145 = vector.load %arg11[%c0_150, %144, %c2_151, %c0_152] : memref<1x20x20x64xf32, #tpu.memory_space<vmem>>, vector<1x8x16x64xf32>
      tpu.vector_store %arg11[%c0_150, %144, %c2_151, %c0_152], %142 {strides = array<i32>} : memref<1x20x20x64xf32, #tpu.memory_space<vmem>>, vector<1x8x16x64xf32>,
    }
    %c2_i32_85 = arith.constant 2 : i32
    %c1 = arith.constant 1 : index
    %c0_86 = arith.constant 0 : index
    %c0_87 = arith.constant 0 : index
    %c0_88 = arith.constant 0 : index
    %37 = vector.load %arg5[%c1, %c0_86, %c0_87, %c0_88] : memref<3x3x3x64xf32, #tpu.memory_space<vmem>>, vector<1x3x3x64xf32>
    %38 = vector.shape_cast %37 : vector<1x3x3x64xf32> to vector<3x3x64xf32>
    %c1_89 = arith.constant 1 : index
    %c0_90 = arith.constant 0 : index
    %c0_91 = arith.constant 0 : index
    %39 = vector.load %arg6[%c1_89, %c0_90, %c0_91] : memref<3x64x64xbf16, #tpu.memory_space<vmem>>, vector<1x64x64xbf16>
    %40 = vector.shape_cast %39 : vector<1x64x64xbf16> to vector<64x64xbf16>
    %c1_92 = arith.constant 1 : index
    %c0_93 = arith.constant 0 : index
    %c0_94 = arith.constant 0 : index
    %41 = vector.load %arg7[%c1_92, %c0_93, %c0_94] : memref<3x1x64xf32, #tpu.memory_space<vmem>>, vector<1x1x64xf32>
    %42 = vector.shape_cast %41 : vector<1x1x64xf32> to vector<1x64xf32>
    %c0_i32_95 = arith.constant 0 : i32
    %c2_i32_96 = arith.constant 2 : i32
    %43 = arith.addi %c0_i32_95, %c2_i32_96 : i32
    %c1_i32_97 = arith.constant 1 : i32
    scf.for %arg12 = %c0_i32_95 to %43 step %c1_i32_97  : i32 {
      %c8_i32 = arith.constant 8 : i32
      %51 = arith.muli %arg12, %c8_i32 : i32
      %52 = tpu.assume_multiple %51, 8 : i32
      %c0_113 = arith.constant 0 : index
      %53 = arith.index_cast %52 : i32 to index
      %c0_114 = arith.constant 0 : index
      %c0_115 = arith.constant 0 : index
      %54 = vector.load %arg11[%c0_113, %53, %c0_114, %c0_115] : memref<1x20x20x64xf32, #tpu.memory_space<vmem>>, vector<1x8x16x64xf32>
      %55 = vector.extract_strided_slice %38 {offsets = [0, 0, 0], sizes = [1, 1, 64], strides = [1, 1, 1]} : vector<3x3x64xf32> to vector<1x1x64xf32>
      %56 = vector.shape_cast %55 : vector<1x1x64xf32> to vector<64xf32>
      %57 = vector.shape_cast %56 : vector<64xf32> to vector<1x1x1x64xf32>
      %58 = vector.broadcast %57 : vector<1x1x1x64xf32> to vector<1x8x16x64xf32>
      %59 = arith.mulf %54, %58 : vector<1x8x16x64xf32>
      %c0_i32_116 = arith.constant 0 : i32
      %60 = arith.addi %52, %c0_i32_116 : i32
      %c0_117 = arith.constant 0 : index
      %61 = arith.index_cast %60 : i32 to index
      %c2_118 = arith.constant 2 : index
      %c0_119 = arith.constant 0 : index
      %62 = vector.load %arg11[%c0_117, %61, %c2_118, %c0_119] : memref<1x20x20x64xf32, #tpu.memory_space<vmem>>, vector<1x8x16x64xf32>
      %63 = vector.extract_strided_slice %38 {offsets = [0, 1, 0], sizes = [1, 1, 64], strides = [1, 1, 1]} : vector<3x3x64xf32> to vector<1x1x64xf32>
      %64 = vector.shape_cast %63 : vector<1x1x64xf32> to vector<64xf32>
      %65 = vector.shape_cast %64 : vector<64xf32> to vector<1x1x1x64xf32>
      %66 = vector.broadcast %65 : vector<1x1x1x64xf32> to vector<1x8x16x64xf32>
      %67 = arith.mulf %62, %66 : vector<1x8x16x64xf32>
      %68 = arith.addf %59, %67 : vector<1x8x16x64xf32>
      %c0_i32_120 = arith.constant 0 : i32
      %69 = arith.addi %52, %c0_i32_120 : i32
      %c0_121 = arith.constant 0 : index
      %70 = arith.index_cast %69 : i32 to index
      %c4 = arith.constant 4 : index
      %c0_122 = arith.constant 0 : index
      %71 = vector.load %arg11[%c0_121, %70, %c4, %c0_122] : memref<1x20x20x64xf32, #tpu.memory_space<vmem>>, vector<1x8x16x64xf32>
      %72 = vector.extract_strided_slice %38 {offsets = [0, 2, 0], sizes = [1, 1, 64], strides = [1, 1, 1]} : vector<3x3x64xf32> to vector<1x1x64xf32>
      %73 = vector.shape_cast %72 : vector<1x1x64xf32> to vector<64xf32>
      %74 = vector.shape_cast %73 : vector<64xf32> to vector<1x1x1x64xf32>
      %75 = vector.broadcast %74 : vector<1x1x1x64xf32> to vector<1x8x16x64xf32>
      %76 = arith.mulf %71, %75 : vector<1x8x16x64xf32>
      %77 = arith.addf %68, %76 : vector<1x8x16x64xf32>
      %c2_i32_123 = arith.constant 2 : i32
      %78 = arith.addi %52, %c2_i32_123 : i32
      %c0_124 = arith.constant 0 : index
      %79 = arith.index_cast %78 : i32 to index
      %c0_125 = arith.constant 0 : index
      %c0_126 = arith.constant 0 : index
      %80 = vector.load %arg11[%c0_124, %79, %c0_125, %c0_126] : memref<1x20x20x64xf32, #tpu.memory_space<vmem>>, vector<1x8x16x64xf32>
      %81 = vector.extract_strided_slice %38 {offsets = [1, 0, 0], sizes = [1, 1, 64], strides = [1, 1, 1]} : vector<3x3x64xf32> to vector<1x1x64xf32>
      %82 = vector.shape_cast %81 : vector<1x1x64xf32> to vector<64xf32>
      %83 = vector.shape_cast %82 : vector<64xf32> to vector<1x1x1x64xf32>
      %84 = vector.broadcast %83 : vector<1x1x1x64xf32> to vector<1x8x16x64xf32>
      %85 = arith.mulf %80, %84 : vector<1x8x16x64xf32>
      %86 = arith.addf %77, %85 : vector<1x8x16x64xf32>
      %c2_i32_127 = arith.constant 2 : i32
      %87 = arith.addi %52, %c2_i32_127 : i32
      %c0_128 = arith.constant 0 : index
      %88 = arith.index_cast %87 : i32 to index
      %c2_129 = arith.constant 2 : index
      %c0_130 = arith.constant 0 : index
      %89 = vector.load %arg11[%c0_128, %88, %c2_129, %c0_130] : memref<1x20x20x64xf32, #tpu.memory_space<vmem>>, vector<1x8x16x64xf32>
      %90 = vector.extract_strided_slice %38 {offsets = [1, 1, 0], sizes = [1, 1, 64], strides = [1, 1, 1]} : vector<3x3x64xf32> to vector<1x1x64xf32>
      %91 = vector.shape_cast %90 : vector<1x1x64xf32> to vector<64xf32>
      %92 = vector.shape_cast %91 : vector<64xf32> to vector<1x1x1x64xf32>
      %93 = vector.broadcast %92 : vector<1x1x1x64xf32> to vector<1x8x16x64xf32>
      %94 = arith.mulf %89, %93 : vector<1x8x16x64xf32>
      %95 = arith.addf %86, %94 : vector<1x8x16x64xf32>
      %c2_i32_131 = arith.constant 2 : i32
      %96 = arith.addi %52, %c2_i32_131 : i32
      %c0_132 = arith.constant 0 : index
      %97 = arith.index_cast %96 : i32 to index
      %c4_133 = arith.constant 4 : index
      %c0_134 = arith.constant 0 : index
      %98 = vector.load %arg11[%c0_132, %97, %c4_133, %c0_134] : memref<1x20x20x64xf32, #tpu.memory_space<vmem>>, vector<1x8x16x64xf32>
      %99 = vector.extract_strided_slice %38 {offsets = [1, 2, 0], sizes = [1, 1, 64], strides = [1, 1, 1]} : vector<3x3x64xf32> to vector<1x1x64xf32>
      %100 = vector.shape_cast %99 : vector<1x1x64xf32> to vector<64xf32>
      %101 = vector.shape_cast %100 : vector<64xf32> to vector<1x1x1x64xf32>
      %102 = vector.broadcast %101 : vector<1x1x1x64xf32> to vector<1x8x16x64xf32>
      %103 = arith.mulf %98, %102 : vector<1x8x16x64xf32>
      %104 = arith.addf %95, %103 : vector<1x8x16x64xf32>
      %c4_i32 = arith.constant 4 : i32
      %105 = arith.addi %52, %c4_i32 : i32
      %c0_135 = arith.constant 0 : index
      %106 = arith.index_cast %105 : i32 to index
      %c0_136 = arith.constant 0 : index
      %c0_137 = arith.constant 0 : index
      %107 = vector.load %arg11[%c0_135, %106, %c0_136, %c0_137] : memref<1x20x20x64xf32, #tpu.memory_space<vmem>>, vector<1x8x16x64xf32>
      %108 = vector.extract_strided_slice %38 {offsets = [2, 0, 0], sizes = [1, 1, 64], strides = [1, 1, 1]} : vector<3x3x64xf32> to vector<1x1x64xf32>
      %109 = vector.shape_cast %108 : vector<1x1x64xf32> to vector<64xf32>
      %110 = vector.shape_cast %109 : vector<64xf32> to vector<1x1x1x64xf32>
      %111 = vector.broadcast %110 : vector<1x1x1x64xf32> to vector<1x8x16x64xf32>
      %112 = arith.mulf %107, %111 : vector<1x8x16x64xf32>
      %113 = arith.addf %104, %112 : vector<1x8x16x64xf32>
      %c4_i32_138 = arith.constant 4 : i32
      %114 = arith.addi %52, %c4_i32_138 : i32
      %c0_139 = arith.constant 0 : index
      %115 = arith.index_cast %114 : i32 to index
      %c2_140 = arith.constant 2 : index
      %c0_141 = arith.constant 0 : index
      %116 = vector.load %arg11[%c0_139, %115, %c2_140, %c0_141] : memref<1x20x20x64xf32, #tpu.memory_space<vmem>>, vector<1x8x16x64xf32>
      %117 = vector.extract_strided_slice %38 {offsets = [2, 1, 0], sizes = [1, 1, 64], strides = [1, 1, 1]} : vector<3x3x64xf32> to vector<1x1x64xf32>
      %118 = vector.shape_cast %117 : vector<1x1x64xf32> to vector<64xf32>
      %119 = vector.shape_cast %118 : vector<64xf32> to vector<1x1x1x64xf32>
      %120 = vector.broadcast %119 : vector<1x1x1x64xf32> to vector<1x8x16x64xf32>
      %121 = arith.mulf %116, %120 : vector<1x8x16x64xf32>
      %122 = arith.addf %113, %121 : vector<1x8x16x64xf32>
      %c4_i32_142 = arith.constant 4 : i32
      %123 = arith.addi %52, %c4_i32_142 : i32
      %c0_143 = arith.constant 0 : index
      %124 = arith.index_cast %123 : i32 to index
      %c4_144 = arith.constant 4 : index
      %c0_145 = arith.constant 0 : index
      %125 = vector.load %arg11[%c0_143, %124, %c4_144, %c0_145] : memref<1x20x20x64xf32, #tpu.memory_space<vmem>>, vector<1x8x16x64xf32>
      %126 = vector.extract_strided_slice %38 {offsets = [2, 2, 0], sizes = [1, 1, 64], strides = [1, 1, 1]} : vector<3x3x64xf32> to vector<1x1x64xf32>
      %127 = vector.shape_cast %126 : vector<1x1x64xf32> to vector<64xf32>
      %128 = vector.shape_cast %127 : vector<64xf32> to vector<1x1x1x64xf32>
      %129 = vector.broadcast %128 : vector<1x1x1x64xf32> to vector<1x8x16x64xf32>
      %130 = arith.mulf %125, %129 : vector<1x8x16x64xf32>
      %131 = arith.addf %122, %130 : vector<1x8x16x64xf32>
      %132 = vector.shape_cast %131 : vector<1x8x16x64xf32> to vector<128x64xf32>
      %133 = arith.truncf %132 : vector<128x64xf32> to vector<128x64xbf16>
      %cst_146 = arith.constant dense<0.000000e+00> : vector<128x64xf32>
      %134 = tpu.matmul %133, %40, %cst_146 {dimension_numbers = #tpu.dot_dimension_numbers<[1], [0], [0], [1], [0, 0, 1, 1], [], []>} : vector<128x64xbf16>, vector<64x64xbf16>, vector<128x64xf32> -> vector<128x64xf32>
      %135 = vector.broadcast %42 : vector<1x64xf32> to vector<128x64xf32>
      %136 = arith.addf %134, %135 : vector<128x64xf32>
      %cst_147 = arith.constant 0.000000e+00 : f32
      %137 = vector.broadcast %cst_147 : f32 to vector<128x64xf32>
      %138 = arith.cmpf oge, %136, %137 : vector<128x64xf32>
      %cst_148 = arith.constant 0.00999999977 : f32
      %139 = vector.broadcast %cst_148 : f32 to vector<128x64xf32>
      %140 = arith.mulf %139, %136 : vector<128x64xf32>
      %141 = arith.select %138, %136, %140 : vector<128x64xi1>, vector<128x64xf32>
      %142 = vector.shape_cast %141 : vector<128x64xf32> to vector<1x8x16x64xf32>
      %c2_i32_149 = arith.constant 2 : i32
      %143 = arith.addi %c2_i32_149, %52 : i32
      %c0_150 = arith.constant 0 : index
      %144 = arith.index_cast %143 : i32 to index
      %c2_151 = arith.constant 2 : index
      %c0_152 = arith.constant 0 : index
      %145 = vector.load %arg10[%c0_150, %144, %c2_151, %c0_152] : memref<1x20x20x64xf32, #tpu.memory_space<vmem>>, vector<1x8x16x64xf32>
      tpu.vector_store %arg10[%c0_150, %144, %c2_151, %c0_152], %142 {strides = array<i32>} : memref<1x20x20x64xf32, #tpu.memory_space<vmem>>, vector<1x8x16x64xf32>,
    }
    %c2_i32_98 = arith.constant 2 : i32
    %c2_99 = arith.constant 2 : index
    %c0_100 = arith.constant 0 : index
    %c0_101 = arith.constant 0 : index
    %c0_102 = arith.constant 0 : index
    %44 = vector.load %arg5[%c2_99, %c0_100, %c0_101, %c0_102] : memref<3x3x3x64xf32, #tpu.memory_space<vmem>>, vector<1x3x3x64xf32>
    %45 = vector.shape_cast %44 : vector<1x3x3x64xf32> to vector<3x3x64xf32>
    %c2_103 = arith.constant 2 : index
    %c0_104 = arith.constant 0 : index
    %c0_105 = arith.constant 0 : index
    %46 = vector.load %arg6[%c2_103, %c0_104, %c0_105] : memref<3x64x64xbf16, #tpu.memory_space<vmem>>, vector<1x64x64xbf16>
    %47 = vector.shape_cast %46 : vector<1x64x64xbf16> to vector<64x64xbf16>
    %c2_106 = arith.constant 2 : index
    %c0_107 = arith.constant 0 : index
    %c0_108 = arith.constant 0 : index
    %48 = vector.load %arg7[%c2_106, %c0_107, %c0_108] : memref<3x1x64xf32, #tpu.memory_space<vmem>>, vector<1x1x64xf32>
    %49 = vector.shape_cast %48 : vector<1x1x64xf32> to vector<1x64xf32>
    %c0_i32_109 = arith.constant 0 : i32
    %c2_i32_110 = arith.constant 2 : i32
    %50 = arith.addi %c0_i32_109, %c2_i32_110 : i32
    %c1_i32_111 = arith.constant 1 : i32
    scf.for %arg12 = %c0_i32_109 to %50 step %c1_i32_111  : i32 {
      %c8_i32 = arith.constant 8 : i32
      %51 = arith.muli %arg12, %c8_i32 : i32
      %52 = tpu.assume_multiple %51, 8 : i32
      %c0_113 = arith.constant 0 : index
      %53 = arith.index_cast %52 : i32 to index
      %c0_114 = arith.constant 0 : index
      %c0_115 = arith.constant 0 : index
      %54 = vector.load %arg10[%c0_113, %53, %c0_114, %c0_115] : memref<1x20x20x64xf32, #tpu.memory_space<vmem>>, vector<1x8x16x64xf32>
      %55 = vector.extract_strided_slice %45 {offsets = [0, 0, 0], sizes = [1, 1, 64], strides = [1, 1, 1]} : vector<3x3x64xf32> to vector<1x1x64xf32>
      %56 = vector.shape_cast %55 : vector<1x1x64xf32> to vector<64xf32>
      %57 = vector.shape_cast %56 : vector<64xf32> to vector<1x1x1x64xf32>
      %58 = vector.broadcast %57 : vector<1x1x1x64xf32> to vector<1x8x16x64xf32>
      %59 = arith.mulf %54, %58 : vector<1x8x16x64xf32>
      %c0_i32_116 = arith.constant 0 : i32
      %60 = arith.addi %52, %c0_i32_116 : i32
      %c0_117 = arith.constant 0 : index
      %61 = arith.index_cast %60 : i32 to index
      %c2_118 = arith.constant 2 : index
      %c0_119 = arith.constant 0 : index
      %62 = vector.load %arg10[%c0_117, %61, %c2_118, %c0_119] : memref<1x20x20x64xf32, #tpu.memory_space<vmem>>, vector<1x8x16x64xf32>
      %63 = vector.extract_strided_slice %45 {offsets = [0, 1, 0], sizes = [1, 1, 64], strides = [1, 1, 1]} : vector<3x3x64xf32> to vector<1x1x64xf32>
      %64 = vector.shape_cast %63 : vector<1x1x64xf32> to vector<64xf32>
      %65 = vector.shape_cast %64 : vector<64xf32> to vector<1x1x1x64xf32>
      %66 = vector.broadcast %65 : vector<1x1x1x64xf32> to vector<1x8x16x64xf32>
      %67 = arith.mulf %62, %66 : vector<1x8x16x64xf32>
      %68 = arith.addf %59, %67 : vector<1x8x16x64xf32>
      %c0_i32_120 = arith.constant 0 : i32
      %69 = arith.addi %52, %c0_i32_120 : i32
      %c0_121 = arith.constant 0 : index
      %70 = arith.index_cast %69 : i32 to index
      %c4 = arith.constant 4 : index
      %c0_122 = arith.constant 0 : index
      %71 = vector.load %arg10[%c0_121, %70, %c4, %c0_122] : memref<1x20x20x64xf32, #tpu.memory_space<vmem>>, vector<1x8x16x64xf32>
      %72 = vector.extract_strided_slice %45 {offsets = [0, 2, 0], sizes = [1, 1, 64], strides = [1, 1, 1]} : vector<3x3x64xf32> to vector<1x1x64xf32>
      %73 = vector.shape_cast %72 : vector<1x1x64xf32> to vector<64xf32>
      %74 = vector.shape_cast %73 : vector<64xf32> to vector<1x1x1x64xf32>
      %75 = vector.broadcast %74 : vector<1x1x1x64xf32> to vector<1x8x16x64xf32>
      %76 = arith.mulf %71, %75 : vector<1x8x16x64xf32>
      %77 = arith.addf %68, %76 : vector<1x8x16x64xf32>
      %c2_i32_123 = arith.constant 2 : i32
      %78 = arith.addi %52, %c2_i32_123 : i32
      %c0_124 = arith.constant 0 : index
      %79 = arith.index_cast %78 : i32 to index
      %c0_125 = arith.constant 0 : index
      %c0_126 = arith.constant 0 : index
      %80 = vector.load %arg10[%c0_124, %79, %c0_125, %c0_126] : memref<1x20x20x64xf32, #tpu.memory_space<vmem>>, vector<1x8x16x64xf32>
      %81 = vector.extract_strided_slice %45 {offsets = [1, 0, 0], sizes = [1, 1, 64], strides = [1, 1, 1]} : vector<3x3x64xf32> to vector<1x1x64xf32>
      %82 = vector.shape_cast %81 : vector<1x1x64xf32> to vector<64xf32>
      %83 = vector.shape_cast %82 : vector<64xf32> to vector<1x1x1x64xf32>
      %84 = vector.broadcast %83 : vector<1x1x1x64xf32> to vector<1x8x16x64xf32>
      %85 = arith.mulf %80, %84 : vector<1x8x16x64xf32>
      %86 = arith.addf %77, %85 : vector<1x8x16x64xf32>
      %c2_i32_127 = arith.constant 2 : i32
      %87 = arith.addi %52, %c2_i32_127 : i32
      %c0_128 = arith.constant 0 : index
      %88 = arith.index_cast %87 : i32 to index
      %c2_129 = arith.constant 2 : index
      %c0_130 = arith.constant 0 : index
      %89 = vector.load %arg10[%c0_128, %88, %c2_129, %c0_130] : memref<1x20x20x64xf32, #tpu.memory_space<vmem>>, vector<1x8x16x64xf32>
      %90 = vector.extract_strided_slice %45 {offsets = [1, 1, 0], sizes = [1, 1, 64], strides = [1, 1, 1]} : vector<3x3x64xf32> to vector<1x1x64xf32>
      %91 = vector.shape_cast %90 : vector<1x1x64xf32> to vector<64xf32>
      %92 = vector.shape_cast %91 : vector<64xf32> to vector<1x1x1x64xf32>
      %93 = vector.broadcast %92 : vector<1x1x1x64xf32> to vector<1x8x16x64xf32>
      %94 = arith.mulf %89, %93 : vector<1x8x16x64xf32>
      %95 = arith.addf %86, %94 : vector<1x8x16x64xf32>
      %c2_i32_131 = arith.constant 2 : i32
      %96 = arith.addi %52, %c2_i32_131 : i32
      %c0_132 = arith.constant 0 : index
      %97 = arith.index_cast %96 : i32 to index
      %c4_133 = arith.constant 4 : index
      %c0_134 = arith.constant 0 : index
      %98 = vector.load %arg10[%c0_132, %97, %c4_133, %c0_134] : memref<1x20x20x64xf32, #tpu.memory_space<vmem>>, vector<1x8x16x64xf32>
      %99 = vector.extract_strided_slice %45 {offsets = [1, 2, 0], sizes = [1, 1, 64], strides = [1, 1, 1]} : vector<3x3x64xf32> to vector<1x1x64xf32>
      %100 = vector.shape_cast %99 : vector<1x1x64xf32> to vector<64xf32>
      %101 = vector.shape_cast %100 : vector<64xf32> to vector<1x1x1x64xf32>
      %102 = vector.broadcast %101 : vector<1x1x1x64xf32> to vector<1x8x16x64xf32>
      %103 = arith.mulf %98, %102 : vector<1x8x16x64xf32>
      %104 = arith.addf %95, %103 : vector<1x8x16x64xf32>
      %c4_i32 = arith.constant 4 : i32
      %105 = arith.addi %52, %c4_i32 : i32
      %c0_135 = arith.constant 0 : index
      %106 = arith.index_cast %105 : i32 to index
      %c0_136 = arith.constant 0 : index
      %c0_137 = arith.constant 0 : index
      %107 = vector.load %arg10[%c0_135, %106, %c0_136, %c0_137] : memref<1x20x20x64xf32, #tpu.memory_space<vmem>>, vector<1x8x16x64xf32>
      %108 = vector.extract_strided_slice %45 {offsets = [2, 0, 0], sizes = [1, 1, 64], strides = [1, 1, 1]} : vector<3x3x64xf32> to vector<1x1x64xf32>
      %109 = vector.shape_cast %108 : vector<1x1x64xf32> to vector<64xf32>
      %110 = vector.shape_cast %109 : vector<64xf32> to vector<1x1x1x64xf32>
      %111 = vector.broadcast %110 : vector<1x1x1x64xf32> to vector<1x8x16x64xf32>
      %112 = arith.mulf %107, %111 : vector<1x8x16x64xf32>
      %113 = arith.addf %104, %112 : vector<1x8x16x64xf32>
      %c4_i32_138 = arith.constant 4 : i32
      %114 = arith.addi %52, %c4_i32_138 : i32
      %c0_139 = arith.constant 0 : index
      %115 = arith.index_cast %114 : i32 to index
      %c2_140 = arith.constant 2 : index
      %c0_141 = arith.constant 0 : index
      %116 = vector.load %arg10[%c0_139, %115, %c2_140, %c0_141] : memref<1x20x20x64xf32, #tpu.memory_space<vmem>>, vector<1x8x16x64xf32>
      %117 = vector.extract_strided_slice %45 {offsets = [2, 1, 0], sizes = [1, 1, 64], strides = [1, 1, 1]} : vector<3x3x64xf32> to vector<1x1x64xf32>
      %118 = vector.shape_cast %117 : vector<1x1x64xf32> to vector<64xf32>
      %119 = vector.shape_cast %118 : vector<64xf32> to vector<1x1x1x64xf32>
      %120 = vector.broadcast %119 : vector<1x1x1x64xf32> to vector<1x8x16x64xf32>
      %121 = arith.mulf %116, %120 : vector<1x8x16x64xf32>
      %122 = arith.addf %113, %121 : vector<1x8x16x64xf32>
      %c4_i32_142 = arith.constant 4 : i32
      %123 = arith.addi %52, %c4_i32_142 : i32
      %c0_143 = arith.constant 0 : index
      %124 = arith.index_cast %123 : i32 to index
      %c4_144 = arith.constant 4 : index
      %c0_145 = arith.constant 0 : index
      %125 = vector.load %arg10[%c0_143, %124, %c4_144, %c0_145] : memref<1x20x20x64xf32, #tpu.memory_space<vmem>>, vector<1x8x16x64xf32>
      %126 = vector.extract_strided_slice %45 {offsets = [2, 2, 0], sizes = [1, 1, 64], strides = [1, 1, 1]} : vector<3x3x64xf32> to vector<1x1x64xf32>
      %127 = vector.shape_cast %126 : vector<1x1x64xf32> to vector<64xf32>
      %128 = vector.shape_cast %127 : vector<64xf32> to vector<1x1x1x64xf32>
      %129 = vector.broadcast %128 : vector<1x1x1x64xf32> to vector<1x8x16x64xf32>
      %130 = arith.mulf %125, %129 : vector<1x8x16x64xf32>
      %131 = arith.addf %122, %130 : vector<1x8x16x64xf32>
      %132 = vector.shape_cast %131 : vector<1x8x16x64xf32> to vector<128x64xf32>
      %133 = arith.truncf %132 : vector<128x64xf32> to vector<128x64xbf16>
      %cst_146 = arith.constant dense<0.000000e+00> : vector<128x64xf32>
      %134 = tpu.matmul %133, %47, %cst_146 {dimension_numbers = #tpu.dot_dimension_numbers<[1], [0], [0], [1], [0, 0, 1, 1], [], []>} : vector<128x64xbf16>, vector<64x64xbf16>, vector<128x64xf32> -> vector<128x64xf32>
      %135 = vector.broadcast %49 : vector<1x64xf32> to vector<128x64xf32>
      %136 = arith.addf %134, %135 : vector<128x64xf32>
      %137 = vector.shape_cast %136 : vector<128x64xf32> to vector<1x8x16x64xf32>
      %c0_147 = arith.constant 0 : index
      %138 = arith.index_cast %52 : i32 to index
      %c0_148 = arith.constant 0 : index
      %c0_149 = arith.constant 0 : index
      %139 = vector.load %arg8[%c0_147, %138, %c0_148, %c0_149] : memref<1x16x16x64xf32, #tpu.memory_space<vmem>>, vector<1x8x16x64xf32>
      tpu.vector_store %arg8[%c0_147, %138, %c0_148, %c0_149], %137 {strides = array<i32>} : memref<1x16x16x64xf32, #tpu.memory_space<vmem>>, vector<1x8x16x64xf32>,
    }
    %c2_i32_112 = arith.constant 2 : i32
    return
  }
  func.func @transform_0(%arg0: i32) -> (i32, i32, i32, i32) {
    %c0_i32 = arith.constant 0 : i32
    %c0_i32_0 = arith.constant 0 : i32
    %c0_i32_1 = arith.constant 0 : i32
    %c0_i32_2 = arith.constant 0 : i32
    return %arg0, %c0_i32, %c0_i32_0, %c0_i32_1 : i32, i32, i32, i32
  }
  func.func @transform_1(%arg0: i32) -> (i32, i32, i32) {
    %c0_i32 = arith.constant 0 : i32
    %c0_i32_0 = arith.constant 0 : i32
    %c0_i32_1 = arith.constant 0 : i32
    %c0_i32_2 = arith.constant 0 : i32
    return %c0_i32, %c0_i32_0, %c0_i32_1 : i32, i32, i32
  }
  func.func @transform_2(%arg0: i32) -> (i32, i32) {
    %c0_i32 = arith.constant 0 : i32
    %c0_i32_0 = arith.constant 0 : i32
    %c0_i32_1 = arith.constant 0 : i32
    return %c0_i32, %c0_i32_0 : i32, i32
  }
  func.func @transform_3(%arg0: i32) -> (i32, i32) {
    %c0_i32 = arith.constant 0 : i32
    %c0_i32_0 = arith.constant 0 : i32
    %c0_i32_1 = arith.constant 0 : i32
    return %c0_i32, %c0_i32_0 : i32, i32
  }
  func.func @transform_4(%arg0: i32) -> (i32, i32, i32, i32) {
    %c0_i32 = arith.constant 0 : i32
    %c0_i32_0 = arith.constant 0 : i32
    %c0_i32_1 = arith.constant 0 : i32
    %c0_i32_2 = arith.constant 0 : i32
    %c0_i32_3 = arith.constant 0 : i32
    return %c0_i32, %c0_i32_0, %c0_i32_1, %c0_i32_2 : i32, i32, i32, i32
  }
  func.func @transform_5(%arg0: i32) -> (i32, i32, i32) {
    %c0_i32 = arith.constant 0 : i32
    %c0_i32_0 = arith.constant 0 : i32
    %c0_i32_1 = arith.constant 0 : i32
    %c0_i32_2 = arith.constant 0 : i32
    return %c0_i32, %c0_i32_0, %c0_i32_1 : i32, i32, i32
  }
  func.func @transform_6(%arg0: i32) -> (i32, i32, i32) {
    %c0_i32 = arith.constant 0 : i32
    %c0_i32_0 = arith.constant 0 : i32
    %c0_i32_1 = arith.constant 0 : i32
    %c0_i32_2 = arith.constant 0 : i32
    return %c0_i32, %c0_i32_0, %c0_i32_1 : i32, i32, i32
  }
  func.func @transform_7(%arg0: i32) -> (i32, i32, i32, i32) {
    %c0_i32 = arith.constant 0 : i32
    %c0_i32_0 = arith.constant 0 : i32
    %c0_i32_1 = arith.constant 0 : i32
    %c0_i32_2 = arith.constant 0 : i32
    return %arg0, %c0_i32, %c0_i32_0, %c0_i32_1 : i32, i32, i32, i32
  }
}

</mosaic_0001>

<bundles_post_ra>
// kernel: tpu_custom_call.1
= control target key start
LH: loop header
LB: loop body
LE: loop exit
PB: predicated region body
PF: predicated region fallthrough
CT: control target
= control target key end

     0   :  { %12 = vsyncpa [#allocation6], 0  ;;  %s7159_s0 = inlined_call_operand.vmem [shape: f32[2,16,16,4], index: 0, kind: input, shape index: {}]   ;;  %s7160_s1 = inlined_call_operand.vmem [shape: f32[3,3,4], index: 1, kind: input, shape index: {}]   ;;  %s7161_s2 = inlined_call_operand.vmem [shape: bf16[4,64], index: 2, kind: input, shape index: {}]   ;;  %s7162_s3 = inlined_call_operand.vmem [shape: f32[1,64], index: 3, kind: input, shape index: {}]   ;;  %s7163_s4 = inlined_call_operand.vmem [shape: f32[3,3,3,64], index: 4, kind: input, shape index: {}]   ;;  %s7164_s5 = inlined_call_operand.vmem [shape: bf16[3,64,64], index: 5, kind: input, shape index: {}]   ;;  %s7165_s6 = inlined_call_operand.vmem [shape: f32[3,1,64], index: 6, kind: input, shape index: {}]   ;;  %s7166_s7 = inlined_call_operand.hbm [shape: f32[2,16,16,64], index: 7, kind: output, shape index: {}]  }
   0x1   :  { %14 = vsyncpa [#allocation6 + $0x1], 0  ;;  %s4305_s24 = smov 0   ;;  %s4307_s25 = smov 0  }
   0x2   :  { %s4309_s26 = smov 0   ;;  %s4311_s27 = smov 0  }
   0x3 LB: > { %s4326_s28 = sadd.s32 4294967295, %s4243_s27   ;;  %s3380_s29 = sadd.s32 4294967294, %s4243_s27   ;;  %s4243_s27 = sphi %s4311_s27, %s7501_s27   ;;  %s4239_s26 = sphi %s4309_s26, %s7500_s26   ;;  %s4235_s25 = sphi %s4307_s25, %s7499_s25   ;;  %s4231_s24 = sphi %s4305_s24, %s7498_s24  }
   0x4   : > { %s4330_s30 = sadd.s32 1, %s4243_s27   ;;  %s179_s8 = sadd.s32 1, %s4239_s26 }
   0x5   : > { %s176_s9 = ssub.s32 %s4243_s27, %s4330_s30  ;;  %p189_p0 = scmp.ne.s32.totalorder %s4239_s26, %s4235_s25 }
   0x6   : > { %p177_p1 = scmp.eq.s32.totalorder %s176_s9, 0  ;;  %p190_p2 = scmp.eq.s32.totalorder %s4326_s28, 1 }
   0x7   : > { %p195_p3 = scmp.ne.s32.totalorder %s4235_s25, %s4231_s24  ;;  %p196_p4 = scmp.eq.s32.totalorder %s3380_s29, 1 }
   0x8   : > { %s4341_s10 = scalar_select %p177_p1, %s4239_s26, %s179_s8  }
   0x9   : > { %p4343_p5 = por %p190_p2, %p189_p0  ;;  %p4347_p6 = por %p196_p4, %p195_p3 }
   0xa   : > { %p3383_p7 = scmp.ge.s32.totalorder %s4243_s27, 1  ;;  %p240_p8 = scmp.lt.s32.totalorder %s4243_s27, 3 }
   0xc   : > { %p241_p9 = pnand %p3383_p7, %p240_p8 }
   0xe   : > { %244 = sbr.rel (%p241_p9) target bundleno = 1290 (0x50a), region = 48 }
  0x13   : > { %s269_s13 = sand.u32 1, %s4235_s25   ;;  %vm278_vm0 = vcmask 31744   ;;  %v4357_v0 = vld [vmem:[%s7160_s1] sm:$0x7]  ;;  %vm281_vm1 = vcmask 27648   ;;  %v4261_v1 = vmov 0.0  }
  0x14   : > { %7280 = vst [vmem:[#allocation8_spill] sm:$0xff] %v4357_v0  ;;  %s4361_s16 = sshll.u32 %s269_s13, 8  ;;  %279 = vst.msk [vmem:[#allocation2] sm:$0xff] %vm278_vm0, %v4261_v1  ;;  %v4382_v2 = vld [vmem:[%s7160_s1 + $0x4] sm:$0x7]  ;;  %vm294_vm2 = vcmask 25600  }
  0x15   : > { %280 = vst.msk [vmem:[#allocation2 + $0x8] sm:$0xff] %vm278_vm0, %v4261_v1  ;;  %283 = vst.msk [vmem:[#allocation2 + $0x18] sm:$0xff] %vm278_vm0, %v4261_v1  ;;  %v4387_v3 = vld [vmem:[%s7160_s1 + $0x8] sm:$0x7]  ;;  %v4400_v4 = vld [vmem:[%s7161_s2] sm:$0x3] }
  0x16   : > { %284 = vst.msk [vmem:[#allocation2 + $0x20] sm:$0xff] %vm278_vm0, %v4261_v1  ;;  %287 = vst.msk [vmem:[#allocation2 + $0x1b0] sm:$0xff] %vm278_vm0, %v4261_v1  ;;  %v4405_v5 = vld [vmem:[%s7162_s3] ss:$0 sm:$0xff]  ;;  %vm327_vm3 = vcmask 523264   ;;  %vm330_vm4 = vcmask 519168  }
  0x17   : > { %288 = vst.msk [vmem:[#allocation2 + $0x1b8] sm:$0xff] %vm278_vm0, %v4261_v1  ;;  %290 = vst.msk [vmem:[#allocation2 + $0x1c8] sm:$0xff] %vm278_vm0, %v4261_v1  ;;  %vm343_vm5 = vcmask 517120   ;;  %p272_p10 = scmp.lt.s32.totalorder %s4326_s28, 1  ;;  %s271_s18 = scalar_lea.vmem [#allocation5], %s4361_s16 }
  0x18   : > { %291 = vst.msk [vmem:[#allocation2 + $0x1d0] sm:$0xff] %vm278_vm0, %v4261_v1  ;;  %7281 = vst [vmem:[#allocation9_spill] sm:$0xff] %v4382_v2  ;;  %s4713_s19 = smov 0  }
  0x19   : > { %7282 = vst [vmem:[#allocation10_spill] sm:$0xff] %v4387_v3  ;;  %282 = vst.msk [vmem:[#allocation2 + $0x10] sm:$0xf] %vm281_vm1, %v4261_v1  ;;  %s273_s8 = scalar_select %p272_p10, %s4326_s28, 1 }
  0x1a   : > { %285 = vst.msk [vmem:[#allocation2 + $0x28] sm:$0xf] %vm281_vm1, %v4261_v1  ;;  %289 = vst.msk [vmem:[#allocation2 + $0x1c0] sm:$0xf] %vm281_vm1, %v4261_v1 }
  0x1b   : > { %292 = vst.msk [vmem:[#allocation2 + $0x1d8] sm:$0xf] %vm281_vm1, %v4261_v1  ;;  %7283 = vst [vmem:[#allocation11_spill] sm:$0xff] %v4400_v4  ;;  %s3927_s9 = sshll.u32 %s273_s8, 8 }
  0x1c   : > { %7284 = vst [vmem:[#allocation12_spill] sm:$0xff] %v4405_v5  ;;  %295 = vst.msk [vmem:[#allocation2 + $0x30] sm:$0x3] %vm294_vm2, %v4261_v1  ;;  %s4646_s17 = scalar_lea.vmem %s7159_s0, %s3927_s9 }
  0x1d   : > { %296 = vst.msk [vmem:[#allocation2 + $0x48] sm:$0x3] %vm294_vm2, %v4261_v1  ;;  %297 = vst.msk [vmem:[#allocation2 + $0x60] sm:$0x3] %vm294_vm2, %v4261_v1  ;;  %v422_v6 = vld [vmem:[%s4646_s17] sm:$0xff]  ;;  %v423_v7 = vld [vmem:[%s4646_s17 + $0x8] sm:$0xff] }
  0x1e   : > { %298 = vst.msk [vmem:[#allocation2 + $0x78] sm:$0x3] %vm294_vm2, %v4261_v1  ;;  %299 = vst.msk [vmem:[#allocation2 + $0x90] sm:$0x3] %vm294_vm2, %v4261_v1  ;;  %v424_v8 = vld [vmem:[%s4646_s17 + $0x10] sm:$0xff]  ;;  %v425_v9 = vld [vmem:[%s4646_s17 + $0x18] sm:$0xff] }
  0x1f   : > { %300 = vst.msk [vmem:[#allocation2 + $0xa8] sm:$0x3] %vm294_vm2, %v4261_v1  ;;  %301 = vst.msk [vmem:[#allocation2 + $0xc0] sm:$0x3] %vm294_vm2, %v4261_v1  ;;  %v426_v10 = vld [vmem:[%s4646_s17 + $0x20] sm:$0xff]  ;;  %v427_v11 = vld [vmem:[%s4646_s17 + $0x28] sm:$0xff] }
  0x20   : > { %302 = vst.msk [vmem:[#allocation2 + $0xd8] sm:$0x3] %vm294_vm2, %v4261_v1  ;;  %303 = vst.msk [vmem:[#allocation2 + $0xf0] sm:$0x3] %vm294_vm2, %v4261_v1  ;;  %v428_v12 = vld [vmem:[%s4646_s17 + $0x30] sm:$0xff]  ;;  %v429_v13 = vld [vmem:[%s4646_s17 + $0x38] sm:$0xff] }
  0x21   : > { %304 = vst.msk [vmem:[#allocation2 + $0x108] sm:$0x3] %vm294_vm2, %v4261_v1  ;;  %305 = vst.msk [vmem:[#allocation2 + $0x120] sm:$0x3] %vm294_vm2, %v4261_v1  ;;  %v430_v14 = vld [vmem:[%s4646_s17 + $0x40] sm:$0xff]  ;;  %v431_v15 = vld [vmem:[%s4646_s17 + $0x48] sm:$0xff] }
  0x22   : > { %306 = vst.msk [vmem:[#allocation2 + $0x138] sm:$0x3] %vm294_vm2, %v4261_v1  ;;  %307 = vst.msk [vmem:[#allocation2 + $0x150] sm:$0x3] %vm294_vm2, %v4261_v1  ;;  %v432_v16 = vld [vmem:[%s4646_s17 + $0x50] sm:$0xff]  ;;  %v433_v17 = vld [vmem:[%s4646_s17 + $0x58] sm:$0xff] }
  0x23   : > { %308 = vst.msk [vmem:[#allocation2 + $0x168] sm:$0x3] %vm294_vm2, %v4261_v1  ;;  %309 = vst.msk [vmem:[#allocation2 + $0x180] sm:$0x3] %vm294_vm2, %v4261_v1  ;;  %v434_v18 = vld [vmem:[%s4646_s17 + $0x60] sm:$0xff]  ;;  %v435_v19 = vld [vmem:[%s4646_s17 + $0x68] sm:$0xff] }
  0x24   : > { %310 = vst.msk [vmem:[#allocation2 + $0x198] sm:$0x3] %vm294_vm2, %v4261_v1  ;;  %311 = vst.msk [vmem:[#allocation2 + $0x42] sm:$0x3] %vm294_vm2, %v4261_v1  ;;  %v436_v20 = vld [vmem:[%s4646_s17 + $0x70] sm:$0xff]  ;;  %v437_v21 = vld [vmem:[%s4646_s17 + $0x78] sm:$0xff] }
  0x25   : > { %312 = vst.msk [vmem:[#allocation2 + $0x5a] sm:$0x3] %vm294_vm2, %v4261_v1  ;;  %313 = vst.msk [vmem:[#allocation2 + $0x72] sm:$0x3] %vm294_vm2, %v4261_v1  ;;  %v438_v22 = vld [vmem:[%s4646_s17 + $0x80] sm:$0xff]  ;;  %v439_v23 = vld [vmem:[%s4646_s17 + $0x88] sm:$0xff] }
  0x26   : > { %314 = vst.msk [vmem:[#allocation2 + $0x8a] sm:$0x3] %vm294_vm2, %v4261_v1  ;;  %315 = vst.msk [vmem:[#allocation2 + $0xa2] sm:$0x3] %vm294_vm2, %v4261_v1  ;;  %v440_v24 = vld [vmem:[%s4646_s17 + $0x90] sm:$0xff]  ;;  %v441_v25 = vld [vmem:[%s4646_s17 + $0x98] sm:$0xff] }
  0x27   : > { %316 = vst.msk [vmem:[#allocation2 + $0xba] sm:$0x3] %vm294_vm2, %v4261_v1  ;;  %317 = vst.msk [vmem:[#allocation2 + $0xd2] sm:$0x3] %vm294_vm2, %v4261_v1  ;;  %v442_v26 = vld [vmem:[%s4646_s17 + $0xa0] sm:$0xff]  ;;  %v443_v27 = vld [vmem:[%s4646_s17 + $0xa8] sm:$0xff] }
  0x28   : > { %318 = vst.msk [vmem:[#allocation2 + $0xea] sm:$0x3] %vm294_vm2, %v4261_v1  ;;  %319 = vst.msk [vmem:[#allocation2 + $0x102] sm:$0x3] %vm294_vm2, %v4261_v1  ;;  %v444_v28 = vld [vmem:[%s4646_s17 + $0xb0] sm:$0xff]  ;;  %v445_v29 = vld [vmem:[%s4646_s17 + $0xb8] sm:$0xff] }
  0x29   : > { %320 = vst.msk [vmem:[#allocation2 + $0x11a] sm:$0x3] %vm294_vm2, %v4261_v1  ;;  %321 = vst.msk [vmem:[#allocation2 + $0x132] sm:$0x3] %vm294_vm2, %v4261_v1  ;;  %v446_v30 = vld [vmem:[%s4646_s17 + $0xc0] sm:$0xff]  ;;  %v447_v31 = vld [vmem:[%s4646_s17 + $0xc8] sm:$0xff] }
  0x2a   : > { %322 = vst.msk [vmem:[#allocation2 + $0x14a] sm:$0x3] %vm294_vm2, %v4261_v1  ;;  %323 = vst.msk [vmem:[#allocation2 + $0x162] sm:$0x3] %vm294_vm2, %v4261_v1  ;;  %v448_v32 = vld [vmem:[%s4646_s17 + $0xd0] sm:$0xff]  ;;  %v449_v33 = vld [vmem:[%s4646_s17 + $0xd8] sm:$0xff] }
  0x2b   : > { %324 = vst.msk [vmem:[#allocation2 + $0x17a] sm:$0x3] %vm294_vm2, %v4261_v1  ;;  %325 = vst.msk [vmem:[#allocation2 + $0x192] sm:$0x3] %vm294_vm2, %v4261_v1  ;;  %v450_v34 = vld [vmem:[%s4646_s17 + $0xe0] sm:$0xff]  ;;  %v451_v35 = vld [vmem:[%s4646_s17 + $0xe8] sm:$0xff] }
  0x2c   : > { %326 = vst.msk [vmem:[#allocation2 + $0x1aa] sm:$0x3] %vm294_vm2, %v4261_v1  ;;  %v452_v36 = vld [vmem:[%s4646_s17 + $0xf0] sm:$0xff]  ;;  %v453_v37 = vld [vmem:[%s4646_s17 + $0xf8] sm:$0xff] }
  0x2d   : > { %328 = vst.msk [vmem:[#allocation3] sm:$0xff] %vm327_vm3, %v4261_v1  ;;  %329 = vst.msk [vmem:[#allocation3 + $0x8] sm:$0xff] %vm327_vm3, %v4261_v1 }
  0x2e   : > { %332 = vst.msk [vmem:[#allocation3 + $0x18] sm:$0xff] %vm327_vm3, %v4261_v1  ;;  %333 = vst.msk [vmem:[#allocation3 + $0x20] sm:$0xff] %vm327_vm3, %v4261_v1 }
  0x2f   : > { %336 = vst.msk [vmem:[#allocation3 + $0x1b0] sm:$0xff] %vm327_vm3, %v4261_v1  ;;  %337 = vst.msk [vmem:[#allocation3 + $0x1b8] sm:$0xff] %vm327_vm3, %v4261_v1 }
  0x30   : > { %339 = vst.msk [vmem:[#allocation3 + $0x1c8] sm:$0xff] %vm327_vm3, %v4261_v1  ;;  %340 = vst.msk [vmem:[#allocation3 + $0x1d0] sm:$0xff] %vm327_vm3, %v4261_v1 }
  0x31   : > { %376 = vst.msk [vmem:[#allocation4] sm:$0xff] %vm327_vm3, %v4261_v1  ;;  %377 = vst.msk [vmem:[#allocation4 + $0x8] sm:$0xff] %vm327_vm3, %v4261_v1 }
  0x32   : > { %379 = vst.msk [vmem:[#allocation4 + $0x18] sm:$0xff] %vm327_vm3, %v4261_v1  ;;  %380 = vst.msk [vmem:[#allocation4 + $0x20] sm:$0xff] %vm327_vm3, %v4261_v1 }
  0x33   : > { %383 = vst.msk [vmem:[#allocation4 + $0x1b0] sm:$0xff] %vm327_vm3, %v4261_v1  ;;  %384 = vst.msk [vmem:[#allocation4 + $0x1b8] sm:$0xff] %vm327_vm3, %v4261_v1 }
  0x34   : > { %386 = vst.msk [vmem:[#allocation4 + $0x1c8] sm:$0xff] %vm327_vm3, %v4261_v1  ;;  %387 = vst.msk [vmem:[#allocation4 + $0x1d0] sm:$0xff] %vm327_vm3, %v4261_v1 }
  0x35   : > { %331 = vst.msk [vmem:[#allocation3 + $0x10] sm:$0xf] %vm330_vm4, %v4261_v1  ;;  %334 = vst.msk [vmem:[#allocation3 + $0x28] sm:$0xf] %vm330_vm4, %v4261_v1 }
  0x36   : > { %338 = vst.msk [vmem:[#allocation3 + $0x1c0] sm:$0xf] %vm330_vm4, %v4261_v1  ;;  %341 = vst.msk [vmem:[#allocation3 + $0x1d8] sm:$0xf] %vm330_vm4, %v4261_v1 }
  0x37   : > { %378 = vst.msk [vmem:[#allocation4 + $0x10] sm:$0xf] %vm330_vm4, %v4261_v1  ;;  %381 = vst.msk [vmem:[#allocation4 + $0x28] sm:$0xf] %vm330_vm4, %v4261_v1 }
  0x38   : > { %385 = vst.msk [vmem:[#allocation4 + $0x1c0] sm:$0xf] %vm330_vm4, %v4261_v1  ;;  %388 = vst.msk [vmem:[#allocation4 + $0x1d8] sm:$0xf] %vm330_vm4, %v4261_v1 }
  0x39   : > { %344 = vst.msk [vmem:[#allocation3 + $0x30] sm:$0x3] %vm343_vm5, %v4261_v1  ;;  %345 = vst.msk [vmem:[#allocation3 + $0x48] sm:$0x3] %vm343_vm5, %v4261_v1 }
  0x3a   : > { %346 = vst.msk [vmem:[#allocation3 + $0x60] sm:$0x3] %vm343_vm5, %v4261_v1  ;;  %347 = vst.msk [vmem:[#allocation3 + $0x78] sm:$0x3] %vm343_vm5, %v4261_v1 }
  0x3b   : > { %348 = vst.msk [vmem:[#allocation3 + $0x90] sm:$0x3] %vm343_vm5, %v4261_v1  ;;  %349 = vst.msk [vmem:[#allocation3 + $0xa8] sm:$0x3] %vm343_vm5, %v4261_v1 }
  0x3c   : > { %350 = vst.msk [vmem:[#allocation3 + $0xc0] sm:$0x3] %vm343_vm5, %v4261_v1  ;;  %351 = vst.msk [vmem:[#allocation3 + $0xd8] sm:$0x3] %vm343_vm5, %v4261_v1 }
  0x3d   : > { %352 = vst.msk [vmem:[#allocation3 + $0xf0] sm:$0x3] %vm343_vm5, %v4261_v1  ;;  %353 = vst.msk [vmem:[#allocation3 + $0x108] sm:$0x3] %vm343_vm5, %v4261_v1 }
  0x3e   : > { %354 = vst.msk [vmem:[#allocation3 + $0x120] sm:$0x3] %vm343_vm5, %v4261_v1  ;;  %355 = vst.msk [vmem:[#allocation3 + $0x138] sm:$0x3] %vm343_vm5, %v4261_v1 }
  0x3f   : > { %356 = vst.msk [vmem:[#allocation3 + $0x150] sm:$0x3] %vm343_vm5, %v4261_v1  ;;  %357 = vst.msk [vmem:[#allocation3 + $0x168] sm:$0x3] %vm343_vm5, %v4261_v1 }
  0x40   : > { %358 = vst.msk [vmem:[#allocation3 + $0x180] sm:$0x3] %vm343_vm5, %v4261_v1  ;;  %359 = vst.msk [vmem:[#allocation3 + $0x198] sm:$0x3] %vm343_vm5, %v4261_v1 }
  0x41   : > { %360 = vst.msk [vmem:[#allocation3 + $0x42] sm:$0x3] %vm343_vm5, %v4261_v1  ;;  %361 = vst.msk [vmem:[#allocation3 + $0x5a] sm:$0x3] %vm343_vm5, %v4261_v1 }
  0x42   : > { %362 = vst.msk [vmem:[#allocation3 + $0x72] sm:$0x3] %vm343_vm5, %v4261_v1  ;;  %363 = vst.msk [vmem:[#allocation3 + $0x8a] sm:$0x3] %vm343_vm5, %v4261_v1 }
  0x43   : > { %364 = vst.msk [vmem:[#allocation3 + $0xa2] sm:$0x3] %vm343_vm5, %v4261_v1  ;;  %365 = vst.msk [vmem:[#allocation3 + $0xba] sm:$0x3] %vm343_vm5, %v4261_v1 }
  0x44   : > { %366 = vst.msk [vmem:[#allocation3 + $0xd2] sm:$0x3] %vm343_vm5, %v4261_v1  ;;  %367 = vst.msk [vmem:[#allocation3 + $0xea] sm:$0x3] %vm343_vm5, %v4261_v1 }
  0x45   : > { %368 = vst.msk [vmem:[#allocation3 + $0x102] sm:$0x3] %vm343_vm5, %v4261_v1  ;;  %369 = vst.msk [vmem:[#allocation3 + $0x11a] sm:$0x3] %vm343_vm5, %v4261_v1 }
  0x46   : > { %370 = vst.msk [vmem:[#allocation3 + $0x132] sm:$0x3] %vm343_vm5, %v4261_v1  ;;  %371 = vst.msk [vmem:[#allocation3 + $0x14a] sm:$0x3] %vm343_vm5, %v4261_v1 }
  0x47   : > { %372 = vst.msk [vmem:[#allocation3 + $0x162] sm:$0x3] %vm343_vm5, %v4261_v1  ;;  %373 = vst.msk [vmem:[#allocation3 + $0x17a] sm:$0x3] %vm343_vm5, %v4261_v1 }
  0x48   : > { %374 = vst.msk [vmem:[#allocation3 + $0x192] sm:$0x3] %vm343_vm5, %v4261_v1  ;;  %375 = vst.msk [vmem:[#allocation3 + $0x1aa] sm:$0x3] %vm343_vm5, %v4261_v1 }
  0x49   : > { %390 = vst.msk [vmem:[#allocation4 + $0x30] sm:$0x3] %vm343_vm5, %v4261_v1  ;;  %391 = vst.msk [vmem:[#allocation4 + $0x48] sm:$0x3] %vm343_vm5, %v4261_v1 }
  0x4a   : > { %392 = vst.msk [vmem:[#allocation4 + $0x60] sm:$0x3] %vm343_vm5, %v4261_v1  ;;  %393 = vst.msk [vmem:[#allocation4 + $0x78] sm:$0x3] %vm343_vm5, %v4261_v1 }
  0x4b   : > { %394 = vst.msk [vmem:[#allocation4 + $0x90] sm:$0x3] %vm343_vm5, %v4261_v1  ;;  %395 = vst.msk [vmem:[#allocation4 + $0xa8] sm:$0x3] %vm343_vm5, %v4261_v1 }
  0x4c   : > { %396 = vst.msk [vmem:[#allocation4 + $0xc0] sm:$0x3] %vm343_vm5, %v4261_v1  ;;  %397 = vst.msk [vmem:[#allocation4 + $0xd8] sm:$0x3] %vm343_vm5, %v4261_v1 }
  0x4d   : > { %398 = vst.msk [vmem:[#allocation4 + $0xf0] sm:$0x3] %vm343_vm5, %v4261_v1  ;;  %399 = vst.msk [vmem:[#allocation4 + $0x108] sm:$0x3] %vm343_vm5, %v4261_v1 }
  0x4e   : > { %400 = vst.msk [vmem:[#allocation4 + $0x120] sm:$0x3] %vm343_vm5, %v4261_v1  ;;  %401 = vst.msk [vmem:[#allocation4 + $0x138] sm:$0x3] %vm343_vm5, %v4261_v1 }
  0x4f   : > { %402 = vst.msk [vmem:[#allocation4 + $0x150] sm:$0x3] %vm343_vm5, %v4261_v1  ;;  %403 = vst.msk [vmem:[#allocation4 + $0x168] sm:$0x3] %vm343_vm5, %v4261_v1 }
  0x50   : > { %404 = vst.msk [vmem:[#allocation4 + $0x180] sm:$0x3] %vm343_vm5, %v4261_v1  ;;  %405 = vst.msk [vmem:[#allocation4 + $0x198] sm:$0x3] %vm343_vm5, %v4261_v1 }
  0x51   : > { %406 = vst.msk [vmem:[#allocation4 + $0x42] sm:$0x3] %vm343_vm5, %v4261_v1  ;;  %407 = vst.msk [vmem:[#allocation4 + $0x5a] sm:$0x3] %vm343_vm5, %v4261_v1 }
  0x52   : > { %408 = vst.msk [vmem:[#allocation4 + $0x72] sm:$0x3] %vm343_vm5, %v4261_v1  ;;  %409 = vst.msk [vmem:[#allocation4 + $0x8a] sm:$0x3] %vm343_vm5, %v4261_v1 }
  0x53   : > { %410 = vst.msk [vmem:[#allocation4 + $0xa2] sm:$0x3] %vm343_vm5, %v4261_v1  ;;  %411 = vst.msk [vmem:[#allocation4 + $0xba] sm:$0x3] %vm343_vm5, %v4261_v1 }
  0x54   : > { %412 = vst.msk [vmem:[#allocation4 + $0xd2] sm:$0x3] %vm343_vm5, %v4261_v1  ;;  %413 = vst.msk [vmem:[#allocation4 + $0xea] sm:$0x3] %vm343_vm5, %v4261_v1 }
  0x55   : > { %414 = vst.msk [vmem:[#allocation4 + $0x102] sm:$0x3] %vm343_vm5, %v4261_v1  ;;  %415 = vst.msk [vmem:[#allocation4 + $0x11a] sm:$0x3] %vm343_vm5, %v4261_v1 }
  0x56   : > { %416 = vst.msk [vmem:[#allocation4 + $0x132] sm:$0x3] %vm343_vm5, %v4261_v1  ;;  %417 = vst.msk [vmem:[#allocation4 + $0x14a] sm:$0x3] %vm343_vm5, %v4261_v1 }
  0x57   : > { %418 = vst.msk [vmem:[#allocation4 + $0x162] sm:$0x3] %vm343_vm5, %v4261_v1  ;;  %419 = vst.msk [vmem:[#allocation4 + $0x17a] sm:$0x3] %vm343_vm5, %v4261_v1 }
  0x58   : > { %420 = vst.msk [vmem:[#allocation4 + $0x192] sm:$0x3] %vm343_vm5, %v4261_v1  ;;  %421 = vst.msk [vmem:[#allocation4 + $0x1aa] sm:$0x3] %vm343_vm5, %v4261_v1 }
  0x59   : > { %454 = vst.msk [vmem:[#allocation2 + $0x32] sm:$0xff] %vm278_vm0, %v422_v6  ;;  %455 = vst.msk [vmem:[#allocation2 + $0x3a] sm:$0xff] %vm278_vm0, %v423_v7 }
  0x5a   : > { %456 = vst.msk [vmem:[#allocation2 + $0x4a] sm:$0xff] %vm278_vm0, %v424_v8  ;;  %457 = vst.msk [vmem:[#allocation2 + $0x52] sm:$0xff] %vm278_vm0, %v425_v9 }
  0x5b   : > { %458 = vst.msk [vmem:[#allocation2 + $0x62] sm:$0xff] %vm278_vm0, %v426_v10  ;;  %459 = vst.msk [vmem:[#allocation2 + $0x6a] sm:$0xff] %vm278_vm0, %v427_v11 }
  0x5c   : > { %460 = vst.msk [vmem:[#allocation2 + $0x7a] sm:$0xff] %vm278_vm0, %v428_v12  ;;  %461 = vst.msk [vmem:[#allocation2 + $0x82] sm:$0xff] %vm278_vm0, %v429_v13 }
  0x5d   : > { %462 = vst.msk [vmem:[#allocation2 + $0x92] sm:$0xff] %vm278_vm0, %v430_v14  ;;  %463 = vst.msk [vmem:[#allocation2 + $0x9a] sm:$0xff] %vm278_vm0, %v431_v15 }
  0x5e   : > { %464 = vst.msk [vmem:[#allocation2 + $0xaa] sm:$0xff] %vm278_vm0, %v432_v16  ;;  %465 = vst.msk [vmem:[#allocation2 + $0xb2] sm:$0xff] %vm278_vm0, %v433_v17 }
  0x5f   : > { %466 = vst.msk [vmem:[#allocation2 + $0xc2] sm:$0xff] %vm278_vm0, %v434_v18  ;;  %467 = vst.msk [vmem:[#allocation2 + $0xca] sm:$0xff] %vm278_vm0, %v435_v19 }
  0x60   : > { %468 = vst.msk [vmem:[#allocation2 + $0xda] sm:$0xff] %vm278_vm0, %v436_v20  ;;  %469 = vst.msk [vmem:[#allocation2 + $0xe2] sm:$0xff] %vm278_vm0, %v437_v21 }
  0x61   : > { %470 = vst.msk [vmem:[#allocation2 + $0xf2] sm:$0xff] %vm278_vm0, %v438_v22  ;;  %471 = vst.msk [vmem:[#allocation2 + $0xfa] sm:$0xff] %vm278_vm0, %v439_v23 }
  0x62   : > { %472 = vst.msk [vmem:[#allocation2 + $0x10a] sm:$0xff] %vm278_vm0, %v440_v24  ;;  %473 = vst.msk [vmem:[#allocation2 + $0x112] sm:$0xff] %vm278_vm0, %v441_v25 }
  0x63   : > { %474 = vst.msk [vmem:[#allocation2 + $0x122] sm:$0xff] %vm278_vm0, %v442_v26  ;;  %475 = vst.msk [vmem:[#allocation2 + $0x12a] sm:$0xff] %vm278_vm0, %v443_v27 }
  0x64   : > { %476 = vst.msk [vmem:[#allocation2 + $0x13a] sm:$0xff] %vm278_vm0, %v444_v28  ;;  %477 = vst.msk [vmem:[#allocation2 + $0x142] sm:$0xff] %vm278_vm0, %v445_v29 }
  0x65   : > { %478 = vst.msk [vmem:[#allocation2 + $0x152] sm:$0xff] %vm278_vm0, %v446_v30  ;;  %479 = vst.msk [vmem:[#allocation2 + $0x15a] sm:$0xff] %vm278_vm0, %v447_v31 }
  0x66   : > { %480 = vst.msk [vmem:[#allocation2 + $0x16a] sm:$0xff] %vm278_vm0, %v448_v32  ;;  %481 = vst.msk [vmem:[#allocation2 + $0x172] sm:$0xff] %vm278_vm0, %v449_v33 }
  0x67   : > { %482 = vst.msk [vmem:[#allocation2 + $0x182] sm:$0xff] %vm278_vm0, %v450_v34  ;;  %483 = vst.msk [vmem:[#allocation2 + $0x18a] sm:$0xff] %vm278_vm0, %v451_v35 }
  0x68   : > { %484 = vst.msk [vmem:[#allocation2 + $0x19a] sm:$0xff] %vm278_vm0, %v452_v36  ;;  %485 = vst.msk [vmem:[#allocation2 + $0x1a2] sm:$0xff] %vm278_vm0, %v453_v37 }
  0x69 LB: >> { %v7285_v4 = vld [vmem:[#allocation11_spill] sm:$0xff]  ;;  %v7286_v3 = vld [vmem:[#allocation10_spill] sm:$0xff]  ;;  %v7287_v2 = vld [vmem:[#allocation9_spill] sm:$0xff]  ;;  %vm996_vm6 = vcmask 1041408   ;;  %v516_v38 = vlaneseq  ;;  %s3388_s20 = smul.u32 192, %s4247_s19  ;;  %s496_s19 = sadd.s32 1, %s4247_s19   ;;  %s4247_s19 = sphi %s4713_s19, %s496_s19  }
  0x6a   : >> { %v7288_v0 = vld [vmem:[#allocation8_spill] sm:$0xff]  ;;  %4091 = vmatprep.subr.msk.bf16.mxu0 %vm996_vm6, %v7285_v4  ;;  %4092 = vmatprep.subr.msk.bf16.mxu1 %vm996_vm6, %v7285_v4  ;;  %v998_v39 = vsel %vm996_vm6, %v7285_v4, 0  ;;  %p493_p11 = scmp.ge.s32.totalorder %s496_s19, 2  }
  0x6b   : >> { %3976 = vmatpush3.bf16.msra.mxu0 %v998_v39  ;;  %4066 = vmatpush3.bf16.msra.mxu1 %v998_v39  ;;  %v517_v40 = vshrl.u32 %v516_v38, 7  ;;  %s4730_s21 = scalar_lea.vmem [#allocation2], %s3388_s20  ;;  %s5213_s22 = scalar_lea.vmem [#allocation3], %s3388_s20 }
  0x6c   : > { %s5323_s8 = smov (%p493_p11), 0  }
  0x6d   : >> { %v4722_v41 = vsub.s32 0, %v517_v40  ;;  %v4724_v42 = vsub.s32 1, %v517_v40  ;;  %v4726_v43 = vsub.s32 2, %v517_v40 }
  0x6f   : >> { %7289 = vst [vmem:[#allocation13_spill] sm:$0xff] %v4722_v41  ;;  %7290 = vst [vmem:[#allocation14_spill] sm:$0xff] %v4724_v42  ;;  %v500_v44 = vld [vmem:[%s4730_s21] sm:$0xff]  ;;  %v501_v45 = vld [vmem:[%s4730_s21 + $0x8] sm:$0xff]  ;;  %v4737_v47 = vrot.slane %v7288_v0, %v4722_v41  ;;  %v4742_v49 = vrot.slane %v7288_v0, %v4724_v42  ;;  %v4748_v52 = vrot.slane %v7288_v0, %v4726_v43 }
  0x70   : >> { %7291 = vst [vmem:[#allocation15_spill] sm:$0xff] %v4726_v43  ;;  %v536_v46 = vld [vmem:[%s4730_s21 + $0x2] sm:$0xff]  ;;  %v537_v48 = vld [vmem:[%s4730_s21 + $0xa] sm:$0xff]  ;;  %v4752_v53 = vrot.slane %v7287_v2, %v4722_v41  ;;  %v4758_v55 = vld [vmem:[%s4730_s21 + $0x38] sm:$0xff]  ;;  %v4765_v57 = vrot.slane %v7287_v2, %v4724_v42  ;;  %v4769_v58 = vrot.slane %v7287_v2, %v4726_v43  ;;  %v4773_v59 = vrot.slane %v7286_v3, %v4722_v41 }
  0x71   : >> { %v588_v50 = vld [vmem:[%s4730_s21 + $0x4] sm:$0xff]  ;;  %v589_v51 = vld [vmem:[%s4730_s21 + $0xc] sm:$0xff]  ;;  %v4777_v60 = vrot.slane %v7286_v3, %v4724_v42  ;;  %v520_v61 = vmul.f32 %v4737_v47, %v500_v44  ;;  %v521_v62 = vmul.f32 %v4737_v47, %v501_v45  ;;  %v556_v63 = vmul.f32 %v4742_v49, %v536_v46  ;;  %v4784_v6 = vld [vmem:[%s4730_s21 + $0x3a] sm:$0xff] }
  0x72   : >> { %v4755_v54 = vld [vmem:[%s4730_s21 + $0x30] sm:$0xff]  ;;  %v557_v1 = vmul.f32 %v4742_v49, %v537_v48  ;;  %v4790_v8 = vld [vmem:[%s4730_s21 + $0x3c] sm:$0xff]  ;;  %v608_v9 = vmul.f32 %v4748_v52, %v588_v50  ;;  %v609_v10 = vmul.f32 %v4748_v52, %v589_v51  ;;  %v664_v12 = vmul.f32 %v4758_v55, %v4752_v53  ;;  %v4806_v18 = vld [vmem:[%s4730_s21 + $0x68] sm:$0xff] }
  0x73   : >> { %v4761_v56 = vld [vmem:[%s4730_s21 + $0x32] sm:$0xff]  ;;  %v663_v11 = vmul.f32 %v4755_v54, %v4752_v53  ;;  %v572_v13 = vadd.f32 %v556_v63, %v520_v61  ;;  %v716_v16 = vmul.f32 %v4784_v6, %v4765_v57  ;;  %v4803_v17 = vld [vmem:[%s4730_s21 + $0x60] sm:$0xff]  ;;  %v768_v21 = vmul.f32 %v4790_v8, %v4769_v58  ;;  %v4820_v24 = vld [vmem:[%s4730_s21 + $0x6a] sm:$0xff] }
  0x74   : >> { %v4787_v7 = vld [vmem:[%s4730_s21 + $0x34] sm:$0xff]  ;;  %v573_v14 = vadd.f32 %v557_v1, %v521_v62  ;;  %v715_v15 = vmul.f32 %v4761_v56, %v4765_v57  ;;  %v4809_v19 = vld [vmem:[%s4730_s21 + $0x62] sm:$0xff]  ;;  %v822_v22 = vmul.f32 %v4803_v17, %v4773_v59  ;;  %v823_v23 = vmul.f32 %v4806_v18, %v4773_v59  ;;  %v4830_v30 = vld [vmem:[%s4730_s21 + $0x6c] sm:$0xff] }
  0x75   : >> { %v767_v20 = vmul.f32 %v4787_v7, %v4769_v58  ;;  %v4823_v25 = vld [vmem:[%s4730_s21 + $0x64] sm:$0xff]  ;;  %v624_v26 = vadd.f32 %v608_v9, %v572_v13  ;;  %v874_v28 = vmul.f32 %v4809_v19, %v4777_v60  ;;  %v875_v29 = vmul.f32 %v4820_v24, %v4777_v60  ;;  %v4843_v35 = vld [vmem:[%s4730_s21 + $0x90] sm:$0xff]  ;;  %v4850_v40 = vld [vmem:[%s4730_s21 + $0x98] sm:$0xff] }
  0x76   : >> { %v625_v27 = vadd.f32 %v609_v10, %v573_v14  ;;  %v4834_v31 = vrot.slane %v7286_v3, %v4726_v43  ;;  %v528_v32 = vmul.f32 %v4803_v17, %v4737_v47  ;;  %v529_v33 = vmul.f32 %v4806_v18, %v4737_v47  ;;  %v4853_v44 = vld [vmem:[%s4730_s21 + $0x92] sm:$0xff]  ;;  %v4856_v45 = vld [vmem:[%s4730_s21 + $0x9a] sm:$0xff]  ;;  %v591_v42 = vld [vmem:[%s4730_s21 + $0x24] sm:$0xff] }
  0x77   : >> { %v564_v34 = vmul.f32 %v4809_v19, %v4742_v49  ;;  %v679_v36 = vadd.f32 %v663_v11, %v624_v26  ;;  %v565_v38 = vmul.f32 %v4820_v24, %v4742_v49  ;;  %v616_v39 = vmul.f32 %v4823_v25, %v4748_v52  ;;  %v4865_v61 = vld [vmem:[%s4730_s21 + $0x94] sm:$0xff]  ;;  %v4870_v10 = vld [vmem:[%s4730_s21 + $0x9c] sm:$0xff] }
  0x78   : >> { %v680_v37 = vadd.f32 %v664_v12, %v625_v27  ;;  %v926_v46 = vmul.f32 %v4823_v25, %v4834_v31  ;;  %v927_v48 = vmul.f32 %v4830_v30, %v4834_v31  ;;  %v617_v51 = vmul.f32 %v4830_v30, %v4748_v52  ;;  %v4873_v11 = vld [vmem:[%s4730_s21 + $0xc0] sm:$0xff]  ;;  %v4876_v12 = vld [vmem:[%s4730_s21 + $0xc8] sm:$0xff] }
  0x79   : >> { %v580_v50 = vadd.f32 %v564_v34, %v528_v32  ;;  %v731_v62 = vadd.f32 %v715_v15, %v679_v36  ;;  %v581_v1 = vadd.f32 %v565_v38, %v529_v33  ;;  %v671_v9 = vmul.f32 %v4843_v35, %v4752_v53  ;;  %v4885_v26 = vld [vmem:[%s4730_s21 + $0xc2] sm:$0xff]  ;;  %v4890_v36 = vld [vmem:[%s4730_s21 + $0xca] sm:$0xff] }
  0x7a   : >> { %v732_v63 = vadd.f32 %v716_v16, %v680_v37  ;;  %v672_v14 = vmul.f32 %v4850_v40, %v4752_v53  ;;  %v723_v15 = vmul.f32 %v4853_v44, %v4765_v57  ;;  %v724_v16 = vmul.f32 %v4856_v45, %v4765_v57  ;;  %7292 = vst [vmem:[#allocation16_spill] sm:$0xff] %v4890_v36  ;;  %v4893_v37 = vld [vmem:[%s4730_s21 + $0xc4] sm:$0xff]  ;;  %v4896_v38 = vld [vmem:[%s4730_s21 + $0xcc] sm:$0xff] }
  0x7b   : >> { %v632_v13 = vadd.f32 %v616_v39, %v580_v50  ;;  %v783_v27 = vadd.f32 %v767_v20, %v731_v62  ;;  %v633_v33 = vadd.f32 %v617_v51, %v581_v1  ;;  %v775_v34 = vmul.f32 %v4865_v61, %v4769_v58  ;;  %7293 = vst [vmem:[#allocation17_spill] sm:$0xff] %v4893_v37  ;;  %v502_v51 = vld [vmem:[%s4730_s21 + $0x18] sm:$0xff]  ;;  %v503_v2 = vld [vmem:[%s4730_s21 + $0x20] sm:$0xff] }
  0x7c   : >> { %v784_v32 = vadd.f32 %v768_v21, %v732_v63  ;;  %7294 = vst [vmem:[#allocation18_spill] sm:$0xff] %v4896_v38  ;;  %v776_v50 = vmul.f32 %v4870_v10, %v4769_v58  ;;  %v830_v20 = vmul.f32 %v4873_v11, %v4773_v59  ;;  %v831_v21 = vmul.f32 %v4876_v12, %v4773_v59 }
  0x7d   : >> { %v687_v39 = vadd.f32 %v671_v9, %v632_v13  ;;  %v838_v62 = vadd.f32 %v822_v22, %v783_v27  ;;  %v688_v1 = vadd.f32 %v672_v14, %v633_v33  ;;  %v882_v0 = vmul.f32 %v4885_v26, %v4777_v60  ;;  %v538_v9 = vld [vmem:[%s4730_s21 + $0x1a] sm:$0xff]  ;;  %v539_v13 = vld [vmem:[%s4730_s21 + $0x22] sm:$0xff] }
  0x7e   : >> { %v839_v63 = vadd.f32 %v823_v23, %v784_v32  ;;  %v883_v4 = vmul.f32 %v4890_v36, %v4777_v60  ;;  %v934_v43 = vmul.f32 %v4893_v37, %v4834_v31  ;;  %v935_v22 = vmul.f32 %v4896_v38, %v4834_v31  ;;  %v590_v23 = vld [vmem:[%s4730_s21 + $0x1c] sm:$0xff]  ;;  %v4923_v37 = vld [vmem:[%s4730_s21 + $0x48] sm:$0xff]  ;;  %v4926_v38 = vld [vmem:[%s4730_s21 + $0x50] sm:$0xff] }
  0x7f   : >> { %v739_v3 = vadd.f32 %v723_v15, %v687_v39  ;;  %v890_v14 = vadd.f32 %v874_v28, %v838_v62  ;;  %v740_v32 = vadd.f32 %v724_v16, %v688_v1  ;;  %v522_v33 = vmul.f32 %v4737_v47, %v502_v51  ;;  %v4930_v62 = vld [vmem:[%s4730_s21 + $0x4a] sm:$0xff]  ;;  %v4934_v1 = vld [vmem:[%s4730_s21 + $0x52] sm:$0xff] }
  0x80   : >> { %v891_v27 = vadd.f32 %v875_v29, %v839_v63  ;;  %v523_v15 = vmul.f32 %v4737_v47, %v503_v2  ;;  %v558_v39 = vmul.f32 %v4742_v49, %v538_v9  ;;  %v559_v5 = vmul.f32 %v4742_v49, %v539_v13  ;;  %v4937_v9 = vld [vmem:[%s4730_s21 + $0x4c] sm:$0xff] }
  0x81   : >> { %v791_v41 = vadd.f32 %v775_v34, %v739_v3  ;;  %v942_v28 = vadd.f32 %v926_v46, %v890_v14  ;;  %v792_v16 = vadd.f32 %v776_v50, %v740_v32  ;;  %v610_v51 = vmul.f32 %v4748_v52, %v590_v23 }
  0x82   : >> { %v943_v29 = vadd.f32 %v927_v48, %v891_v27  ;;  %v574_v34 = vadd.f32 %v558_v39, %v522_v33  ;;  %v575_v63 = vadd.f32 %v559_v5, %v523_v15  ;;  %v611_v2 = vmul.f32 %v4748_v52, %v591_v42  ;;  %v4956_v15 = vld [vmem:[%s4730_s21 + $0x78] sm:$0xff]  ;;  %v4959_v39 = vld [vmem:[%s4730_s21 + $0x80] sm:$0xff] }
  0x83   : >> { %v846_v3 = vadd.f32 %v830_v20, %v791_v41  ;;  %v847_v36 = vadd.f32 %v831_v21, %v792_v16  ;;  %v665_v46 = vmul.f32 %v4923_v37, %v4752_v53  ;;  %v666_v48 = vmul.f32 %v4926_v38, %v4752_v53  ;;  %v4944_v41 = vld [vmem:[%s4730_s21 + $0x54] sm:$0xff]  ;;  %7296 = vst [vmem:[#allocation20_spill] sm:$0xff] %v4956_v15 }
  0x84   : >> { %v958_v13 = vpack.c.bf16 %v943_v29, %v942_v28  ;;  %7295 = vst [vmem:[#allocation19_spill] sm:$0xff] %v4944_v41  ;;  %v626_v50 = vadd.f32 %v610_v51, %v574_v34  ;;  %v627_v42 = vadd.f32 %v611_v2, %v575_v63  ;;  %v717_v20 = vmul.f32 %v4930_v62, %v4765_v57  ;;  %v4962_v28 = vld [vmem:[%s4730_s21 + $0x7a] sm:$0xff]  ;;  %v4969_v29 = vld [vmem:[%s4730_s21 + $0x82] sm:$0xff] }
  0x85   : >> { %v898_v5 = vadd.f32 %v882_v0, %v846_v3  ;;  %v899_v21 = vadd.f32 %v883_v4, %v847_v36  ;;  %v718_v23 = vmul.f32 %v4934_v1, %v4765_v57  ;;  %v769_v14 = vmul.f32 %v4937_v9, %v4769_v58  ;;  %7297 = vst [vmem:[#allocation21_spill] sm:$0xff] %v4959_v39  ;;  %v4974_v51 = vld [vmem:[%s4730_s21 + $0x7c] sm:$0xff]  ;;  %v4979_v63 = vld [vmem:[%s4730_s21 + $0x84] sm:$0xff] }
  0x86   : >> { %3977 = vmatprep.mubr.msk.bf16.mxu0 %vm278_vm0, %v958_v13  ;;  %v681_v32 = vadd.f32 %v665_v46, %v626_v50  ;;  %v682_v0 = vadd.f32 %v666_v48, %v627_v42  ;;  %v770_v33 = vmul.f32 %v4944_v41, %v4769_v58  ;;  %7298 = vst [vmem:[#allocation22_spill] sm:$0xff] %v4962_v28  ;;  %7299 = vst [vmem:[#allocation23_spill] sm:$0xff] %v4969_v29  ;;  %v4984_v13 = vld [vmem:[%s4730_s21 + $0xa8] sm:$0xff]  ;;  %v4993_v42 = vld [vmem:[%s4730_s21 + $0xb0] sm:$0xff] }
  0x87   : >> { %v950_v27 = vadd.f32 %v934_v43, %v898_v5  ;;  %v951_v4 = vadd.f32 %v935_v22, %v899_v21  ;;  %v824_v36 = vmul.f32 %v4956_v15, %v4773_v59  ;;  %v825_v43 = vmul.f32 %v4959_v39, %v4773_v59  ;;  %7300 = vst [vmem:[#allocation24_spill] sm:$0xff] %v4974_v51  ;;  %v5024_v41 = vld [vmem:[%s4730_s21 + $0xe0] sm:$0xff] }
  0x88   : >> { %v876_v16 = vmul.f32 %v4962_v28, %v4777_v60  ;;  %v733_v3 = vadd.f32 %v717_v20, %v681_v32  ;;  %v734_v34 = vadd.f32 %v718_v23, %v682_v0  ;;  %v877_v22 = vmul.f32 %v4969_v29, %v4777_v60  ;;  %7301 = vst [vmem:[#allocation25_spill] sm:$0xff] %v4979_v63  ;;  %v5000_v32 = vld [vmem:[%s4730_s21 + $0xaa] sm:$0xff]  ;;  %v5003_v0 = vld [vmem:[%s4730_s21 + $0xb2] sm:$0xff] }
  0x89   : >> { %v928_v2 = vmul.f32 %v4974_v51, %v4834_v31  ;;  %7302 = vst [vmem:[#allocation26_spill] sm:$0xff] %v4984_v13  ;;  %v962_v46 = vpack.c.bf16 %v951_v4, %v950_v27  ;;  %v530_v48 = vmul.f32 %v4956_v15, %v4737_v47  ;;  %v531_v5 = vmul.f32 %v4959_v39, %v4737_v47  ;;  %v5006_v4 = vld [vmem:[%s4730_s21 + $0xac] sm:$0xff]  ;;  %v5021_v15 = vld [vmem:[%s4730_s21 + $0xd8] sm:$0xff] }
  0x8a   : >> { %v566_v50 = vmul.f32 %v4962_v28, %v4742_v49  ;;  %7303 = vst [vmem:[#allocation27_spill] sm:$0xff] %v4993_v42  ;;  %v785_v20 = vadd.f32 %v769_v14, %v733_v3  ;;  %v786_v21 = vadd.f32 %v770_v33, %v734_v34  ;;  %v567_v23 = vmul.f32 %v4969_v29, %v4742_v49 }
  0x8b   : >> { %v618_v27 = vmul.f32 %v4974_v51, %v4748_v52  ;;  %7304 = vst [vmem:[#allocation28_spill] sm:$0xff] %v5000_v32  ;;  %7305 = vst [vmem:[#allocation29_spill] sm:$0xff] %v5003_v0  ;;  %3985 = vmatprep.mubr.msk.bf16.mxu1 %vm278_vm0, %v962_v46  ;;  %v929_v14 = vmul.f32 %v4979_v63, %v4834_v31  ;;  %v619_v3 = vmul.f32 %v4979_v63, %v4748_v52  ;;  %v5016_v51 = vld [vmem:[%s4730_s21 + $0xb4] sm:$0xff] }
  0x8c   : >> { %7306 = vst [vmem:[#allocation30_spill] sm:$0xff] %v5006_v4  ;;  %v582_v33 = vadd.f32 %v566_v50, %v530_v48  ;;  %v673_v34 = vmul.f32 %v4984_v13, %v4752_v53  ;;  %v840_v29 = vadd.f32 %v824_v36, %v785_v20  ;;  %v841_v28 = vadd.f32 %v825_v43, %v786_v21  ;;  %v5027_v48 = vld [vmem:[%s4730_s21 + $0xda] sm:$0xff]  ;;  %v5036_v43 = vld [vmem:[%s4730_s21 + $0xe2] sm:$0xff] }
  0x8d   : >> { %v583_v39 = vadd.f32 %v567_v23, %v531_v5  ;;  %v674_v46 = vmul.f32 %v4993_v42, %v4752_v53  ;;  %7307 = vst [vmem:[#allocation31_spill] sm:$0xff] %v5021_v15  ;;  %7308 = vst [vmem:[#allocation32_spill] sm:$0xff] %v5024_v41  ;;  %v725_v63 = vmul.f32 %v5000_v32, %v4765_v57  ;;  %v5041_v42 = vld [vmem:[%s4730_s21 + $0xdc] sm:$0xff] }
  0x8e   : >> { %v634_v50 = vadd.f32 %v618_v27, %v582_v33  ;;  %v726_v13 = vmul.f32 %v5003_v0, %v4765_v57  ;;  %v777_v36 = vmul.f32 %v5006_v4, %v4769_v58  ;;  %v892_v5 = vadd.f32 %v876_v16, %v840_v29 }
  0x8f   : >> { %v893_v20 = vadd.f32 %v877_v22, %v841_v28  ;;  %v635_v21 = vadd.f32 %v619_v3, %v583_v39  ;;  %v778_v23 = vmul.f32 %v5016_v51, %v4769_v58  ;;  %v832_v33 = vmul.f32 %v5021_v15, %v4773_v59  ;;  %v5058_v15 = vld [vmem:[%s4730_s21 + $0xe4] sm:$0xff] }
  0x90   : >> { %v689_v27 = vadd.f32 %v673_v34, %v634_v50  ;;  %v833_v0 = vmul.f32 %v5024_v41, %v4773_v59  ;;  %v884_v4 = vmul.f32 %v5027_v48, %v4777_v60  ;;  %v944_v32 = vadd.f32 %v928_v2, %v892_v5 }
  0x91   : >> { %v945_v29 = vadd.f32 %v929_v14, %v893_v20  ;;  %v690_v28 = vadd.f32 %v674_v46, %v635_v21  ;;  %v885_v39 = vmul.f32 %v5036_v43, %v4777_v60  ;;  %v936_v22 = vmul.f32 %v5041_v42, %v4834_v31 }
  0x92   : >> { %v741_v16 = vadd.f32 %v725_v63, %v689_v27  ;;  %v524_v3 = vmul.f32 %v4755_v54, %v4737_v47  ;;  %v525_v34 = vmul.f32 %v4758_v55, %v4737_v47  ;;  %v560_v2 = vmul.f32 %v4761_v56, %v4742_v49 }
  0x93   : >> { %v959_v50 = vpack.c.bf16 %v945_v29, %v944_v32  ;;  %v742_v41 = vadd.f32 %v726_v13, %v690_v28  ;;  %v561_v14 = vmul.f32 %v4784_v6, %v4742_v49  ;;  %v612_v46 = vmul.f32 %v4787_v7, %v4748_v52 }
  0x94   : >> { %v793_v63 = vadd.f32 %v777_v36, %v741_v16  ;;  %v613_v54 = vmul.f32 %v4790_v8, %v4748_v52  ;;  %v667_v55 = vmul.f32 %v4803_v17, %v4752_v53  ;;  %v576_v32 = vadd.f32 %v560_v2, %v524_v3 }
  0x95   : >> { %3978 = vmatmul.mubr.msk.bf16.vlgmr.msra.gmra.mxu0 %vm278_vm0, %v959_v50  ;;  %v794_v13 = vadd.f32 %v778_v23, %v742_v41  ;;  %v577_v5 = vadd.f32 %v561_v14, %v525_v34  ;;  %v668_v56 = vmul.f32 %v4806_v18, %v4752_v53  ;;  %v937_v6 = vmul.f32 %v5058_v15, %v4834_v31 }
  0x96   : >> { %v848_v20 = vadd.f32 %v832_v33, %v793_v63  ;;  %v719_v7 = vmul.f32 %v4809_v19, %v4765_v57  ;;  %v720_v8 = vmul.f32 %v4820_v24, %v4765_v57  ;;  %v628_v17 = vadd.f32 %v612_v46, %v576_v32 }
  0x97   : >> { %v849_v36 = vadd.f32 %v833_v0, %v794_v13  ;;  %v629_v21 = vadd.f32 %v613_v54, %v577_v5  ;;  %v771_v41 = vmul.f32 %v4823_v25, %v4769_v58  ;;  %v772_v18 = vmul.f32 %v4830_v30, %v4769_v58  ;;  %v3454_v13 = vld [vmem:[%s4730_s21 + $0xf8] sm:$0xff] }
  0x98   : >> { %v900_v23 = vadd.f32 %v884_v4, %v848_v20  ;;  %v826_v27 = vmul.f32 %v4843_v35, %v4773_v59  ;;  %v827_v33 = vmul.f32 %v4850_v40, %v4773_v59  ;;  %v683_v29 = vadd.f32 %v667_v55, %v628_v17 }
  0x99   : >> { %v901_v19 = vadd.f32 %v885_v39, %v849_v36  ;;  %v684_v28 = vadd.f32 %v668_v56, %v629_v21  ;;  %v878_v24 = vmul.f32 %v4853_v44, %v4777_v60  ;;  %v879_v25 = vmul.f32 %v4856_v45, %v4777_v60 }
  0x9a   : >> { %v952_v0 = vadd.f32 %v936_v22, %v900_v23  ;;  %v930_v4 = vmul.f32 %v4865_v61, %v4834_v31  ;;  %v532_v30 = vmul.f32 %v4843_v35, %v4737_v47  ;;  %v735_v3 = vadd.f32 %v719_v7, %v683_v29  ;;  %v3470_v7 = vld [vmem:[%s4730_s21 + $0xfa] sm:$0xff] }
  0x9b   : >> { %v953_v16 = vadd.f32 %v937_v6, %v901_v19  ;;  %v736_v39 = vadd.f32 %v720_v8, %v684_v28  ;;  %v533_v34 = vmul.f32 %v4850_v40, %v4737_v47  ;;  %v568_v22 = vmul.f32 %v4853_v44, %v4742_v49  ;;  %v3469_v6 = vld [vmem:[%s4730_s21 + $0xf2] sm:$0xff] }
  0x9c   : >> { %v569_v50 = vmul.f32 %v4856_v45, %v4742_v49  ;;  %v620_v2 = vmul.f32 %v4865_v61, %v4748_v52  ;;  %v621_v35 = vmul.f32 %v4870_v10, %v4748_v52  ;;  %v787_v63 = vadd.f32 %v771_v41, %v735_v3  ;;  %v3453_v61 = vld [vmem:[%s4730_s21 + $0xf0] sm:$0xff] }
  0x9d   : >> { %v963_v14 = vpack.c.bf16 %v953_v16, %v952_v0  ;;  %v788_v46 = vadd.f32 %v772_v18, %v736_v39  ;;  %v931_v40 = vmul.f32 %v4870_v10, %v4834_v31  ;;  %v584_v54 = vadd.f32 %v568_v22, %v532_v30  ;;  %v7309_v10 = vld [vmem:[#allocation16_spill] sm:$0xff] }
  0x9e   : >> { %v585_v55 = vadd.f32 %v569_v50, %v533_v34  ;;  %v675_v44 = vmul.f32 %v4873_v11, %v4752_v53  ;;  %v676_v45 = vmul.f32 %v4876_v12, %v4752_v53  ;;  %v842_v32 = vadd.f32 %v826_v27, %v787_v63  ;;  %v7310_v11 = vld [vmem:[#allocation17_spill] sm:$0xff]  ;;  %v7311_v12 = vld [vmem:[#allocation18_spill] sm:$0xff]  ;;  %v3485_v41 = vld [vmem:[%s4730_s21 + $0xf4] sm:$0xff] }
  0x9f   : >> { %3986 = vmatmul.mubr.msk.bf16.vlgmr.msra.gmra.mxu1 %vm278_vm0, %v963_v14  ;;  %v843_v5 = vadd.f32 %v827_v33, %v788_v46  ;;  %v727_v56 = vmul.f32 %v4885_v26, %v4765_v57  ;;  %v728_v20 = vmul.f32 %v7309_v10, %v4765_v57  ;;  %v636_v8 = vadd.f32 %v620_v2, %v584_v54  ;;  %v7317_v10 = vld [vmem:[#allocation24_spill] sm:$0xff] }
  0xa0   : >> { %v637_v36 = vadd.f32 %v621_v35, %v585_v55  ;;  %v779_v17 = vmul.f32 %v7310_v11, %v4769_v58  ;;  %v780_v21 = vmul.f32 %v7311_v12, %v4769_v58  ;;  %v894_v23 = vadd.f32 %v878_v24, %v842_v32  ;;  %v7312_v35 = vld [vmem:[#allocation19_spill] sm:$0xff]  ;;  %v7314_v55 = vld [vmem:[#allocation21_spill] sm:$0xff] }
  0xa1   : >> { %v895_v18 = vadd.f32 %v879_v25, %v843_v5  ;;  %v834_v27 = vmul.f32 %v3453_v61, %v4773_v59  ;;  %v835_v26 = vmul.f32 %v3454_v13, %v4773_v59  ;;  %v691_v33 = vadd.f32 %v675_v44, %v636_v8  ;;  %v3486_v25 = vld [vmem:[%s4730_s21 + $0xfc] sm:$0xff]  ;;  %v7315_v44 = vld [vmem:[#allocation22_spill] sm:$0xff]  ;;  %v7316_v32 = vld [vmem:[#allocation23_spill] sm:$0xff] }
  0xa2   : >> { %v692_v19 = vadd.f32 %v676_v45, %v637_v36  ;;  %v886_v29 = vmul.f32 %v3469_v6, %v4777_v60  ;;  %v887_v28 = vmul.f32 %v3470_v7, %v4777_v60  ;;  %v946_v0 = vadd.f32 %v930_v4, %v894_v23  ;;  %v7318_v6 = vld [vmem:[#allocation25_spill] sm:$0xff]  ;;  %v7319_v8 = vld [vmem:[#allocation26_spill] sm:$0xff] }
  0xa3   : >> { %v947_v30 = vadd.f32 %v931_v40, %v895_v18  ;;  %v938_v16 = vmul.f32 %v3485_v41, %v4834_v31  ;;  %v526_v3 = vmul.f32 %v4923_v37, %v4737_v47  ;;  %v743_v39 = vadd.f32 %v727_v56, %v691_v33  ;;  %v7313_v40 = vld [vmem:[#allocation20_spill] sm:$0xff] }
  0xa4   : >> { %v744_v24 = vadd.f32 %v728_v20, %v692_v19  ;;  %v527_v34 = vmul.f32 %v4926_v38, %v4737_v47  ;;  %v562_v22 = vmul.f32 %v4930_v62, %v4742_v49  ;;  %v563_v2 = vmul.f32 %v4934_v1, %v4742_v49  ;;  %v7321_v18 = vld [vmem:[#allocation28_spill] sm:$0xff]  ;;  %v7323_v19 = vld [vmem:[#allocation30_spill] sm:$0xff] }
  0xa5   : >> { %v960_v50 = vpack.c.bf16 %v947_v30, %v946_v0  ;;  %v614_v4 = vmul.f32 %v4937_v9, %v4748_v52  ;;  %v615_v14 = vmul.f32 %v7312_v35, %v4748_v52  ;;  %v795_v37 = vadd.f32 %v779_v17, %v743_v39 }
  0xa6   : >> { %v796_v63 = vadd.f32 %v780_v21, %v744_v24  ;;  %v578_v46 = vadd.f32 %v562_v22, %v526_v3  ;;  %v669_v54 = vmul.f32 %v7313_v40, %v4752_v53  ;;  %v939_v38 = vmul.f32 %v3486_v25, %v4834_v31  ;;  %v7320_v21 = vld [vmem:[#allocation27_spill] sm:$0xff] }
  0xa7   : >> { %3981 = vmatprep.mubr.msk.bf16.mxu0 %vm278_vm0, %v960_v50  ;;  %v579_v62 = vadd.f32 %v563_v2, %v527_v34  ;;  %v670_v1 = vmul.f32 %v7314_v55, %v4752_v53  ;;  %v721_v9 = vmul.f32 %v7315_v44, %v4765_v57  ;;  %v850_v45 = vadd.f32 %v834_v27, %v795_v37 }
  0xa8   : >> { %v851_v61 = vadd.f32 %v835_v26, %v796_v63  ;;  %v630_v13 = vadd.f32 %v614_v4, %v578_v46  ;;  %v722_v5 = vmul.f32 %v7316_v32, %v4765_v57  ;;  %v773_v20 = vmul.f32 %v7317_v10, %v4769_v58  ;;  %v7322_v26 = vld [vmem:[#allocation29_spill] sm:$0xff]  ;;  %v7325_v46 = vld [vmem:[#allocation32_spill] sm:$0xff] }
  0xa9   : >> { %v631_v56 = vadd.f32 %v615_v14, %v579_v62  ;;  %v774_v7 = vmul.f32 %v7318_v6, %v4769_v58  ;;  %v828_v36 = vmul.f32 %v7319_v8, %v4773_v59  ;;  %v902_v11 = vadd.f32 %v886_v29, %v850_v45  ;;  %v3487_v6 = vld [vmem:[%s4730_s21 + $0x10c] sm:$0xff] }
  0xaa   : >> { %v903_v17 = vadd.f32 %v887_v28, %v851_v61  ;;  %v685_v12 = vadd.f32 %v669_v54, %v630_v13  ;;  %v829_v41 = vmul.f32 %v7320_v21, %v4773_v59  ;;  %v880_v27 = vmul.f32 %v7321_v18, %v4777_v60  ;;  %v3471_v13 = vld [vmem:[%s4730_s21 + $0x10a] sm:$0xff] }
  0xab   : >> { %v686_v23 = vadd.f32 %v670_v1, %v631_v56  ;;  %v881_v33 = vmul.f32 %v7322_v26, %v4777_v60  ;;  %v932_v0 = vmul.f32 %v7323_v19, %v4834_v31  ;;  %v954_v30 = vadd.f32 %v938_v16, %v902_v11  ;;  %v3455_v1 = vld [vmem:[%s4730_s21 + $0x108] sm:$0xff]  ;;  %v3472_v56 = vld [vmem:[%s4730_s21 + $0x112] sm:$0xff] }
  0xac   : >> { %v955_v3 = vadd.f32 %v939_v38, %v903_v17  ;;  %v737_v39 = vadd.f32 %v721_v9, %v685_v12  ;;  %v534_v29 = vmul.f32 %v7319_v8, %v4737_v47  ;;  %v535_v24 = vmul.f32 %v7320_v21, %v4737_v47  ;;  %v7324_v47 = vld [vmem:[#allocation31_spill] sm:$0xff] }
  0xad   : >> { %v738_v28 = vadd.f32 %v722_v5, %v686_v23  ;;  %v570_v25 = vmul.f32 %v7321_v18, %v4742_v49  ;;  %v571_v34 = vmul.f32 %v7322_v26, %v4742_v49  ;;  %v622_v16 = vmul.f32 %v7323_v19, %v4748_v52 }
  0xae   : >> { %v964_v22 = vpack.c.bf16 %v955_v3, %v954_v30  ;;  %v789_v50 = vadd.f32 %v773_v20, %v737_v39  ;;  %v623_v2 = vmul.f32 %v5016_v51, %v4748_v52  ;;  %v677_v37 = vmul.f32 %v7324_v47, %v4752_v53 }
  0xaf   : >> { %v790_v4 = vadd.f32 %v774_v7, %v738_v28  ;;  %v586_v35 = vadd.f32 %v570_v25, %v534_v29  ;;  %v587_v14 = vadd.f32 %v571_v34, %v535_v24  ;;  %v933_v49 = vmul.f32 %v5016_v51, %v4834_v31  ;;  %v3456_v51 = vld [vmem:[%s4730_s21 + $0x110] sm:$0xff] }
  0xb0   : >> { %3989 = vmatprep.mubr.msk.bf16.mxu1 %vm278_vm0, %v964_v22  ;;  %v844_v63 = vadd.f32 %v828_v36, %v789_v50  ;;  %v678_v40 = vmul.f32 %v7325_v46, %v4752_v53  ;;  %v729_v52 = vmul.f32 %v5027_v48, %v4765_v57  ;;  %v730_v55 = vmul.f32 %v5036_v43, %v4765_v57  ;;  %v3488_v7 = vld [vmem:[%s4730_s21 + $0x114] sm:$0xff] }
  0xb1   : >> { %v845_v54 = vadd.f32 %v829_v41, %v790_v4  ;;  %v638_v38 = vadd.f32 %v622_v16, %v586_v35  ;;  %v639_v62 = vadd.f32 %v623_v2, %v587_v14  ;;  %v781_v9 = vmul.f32 %v5041_v42, %v4769_v58 }
  0xb2   : >> { %v896_v44 = vadd.f32 %v880_v27, %v844_v63  ;;  %v782_v48 = vmul.f32 %v5058_v15, %v4769_v58  ;;  %v836_v5 = vmul.f32 %v3455_v1, %v4773_v59  ;;  %v837_v20 = vmul.f32 %v3456_v51, %v4773_v59 }
  0xb3   : >> { %v897_v45 = vadd.f32 %v881_v33, %v845_v54  ;;  %v693_v53 = vadd.f32 %v677_v37, %v638_v38  ;;  %v694_v61 = vadd.f32 %v678_v40, %v639_v62  ;;  %v888_v42 = vmul.f32 %v3471_v13, %v4777_v60  ;;  %v7326_v33 = vld [vmem:[#allocation12_spill] sm:$0xff] }
  0xb4   : >> { %v948_v32 = vadd.f32 %v932_v0, %v896_v44  ;;  %v889_v17 = vmul.f32 %v3472_v56, %v4777_v60  ;;  %v940_v12 = vmul.f32 %v3487_v6, %v4834_v31  ;;  %v941_v21 = vmul.f32 %v3488_v7, %v4834_v31 }
  0xb5   : >> { %v949_v57 = vadd.f32 %v933_v49, %v897_v45  ;;  %v745_v43 = vadd.f32 %v729_v52, %v693_v53  ;;  %v746_v10 = vadd.f32 %v730_v55, %v694_v61 }
  0xb7   : >> { %v961_v8 = vpack.c.bf16 %v949_v57, %v948_v32  ;;  %v797_v36 = vadd.f32 %v781_v9, %v745_v43  ;;  %v798_v11 = vadd.f32 %v782_v48, %v746_v10 }
  0xb9   : >> { %3982 = vmatmul.mubr.msk.bf16.gmra.mxu0 %vm278_vm0, %v961_v8  ;;  %v852_v58 = vadd.f32 %v836_v5, %v797_v36  ;;  %v853_v15 = vadd.f32 %v837_v20, %v798_v11 }
  0xbb   : >> { %v904_v41 = vadd.f32 %v888_v42, %v852_v58  ;;  %v905_v23 = vadd.f32 %v889_v17, %v853_v15 }
  0xbd   : >> { %v956_v59 = vadd.f32 %v940_v12, %v904_v41  ;;  %v957_v18 = vadd.f32 %v941_v21, %v905_v23 }
  0xbf   : >> { %v965_v27 = vpack.c.bf16 %v957_v18, %v956_v59 }
  0xc1   : >> { %3990 = vmatmul.mubr.msk.bf16.gmra.mxu1 %vm278_vm0, %v965_v27 }
 0x155   : >> { %v3979_v26 = vpop.f32.mrf.mxu0 }
 0x156   : >> { %v1043_v19 = vadd.f32 %v3979_v26, %v7326_v33 }
 0x157   : >> { %v1034_v60 = vpop.f32.mrf.mxu0 }
 0x158   : >> { %vm1099_vm7 = vcmp.ge.f32.partialorder %v1043_v19, 0.0  ;;  %v1115_v0 = vmul.f32 0.01, %v1043_v19  ;;  %v1035_v30 = vadd.f32 %v7326_v33, %v1034_v60  ;;  %v5271_v60 = vld [vmem:[%s7163_s4 + $0x4] sm:$0x7] (%p493_p11) }
 0x159   : >> { %v3980_v3 = vpop.f32.mrf.mxu0  ;;  %7328 = vst [vmem:[#allocation9_spill] sm:$0xff] (%p493_p11), %v5271_v60 }
 0x15a   : >> { %v1131_v39 = vsel %vm1099_vm7, %v1043_v19, %v1115_v0  ;;  %vm1097_vm8 = vcmp.ge.f32.partialorder %v1035_v30, 0.0  ;;  %v1113_v31 = vmul.f32 0.01, %v1035_v30  ;;  %v1046_v29 = vadd.f32 %v3980_v3, %v7326_v33  ;;  %v5266_v19 = vld [vmem:[%s7163_s4] sm:$0x7] (%p493_p11) }
 0x15b   : >> { %3502 = vst.msk [vmem:[%s5213_s22 + $0x4a] sm:$0xff] %vm327_vm3, %v1131_v39  ;;  %v1037_v28 = vpop.f32.mrf.mxu0  ;;  %7327 = vst [vmem:[#allocation8_spill] sm:$0xff] (%p493_p11), %v5266_v19  ;;  %v5276_v0 = vld [vmem:[%s7163_s4 + $0x8] sm:$0x7] (%p493_p11)  ;;  %v5296_v39 = vld [vmem:[%s7164_s5 + $0xc] sm:$0xf] (%p493_p11) }
 0x15c   : >> { %v1129_v24 = vsel %vm1097_vm8, %v1035_v30, %v1113_v31  ;;  %vm1100_vm9 = vcmp.ge.f32.partialorder %v1046_v29, 0.0  ;;  %v1116_v25 = vmul.f32 0.01, %v1046_v29  ;;  %v1038_v34 = vadd.f32 %v7326_v33, %v1037_v28  ;;  %7329 = vst [vmem:[#allocation10_spill] sm:$0xff] (%p493_p11), %v5276_v0  ;;  %v5281_v30 = vld [vmem:[%s7164_s5] sm:$0xf] (%p493_p11) }
 0x15d   : >> { %3500 = vst.msk [vmem:[%s5213_s22 + $0x32] sm:$0xff] %vm327_vm3, %v1129_v24  ;;  %7330 = vst [vmem:[#allocation11_spill] sm:$0xff] (%p493_p11), %v5281_v30  ;;  %v5291_v3 = vld [vmem:[%s7164_s5 + $0x8] sm:$0xf] (%p493_p11)  ;;  %v5301_v31 = vld [vmem:[%s7164_s5 + $0x10] sm:$0xf] (%p493_p11) }
 0x15e   : >> { %v1132_v22 = vsel %vm1100_vm9, %v1046_v29, %v1116_v25  ;;  %vm1098_vm10 = vcmp.ge.f32.partialorder %v1038_v34, 0.0  ;;  %v1114_v50 = vmul.f32 0.01, %v1038_v34  ;;  %7332 = vst [vmem:[#allocation33_spill] sm:$0xff] (%p493_p11), %v5291_v3  ;;  %7333 = vst [vmem:[#allocation34_spill] sm:$0xff] (%p493_p11), %v5296_v39 }
 0x15f   : >> { %v3987_v16 = vpop.f32.mrf.mxu1  ;;  %3503 = vst.msk [vmem:[%s5213_s22 + $0x52] sm:$0xff] %vm327_vm3, %v1132_v22  ;;  %7334 = vst [vmem:[#allocation35_spill] sm:$0xff] (%p493_p11), %v5301_v31  ;;  %v5306_v29 = vld [vmem:[%s7164_s5 + $0x14] sm:$0xf] (%p493_p11)  ;;  %v5311_v28 = vld [vmem:[%s7164_s5 + $0x18] sm:$0xf] (%p493_p11) }
 0x160   : >> { %v1075_v2 = vadd.f32 %v3987_v16, %v7326_v33  ;;  %v1130_v4 = vsel %vm1098_vm10, %v1038_v34, %v1114_v50  ;;  %7335 = vst [vmem:[#allocation36_spill] sm:$0xff] (%p493_p11), %v5306_v29  ;;  %7336 = vst [vmem:[#allocation37_spill] sm:$0xff] (%p493_p11), %v5311_v28  ;;  %v5316_v24 = vld [vmem:[%s7164_s5 + $0x1c] sm:$0xf] (%p493_p11)  ;;  %v5321_v25 = vld [vmem:[%s7165_s6] ss:$0 sm:$0xff] (%p493_p11) }
 0x161   : >> { %v1066_v35 = vpop.f32.mrf.mxu1  ;;  %3501 = vst.msk [vmem:[%s5213_s22 + $0x3a] sm:$0xff] %vm327_vm3, %v1130_v4  ;;  %7337 = vst [vmem:[#allocation38_spill] sm:$0xff] (%p493_p11), %v5316_v24 }
 0x162   : >> { %vm1107_vm11 = vcmp.ge.f32.partialorder %v1075_v2, 0.0  ;;  %v1123_v14 = vmul.f32 0.01, %v1075_v2  ;;  %v1067_v47 = vadd.f32 %v7326_v33, %v1066_v35  ;;  %7338 = vst [vmem:[#allocation39_spill] sm:$0xff] (%p493_p11), %v5321_v25 }
 0x163   : >> { %v3988_v37 = vpop.f32.mrf.mxu1 }
 0x164   : >> { %v1139_v63 = vsel %vm1107_vm11, %v1075_v2, %v1123_v14  ;;  %vm1105_vm12 = vcmp.ge.f32.partialorder %v1067_v47, 0.0  ;;  %v1121_v49 = vmul.f32 0.01, %v1067_v47  ;;  %v1078_v46 = vadd.f32 %v3988_v37, %v7326_v33 }
 0x165   : >> { %3510 = vst.msk [vmem:[%s5213_s22 + $0xaa] sm:$0xff] %vm327_vm3, %v1139_v63  ;;  %v1069_v40 = vpop.f32.mrf.mxu1 }
 0x166   : >> { %v1137_v52 = vsel %vm1105_vm12, %v1067_v47, %v1121_v49  ;;  %vm1108_vm13 = vcmp.ge.f32.partialorder %v1078_v46, 0.0  ;;  %v1124_v54 = vmul.f32 0.01, %v1078_v46  ;;  %v1070_v38 = vadd.f32 %v7326_v33, %v1069_v40 }
 0x167   : >> { %3508 = vst.msk [vmem:[%s5213_s22 + $0x92] sm:$0xff] %vm327_vm3, %v1137_v52 }
 0x168   : >> { %v1140_v62 = vsel %vm1108_vm13, %v1078_v46, %v1124_v54  ;;  %vm1106_vm14 = vcmp.ge.f32.partialorder %v1070_v38, 0.0  ;;  %v1122_v55 = vmul.f32 0.01, %v1070_v38 }
 0x169   : >> { %3511 = vst.msk [vmem:[%s5213_s22 + $0xb2] sm:$0xff] %vm327_vm3, %v1140_v62 }
 0x16a   : >> { %v1138_v1 = vsel %vm1106_vm14, %v1070_v38, %v1122_v55 }
 0x16b   : >> { %3509 = vst.msk [vmem:[%s5213_s22 + $0x9a] sm:$0xff] %vm327_vm3, %v1138_v1 }
 0x179   : >> { %v3983_v44 = vpop.f32.mrf.mxu0 }
 0x17a   : >> { %v1059_v9 = vadd.f32 %v3983_v44, %v7326_v33 }
 0x17b   : >> { %v1050_v51 = vpop.f32.mrf.mxu0 }
 0x17c   : >> { %vm1103_vm15 = vcmp.ge.f32.partialorder %v1059_v9, 0.0  ;;  %v1119_v45 = vmul.f32 0.01, %v1059_v9  ;;  %v1051_v53 = vadd.f32 %v7326_v33, %v1050_v51 }
 0x17d   : >> { %v3984_v61 = vpop.f32.mrf.mxu0 }
 0x17e   : >> { %v1135_v48 = vsel %vm1103_vm15, %v1059_v9, %v1119_v45  ;;  %vm1101_vm1 = vcmp.ge.f32.partialorder %v1051_v53, 0.0  ;;  %v1117_v13 = vmul.f32 0.01, %v1051_v53  ;;  %v1062_v32 = vadd.f32 %v3984_v61, %v7326_v33 }
 0x17f   : >> { %3506 = vst.msk [vmem:[%s5213_s22 + $0x7a] sm:$0xff] %vm327_vm3, %v1135_v48  ;;  %v1053_v5 = vpop.f32.mrf.mxu0 }
 0x180   : >> { %v1133_v56 = vsel %vm1101_vm1, %v1051_v53, %v1117_v13  ;;  %vm1104_vm2 = vcmp.ge.f32.partialorder %v1062_v32, 0.0  ;;  %v1120_v57 = vmul.f32 0.01, %v1062_v32  ;;  %v1054_v43 = vadd.f32 %v7326_v33, %v1053_v5 }
 0x181   : >> { %v3991_v10 = vpop.f32.mrf.mxu1  ;;  %3504 = vst.msk [vmem:[%s5213_s22 + $0x62] sm:$0xff] %vm327_vm3, %v1133_v56 }
 0x182   : >> { %v1091_v20 = vadd.f32 %v3991_v10, %v7326_v33  ;;  %v1136_v42 = vsel %vm1104_vm2, %v1062_v32, %v1120_v57  ;;  %vm1102_vm4 = vcmp.ge.f32.partialorder %v1054_v43, 0.0  ;;  %v1118_v6 = vmul.f32 0.01, %v1054_v43 }
 0x183   : >> { %v1082_v7 = vpop.f32.mrf.mxu1  ;;  %3507 = vst.msk [vmem:[%s5213_s22 + $0x82] sm:$0xff] %vm327_vm3, %v1136_v42 }
 0x184   : >> { %vm1111_vm5 = vcmp.ge.f32.partialorder %v1091_v20, 0.0  ;;  %v1127_v8 = vmul.f32 0.01, %v1091_v20  ;;  %v1083_v36 = vadd.f32 %v7326_v33, %v1082_v7  ;;  %v1134_v11 = vsel %vm1102_vm4, %v1054_v43, %v1118_v6 }
 0x185   : >> { %v3992_v17 = vpop.f32.mrf.mxu1  ;;  %3505 = vst.msk [vmem:[%s5213_s22 + $0x6a] sm:$0xff] %vm327_vm3, %v1134_v11 }
 0x186   : >> { %v1143_v58 = vsel %vm1111_vm5, %v1091_v20, %v1127_v8  ;;  %vm1109_vm6 = vcmp.ge.f32.partialorder %v1083_v36, 0.0  ;;  %v1125_v15 = vmul.f32 0.01, %v1083_v36  ;;  %v1094_v12 = vadd.f32 %v3992_v17, %v7326_v33 }
 0x187   : >> { %3514 = vst.msk [vmem:[%s5213_s22 + $0xda] sm:$0xff] %vm327_vm3, %v1143_v58  ;;  %v1085_v21 = vpop.f32.mrf.mxu1 }
 0x188   : >> { %v1141_v41 = vsel %vm1109_vm6, %v1083_v36, %v1125_v15  ;;  %vm1112_vm7 = vcmp.ge.f32.partialorder %v1094_v12, 0.0  ;;  %v1128_v23 = vmul.f32 0.01, %v1094_v12  ;;  %v1086_v59 = vadd.f32 %v7326_v33, %v1085_v21  ;;  %v5286_v33 = vld [vmem:[%s7164_s5 + $0x4] sm:$0xf] (%p493_p11) }
 0x189   : >> { %3512 = vst.msk [vmem:[%s5213_s22 + $0xc2] sm:$0xff] %vm327_vm3, %v1141_v41  ;;  %495 = sbr.rel (!%p493_p11) target bundleno = 105 (0x69), region = 139  ;;  %7331 = vst [vmem:[#allocation12_spill] sm:$0xff] (%p493_p11), %v5286_v33 }
 0x18a   : >> { %v1144_v18 = vsel %vm1112_vm7, %v1094_v12, %v1128_v23  ;;  %vm1110_vm8 = vcmp.ge.f32.partialorder %v1086_v59, 0.0  ;;  %v1126_v27 = vmul.f32 0.01, %v1086_v59 }
 0x18b   : >> { %3515 = vst.msk [vmem:[%s5213_s22 + $0xe2] sm:$0xff] %vm327_vm3, %v1144_v18 }
 0x18c   : >> { %v1142_v26 = vsel %vm1110_vm8, %v1086_v59, %v1126_v27 }
 0x18d   : >> { %3513 = vst.msk [vmem:[%s5213_s22 + $0xca] sm:$0xff] %vm327_vm3, %v1142_v26 }
 0x18e LB: >> { %v7339_v60 = vld [vmem:[#allocation9_spill] sm:$0xff]  ;;  %v7340_v19 = vld [vmem:[#allocation8_spill] sm:$0xff]  ;;  %v7341_v0 = vld [vmem:[#allocation10_spill] sm:$0xff]  ;;  %s3517_s9 = smul.u32 192, %s4251_s8  ;;  %s1179_s8 = sadd.s32 1, %s4251_s8   ;;  %s4251_s8 = sphi %s5323_s8, %s1179_s8  }
 0x18f   : >> { %v7342_v24 = vld [vmem:[#allocation38_spill] sm:$0xff]  ;;  %v7343_v28 = vld [vmem:[#allocation37_spill] sm:$0xff]  ;;  %v7344_v29 = vld [vmem:[#allocation36_spill] sm:$0xff]  ;;  %p1176_p12 = scmp.ge.s32.totalorder %s1179_s8, 2  }
 0x190   : >> { %v3622_v34 = vcombine.low %v7343_v28, %v7342_v24  ;;  %v7345_v31 = vld [vmem:[#allocation35_spill] sm:$0xff]  ;;  %v7346_v50 = vld [vmem:[#allocation13_spill] sm:$0xff]  ;;  %v7348_v35 = vld [vmem:[#allocation15_spill] sm:$0xff]  ;;  %s5357_s14 = scalar_lea.vmem [#allocation3], %s3517_s9  ;;  %s5828_s15 = scalar_lea.vmem [#allocation4], %s3517_s9 }
 0x191   : >> { %v3621_v22 = vcombine.low %v7345_v31, %v7344_v29  ;;  %v5335_v16 = vrot.slane %v7340_v19, %v7346_v50  ;;  %v7347_v2 = vld [vmem:[#allocation14_spill] sm:$0xff]  ;;  %v5343_v14 = vrot.slane %v7340_v19, %v7348_v35  ;;  %v7349_v39 = vld [vmem:[#allocation34_spill] sm:$0xff]  ;;  %v7350_v3 = vld [vmem:[#allocation33_spill] sm:$0xff]  ;;  %v5349_v37 = vrot.slane %v7339_v60, %v7346_v50  ;;  %s5938_s19 = smov (%p1176_p12), 0  }
 0x192   : >> { %3993 = vmatprep.subr.bf16.mxu0 %v3622_v34  ;;  %4067 = vmatprep.subr.bf16.mxu1 %v3622_v34  ;;  %v5339_v4 = vrot.slane %v7340_v19, %v7347_v2  ;;  %v3620_v47 = vcombine.low %v7350_v3, %v7349_v39  ;;  %v7351_v33 = vld [vmem:[#allocation12_spill] sm:$0xff]  ;;  %v7352_v30 = vld [vmem:[#allocation11_spill] sm:$0xff]  ;;  %v5364_v52 = vrot.slane %v7339_v60, %v7347_v2 }
 0x193   : >> { %3994 = vmatpush3.bf16.msra.mxu0 %v3622_v34  ;;  %4071 = vmatpush3.bf16.msra.mxu1 %v3622_v34  ;;  %v5353_v63 = vcombine.low %v7352_v30, %v7351_v33  ;;  %v5368_v54 = vrot.slane %v7339_v60, %v7348_v35  ;;  %v5372_v38 = vrot.slane %v7341_v0, %v7346_v50 }
 0x194   : >> { %3995 = vmatprep.subr.bf16.mxu0 %v3621_v22  ;;  %4068 = vmatprep.subr.bf16.mxu1 %v3621_v22  ;;  %v1183_v49 = vld [vmem:[%s5357_s14] sm:$0xff]  ;;  %v1184_v46 = vld [vmem:[%s5357_s14 + $0x8] sm:$0xff]  ;;  %v5382_v45 = vrot.slane %v7341_v0, %v7347_v2  ;;  %v5388_v13 = vld [vmem:[%s5357_s14 + $0x30] sm:$0xff]  ;;  %v5409_v42 = vrot.slane %v7341_v0, %v7348_v35 }
 0x195   : >> { %v1219_v40 = vld [vmem:[%s5357_s14 + $0x2] sm:$0xff]  ;;  %v1203_v62 = vmul.f32 %v5335_v16, %v1183_v49  ;;  %v1204_v55 = vmul.f32 %v5335_v16, %v1184_v46  ;;  %v1220_v1 = vld [vmem:[%s5357_s14 + $0xa] sm:$0xff]  ;;  %v5391_v32 = vld [vmem:[%s5357_s14 + $0x38] sm:$0xff]  ;;  %v1346_v57 = vmul.f32 %v5388_v13, %v5349_v37 }
 0x196   : >> { %v1239_v44 = vmul.f32 %v5339_v4, %v1219_v40  ;;  %v1271_v9 = vld [vmem:[%s5357_s14 + $0x4] sm:$0xff]  ;;  %v1272_v51 = vld [vmem:[%s5357_s14 + $0xc] sm:$0xff]  ;;  %v1240_v53 = vmul.f32 %v5339_v4, %v1220_v1  ;;  %v5399_v43 = vld [vmem:[%s5357_s14 + $0x3a] sm:$0xff]  ;;  %v1347_v7 = vmul.f32 %v5391_v32, %v5349_v37 }
 0x197   : >> { %3996 = vmatpush3.bf16.msra.mxu0 %v3621_v22  ;;  %4072 = vmatpush3.bf16.msra.mxu1 %v3621_v22  ;;  %v1291_v61 = vmul.f32 %v5343_v14, %v1271_v9  ;;  %v1292_v48 = vmul.f32 %v5343_v14, %v1272_v51  ;;  %v5394_v5 = vld [vmem:[%s5357_s14 + $0x32] sm:$0xff]  ;;  %v5405_v20 = vld [vmem:[%s5357_s14 + $0x3c] sm:$0xff]  ;;  %v1399_v36 = vmul.f32 %v5399_v43, %v5364_v52  ;;  %v5425_v12 = vld [vmem:[%s5357_s14 + $0x68] sm:$0xff] }
 0x198   : >> { %3997 = vmatprep.subr.bf16.mxu0 %v3620_v47  ;;  %4069 = vmatprep.subr.bf16.mxu1 %v3620_v47  ;;  %v1255_v56 = vadd.f32 %v1239_v44, %v1203_v62  ;;  %v5402_v10 = vld [vmem:[%s5357_s14 + $0x34] sm:$0xff]  ;;  %v1256_v6 = vadd.f32 %v1240_v53, %v1204_v55  ;;  %v1398_v8 = vmul.f32 %v5394_v5, %v5364_v52  ;;  %v5418_v11 = vld [vmem:[%s5357_s14 + $0x60] sm:$0xff]  ;;  %v5435_v18 = vld [vmem:[%s5357_s14 + $0x6a] sm:$0xff] }
 0x199   : >> { %v1450_v58 = vmul.f32 %v5402_v10, %v5368_v54  ;;  %v1451_v15 = vmul.f32 %v5405_v20, %v5368_v54  ;;  %v1505_v21 = vmul.f32 %v5418_v11, %v5372_v38  ;;  %v5430_v41 = vld [vmem:[%s5357_s14 + $0x62] sm:$0xff]  ;;  %v1506_v59 = vmul.f32 %v5425_v12, %v5372_v38  ;;  %v5443_v34 = vld [vmem:[%s5357_s14 + $0x6c] sm:$0xff]  ;;  %v5461_v62 = vld [vmem:[%s5357_s14 + $0x98] sm:$0xff] }
 0x19a   : >> { %v1307_v17 = vadd.f32 %v1291_v61, %v1255_v56  ;;  %v1308_v23 = vadd.f32 %v1292_v48, %v1256_v6  ;;  %v1557_v27 = vmul.f32 %v5430_v41, %v5382_v45  ;;  %v5440_v26 = vld [vmem:[%s5357_s14 + $0x64] sm:$0xff]  ;;  %v1558_v50 = vmul.f32 %v5435_v18, %v5382_v45  ;;  %v5452_v35 = vld [vmem:[%s5357_s14 + $0x90] sm:$0xff]  ;;  %v5473_v53 = vld [vmem:[%s5357_s14 + $0x9a] sm:$0xff] }
 0x19b   : >> { %3998 = vmatpush3.bf16.msra.mxu0 %v3620_v47  ;;  %4073 = vmatpush3.bf16.msra.mxu1 %v3620_v47  ;;  %v1609_v2 = vmul.f32 %v5440_v26, %v5409_v42  ;;  %v1211_v49 = vmul.f32 %v5418_v11, %v5335_v16  ;;  %v1212_v46 = vmul.f32 %v5425_v12, %v5335_v16  ;;  %v5470_v51 = vld [vmem:[%s5357_s14 + $0x92] sm:$0xff]  ;;  %v5483_v6 = vld [vmem:[%s5357_s14 + $0x9c] sm:$0xff]  ;;  %v5543_v25 = vld [vmem:[%s5357_s14 + $0x4a] sm:$0xff] }
 0x19c   : >> { %3999 = vmatprep.subr.bf16.mxu0 %v5353_v63  ;;  %4070 = vmatprep.subr.bf16.mxu1 %v5353_v63  ;;  %v1362_v22 = vadd.f32 %v1346_v57, %v1307_v17  ;;  %v1363_v47 = vadd.f32 %v1347_v7, %v1308_v23  ;;  %v1247_v40 = vmul.f32 %v5430_v41, %v5339_v4  ;;  %v5480_v57 = vld [vmem:[%s5357_s14 + $0x94] sm:$0xff]  ;;  %v5493_v23 = vld [vmem:[%s5357_s14 + $0xc8] sm:$0xff] }
 0x19d   : >> { %v1248_v1 = vmul.f32 %v5435_v18, %v5339_v4  ;;  %v1299_v44 = vmul.f32 %v5440_v26, %v5343_v14  ;;  %v1300_v9 = vmul.f32 %v5443_v34, %v5343_v14  ;;  %v1354_v56 = vmul.f32 %v5452_v35, %v5349_v37  ;;  %v5535_v60 = vld [vmem:[%s5357_s14 + $0x50] sm:$0xff]  ;;  %7353 = vst [vmem:[#allocation40_spill] sm:$0xff] %v5543_v25 }
 0x19e   : >> { %v1414_v55 = vadd.f32 %v1398_v8, %v1362_v22  ;;  %v1415_v61 = vadd.f32 %v1399_v36, %v1363_v47  ;;  %v1263_v48 = vadd.f32 %v1247_v40, %v1211_v49  ;;  %v1610_v8 = vmul.f32 %v5443_v34, %v5409_v42  ;;  %v5490_v36 = vld [vmem:[%s5357_s14 + $0xc0] sm:$0xff] }
 0x19f   : >> { %4000 = vmatpush3.bf16.msra.mxu0 %v5353_v63  ;;  %4074 = vmatpush3.bf16.msra.mxu1 %v5353_v63  ;;  %v1264_v17 = vadd.f32 %v1248_v1, %v1212_v46  ;;  %v1355_v63 = vmul.f32 %v5461_v62, %v5349_v37  ;;  %v1407_v49 = vmul.f32 %v5473_v53, %v5364_v52  ;;  %v5500_v40 = vld [vmem:[%s5357_s14 + $0xc2] sm:$0xff]  ;;  %v5503_v46 = vld [vmem:[%s5357_s14 + $0xca] sm:$0xff] }
 0x1a0   : >> { %v1466_v7 = vadd.f32 %v1450_v58, %v1414_v55  ;;  %v1467_v22 = vadd.f32 %v1451_v15, %v1415_v61  ;;  %v1315_v47 = vadd.f32 %v1299_v44, %v1263_v48  ;;  %v1406_v58 = vmul.f32 %v5470_v51, %v5364_v52  ;;  %v5510_v61 = vld [vmem:[%s5357_s14 + $0xc4] sm:$0xff]  ;;  %v1185_v48 = vld [vmem:[%s5357_s14 + $0x18] sm:$0xff] }
 0x1a1   : >> { %v1316_v1 = vadd.f32 %v1300_v9, %v1264_v17  ;;  %v1458_v15 = vmul.f32 %v5480_v57, %v5368_v54  ;;  %v1459_v44 = vmul.f32 %v5483_v6, %v5368_v54  ;;  %v1513_v19 = vmul.f32 %v5490_v36, %v5372_v38  ;;  %v1186_v9 = vld [vmem:[%s5357_s14 + $0x20] sm:$0xff] }
 0x1a2   : >> { %v1521_v55 = vadd.f32 %v1505_v21, %v1466_v7  ;;  %v1522_v0 = vadd.f32 %v1506_v59, %v1467_v22  ;;  %v1370_v3 = vadd.f32 %v1354_v56, %v1315_v47  ;;  %v1514_v21 = vmul.f32 %v5493_v23, %v5372_v38  ;;  %v1221_v7 = vld [vmem:[%s5357_s14 + $0x1a] sm:$0xff]  ;;  %v1222_v56 = vld [vmem:[%s5357_s14 + $0x22] sm:$0xff] }
 0x1a3   : >> { %v1371_v24 = vadd.f32 %v1355_v63, %v1316_v1  ;;  %v1565_v28 = vmul.f32 %v5500_v40, %v5382_v45  ;;  %v1566_v59 = vmul.f32 %v5503_v46, %v5382_v45  ;;  %v1273_v22 = vld [vmem:[%s5357_s14 + $0x1c] sm:$0xff]  ;;  %v1617_v30 = vmul.f32 %v5510_v61, %v5409_v42 }
 0x1a4   : >> { %v1573_v17 = vadd.f32 %v1557_v27, %v1521_v55  ;;  %v1574_v47 = vadd.f32 %v1558_v50, %v1522_v0  ;;  %v1422_v29 = vadd.f32 %v1406_v58, %v1370_v3  ;;  %v1205_v31 = vmul.f32 %v5335_v16, %v1185_v48  ;;  %v1274_v27 = vld [vmem:[%s5357_s14 + $0x24] sm:$0xff]  ;;  %v5538_v50 = vld [vmem:[%s5357_s14 + $0xcc] sm:$0xff] }
 0x1a5   : >> { %v5530_v55 = vld [vmem:[%s5357_s14 + $0x48] sm:$0xff]  ;;  %v1423_v1 = vadd.f32 %v1407_v49, %v1371_v24  ;;  %v1206_v33 = vmul.f32 %v5335_v16, %v1186_v9  ;;  %v1241_v39 = vmul.f32 %v5339_v4, %v1221_v7  ;;  %v1242_v58 = vmul.f32 %v5339_v4, %v1222_v56  ;;  %v5549_v9 = vld [vmem:[%s5357_s14 + $0x52] sm:$0xff] }
 0x1a6   : >> { %v1625_v63 = vadd.f32 %v1609_v2, %v1573_v17  ;;  %v1626_v0 = vadd.f32 %v1610_v8, %v1574_v47  ;;  %v1474_v3 = vadd.f32 %v1458_v15, %v1422_v29  ;;  %v1293_v48 = vmul.f32 %v5343_v14, %v1273_v22  ;;  %7354 = vst [vmem:[#allocation41_spill] sm:$0xff] %v5549_v9  ;;  %v5552_v8 = vld [vmem:[%s5357_s14 + $0x4c] sm:$0xff]  ;;  %v5557_v22 = vld [vmem:[%s5357_s14 + $0x54] sm:$0xff] }
 0x1a7   : >> { %v1475_v2 = vadd.f32 %v1459_v44, %v1423_v1  ;;  %v1257_v17 = vadd.f32 %v1241_v39, %v1205_v31  ;;  %v1294_v24 = vmul.f32 %v5343_v14, %v1274_v27  ;;  %v1348_v49 = vmul.f32 %v5530_v55, %v5349_v37  ;;  %7355 = vst [vmem:[#allocation42_spill] sm:$0xff] %v5552_v8 }
 0x1a8   : >> { %v1641_v29 = vpack.c.bf16 %v1626_v0, %v1625_v63  ;;  %v1529_v15 = vadd.f32 %v1513_v19, %v1474_v3  ;;  %v1258_v7 = vadd.f32 %v1242_v58, %v1206_v33  ;;  %v1349_v56 = vmul.f32 %v5535_v60, %v5349_v37  ;;  %7356 = vst [vmem:[#allocation43_spill] sm:$0xff] %v5557_v22  ;;  %v5574_v58 = vld [vmem:[%s5357_s14 + $0x80] sm:$0xff] }
 0x1a9   : >> { %v1530_v39 = vadd.f32 %v1514_v21, %v1475_v2  ;;  %v1618_v31 = vmul.f32 %v5538_v50, %v5409_v42  ;;  %v1309_v44 = vadd.f32 %v1293_v48, %v1257_v17  ;;  %v1400_v47 = vmul.f32 %v5543_v25, %v5364_v52  ;;  %v5569_v21 = vld [vmem:[%s5357_s14 + $0x78] sm:$0xff]  ;;  %7358 = vst [vmem:[#allocation45_spill] sm:$0xff] %v5574_v58 }
 0x1aa   : >> { %4001 = vmatprep.mubr.msk.bf16.mxu0 %vm327_vm3, %v1641_v29  ;;  %v1581_v19 = vadd.f32 %v1565_v28, %v1529_v15  ;;  %v1310_v33 = vadd.f32 %v1294_v24, %v1258_v7  ;;  %v1401_v27 = vmul.f32 %v5549_v9, %v5364_v52  ;;  %v1452_v63 = vmul.f32 %v5552_v8, %v5368_v54  ;;  %v5579_v48 = vld [vmem:[%s5357_s14 + $0x7a] sm:$0xff]  ;;  %v5584_v29 = vld [vmem:[%s5357_s14 + $0x82] sm:$0xff] }
 0x1ab   : >> { %7357 = vst [vmem:[#allocation44_spill] sm:$0xff] %v5569_v21  ;;  %v1582_v1 = vadd.f32 %v1566_v59, %v1530_v39  ;;  %v1364_v0 = vadd.f32 %v1348_v49, %v1309_v44  ;;  %v1453_v3 = vmul.f32 %v5557_v22, %v5368_v54  ;;  %v1507_v28 = vmul.f32 %v5569_v21, %v5372_v38  ;;  %v5589_v49 = vld [vmem:[%s5357_s14 + $0x7c] sm:$0xff]  ;;  %v5599_v44 = vld [vmem:[%s5357_s14 + $0xa8] sm:$0xff] }
 0x1ac   : >> { %7359 = vst [vmem:[#allocation46_spill] sm:$0xff] %v5579_v48  ;;  %v1633_v2 = vadd.f32 %v1617_v30, %v1581_v19  ;;  %v1365_v17 = vadd.f32 %v1349_v56, %v1310_v33  ;;  %v1508_v24 = vmul.f32 %v5574_v58, %v5372_v38  ;;  %7360 = vst [vmem:[#allocation47_spill] sm:$0xff] %v5584_v29  ;;  %v5594_v30 = vld [vmem:[%s5357_s14 + $0x84] sm:$0xff] }
 0x1ad   : >> { %v1559_v59 = vmul.f32 %v5579_v48, %v5382_v45  ;;  %7361 = vst [vmem:[#allocation48_spill] sm:$0xff] %v5589_v49  ;;  %v1634_v15 = vadd.f32 %v1618_v31, %v1582_v1  ;;  %v1416_v7 = vadd.f32 %v1400_v47, %v1364_v0  ;;  %v1560_v39 = vmul.f32 %v5584_v29, %v5382_v45  ;;  %v5608_v1 = vld [vmem:[%s5357_s14 + $0xb0] sm:$0xff] }
 0x1ae   : >> { %7362 = vst [vmem:[#allocation49_spill] sm:$0xff] %v5594_v30  ;;  %v1611_v56 = vmul.f32 %v5589_v49, %v5409_v42  ;;  %7363 = vst [vmem:[#allocation50_spill] sm:$0xff] %v5599_v44  ;;  %v1417_v19 = vadd.f32 %v1401_v27, %v1365_v17  ;;  %v1213_v33 = vmul.f32 %v5569_v21, %v5335_v16  ;;  %v5615_v17 = vld [vmem:[%s5357_s14 + $0xaa] sm:$0xff]  ;;  %v5618_v21 = vld [vmem:[%s5357_s14 + $0xb2] sm:$0xff] }
 0x1af   : >> { %v1214_v31 = vmul.f32 %v5574_v58, %v5335_v16  ;;  %v1249_v47 = vmul.f32 %v5579_v48, %v5339_v4  ;;  %7364 = vst [vmem:[#allocation51_spill] sm:$0xff] %v5608_v1  ;;  %v1645_v0 = vpack.c.bf16 %v1634_v15, %v1633_v2  ;;  %v1468_v22 = vadd.f32 %v1452_v63, %v1416_v7  ;;  %v5625_v2 = vld [vmem:[%s5357_s14 + $0xac] sm:$0xff]  ;;  %v5628_v15 = vld [vmem:[%s5357_s14 + $0xb4] sm:$0xff] }
 0x1b0   : >> { %v1250_v8 = vmul.f32 %v5584_v29, %v5339_v4  ;;  %v1301_v27 = vmul.f32 %v5589_v49, %v5343_v14  ;;  %7365 = vst [vmem:[#allocation52_spill] sm:$0xff] %v5615_v17  ;;  %7366 = vst [vmem:[#allocation53_spill] sm:$0xff] %v5618_v21  ;;  %v1469_v58 = vadd.f32 %v1453_v3, %v1417_v19  ;;  %v5639_v49 = vld [vmem:[%s5357_s14 + $0xe0] sm:$0xff] }
 0x1b1   : >> { %v1265_v9 = vadd.f32 %v1249_v47, %v1213_v33  ;;  %v1302_v48 = vmul.f32 %v5594_v30, %v5343_v14  ;;  %v1356_v63 = vmul.f32 %v5599_v44, %v5349_v37  ;;  %7367 = vst [vmem:[#allocation54_spill] sm:$0xff] %v5628_v15  ;;  %4009 = vmatprep.mubr.msk.bf16.mxu1 %vm327_vm3, %v1645_v0  ;;  %v5636_v47 = vld [vmem:[%s5357_s14 + $0xd8] sm:$0xff]  ;;  %v5649_v0 = vld [vmem:[%s5357_s14 + $0xe2] sm:$0xff] }
 0x1b2   : >> { %v1523_v7 = vadd.f32 %v1507_v28, %v1468_v22  ;;  %v1612_v3 = vmul.f32 %v5594_v30, %v5409_v42  ;;  %v1266_v19 = vadd.f32 %v1250_v8, %v1214_v31  ;;  %v1357_v33 = vmul.f32 %v5608_v1, %v5349_v37  ;;  %v5646_v28 = vld [vmem:[%s5357_s14 + $0xda] sm:$0xff] }
 0x1b3   : >> { %v1524_v44 = vadd.f32 %v1508_v24, %v1469_v58  ;;  %v1317_v29 = vadd.f32 %v1301_v27, %v1265_v9  ;;  %v1408_v25 = vmul.f32 %v5615_v17, %v5364_v52  ;;  %v1409_v22 = vmul.f32 %v5618_v21, %v5364_v52  ;;  %v5656_v9 = vld [vmem:[%s5357_s14 + $0xdc] sm:$0xff] }
 0x1b4   : >> { %v1575_v8 = vadd.f32 %v1559_v59, %v1523_v7  ;;  %v1318_v31 = vadd.f32 %v1302_v48, %v1266_v19  ;;  %v1460_v1 = vmul.f32 %v5625_v2, %v5368_v54  ;;  %v1461_v58 = vmul.f32 %v5628_v15, %v5368_v54 }
 0x1b5   : >> { %v1576_v24 = vadd.f32 %v1560_v39, %v1524_v44  ;;  %v1372_v27 = vadd.f32 %v1356_v63, %v1317_v29  ;;  %v1515_v21 = vmul.f32 %v5636_v47, %v5372_v38  ;;  %v1516_v17 = vmul.f32 %v5639_v49, %v5372_v38  ;;  %v5671_v63 = vld [vmem:[%s5357_s14 + $0xe4] sm:$0xff] }
 0x1b6   : >> { %v1627_v30 = vadd.f32 %v1611_v56, %v1575_v8  ;;  %v1373_v59 = vadd.f32 %v1357_v33, %v1318_v31  ;;  %v1567_v48 = vmul.f32 %v5646_v28, %v5382_v45  ;;  %v1568_v7 = vmul.f32 %v5649_v0, %v5382_v45 }
 0x1b7   : >> { %v1628_v19 = vadd.f32 %v1612_v3, %v1576_v24  ;;  %v1424_v15 = vadd.f32 %v1408_v25, %v1372_v27  ;;  %v1619_v39 = vmul.f32 %v5656_v9, %v5409_v42  ;;  %v1207_v29 = vmul.f32 %v5388_v13, %v5335_v16 }
 0x1b8   : >> { %v1425_v44 = vadd.f32 %v1409_v22, %v1373_v59  ;;  %v1208_v56 = vmul.f32 %v5391_v32, %v5335_v16  ;;  %v1243_v33 = vmul.f32 %v5394_v5, %v5339_v4  ;;  %v1244_v8 = vmul.f32 %v5399_v43, %v5339_v4 }
 0x1b9   : >> { %v1642_v3 = vpack.c.bf16 %v1628_v19, %v1627_v30  ;;  %v1476_v25 = vadd.f32 %v1460_v1, %v1424_v15  ;;  %v1295_v31 = vmul.f32 %v5402_v10, %v5343_v14  ;;  %v1296_v13 = vmul.f32 %v5405_v20, %v5343_v14 }
 0x1ba   : >> { %v1477_v22 = vadd.f32 %v1461_v58, %v1425_v44  ;;  %v1259_v24 = vadd.f32 %v1243_v33, %v1207_v29  ;;  %v1260_v27 = vadd.f32 %v1244_v8, %v1208_v56  ;;  %v1350_v32 = vmul.f32 %v5418_v11, %v5349_v37 }
 0x1bb   : >> { %4002 = vmatmul.mubr.msk.bf16.vlgmr.msra.gmra.mxu0 %vm327_vm3, %v1642_v3  ;;  %v1531_v5 = vadd.f32 %v1515_v21, %v1476_v25  ;;  %v1620_v43 = vmul.f32 %v5671_v63, %v5409_v42  ;;  %v1351_v30 = vmul.f32 %v5425_v12, %v5349_v37  ;;  %v1402_v10 = vmul.f32 %v5430_v41, %v5364_v52 }
 0x1bc   : >> { %v1532_v1 = vadd.f32 %v1516_v17, %v1477_v22  ;;  %v1311_v20 = vadd.f32 %v1295_v31, %v1259_v24  ;;  %v1312_v15 = vadd.f32 %v1296_v13, %v1260_v27  ;;  %v1403_v58 = vmul.f32 %v5435_v18, %v5364_v52 }
 0x1bd   : >> { %v1583_v59 = vadd.f32 %v1567_v48, %v1531_v5  ;;  %v1454_v11 = vmul.f32 %v5440_v26, %v5368_v54  ;;  %v1455_v21 = vmul.f32 %v5443_v34, %v5368_v54  ;;  %v1509_v12 = vmul.f32 %v5452_v35, %v5372_v38 }
 0x1be   : >> { %v1584_v19 = vadd.f32 %v1568_v7, %v1532_v1  ;;  %v1366_v29 = vadd.f32 %v1350_v32, %v1311_v20  ;;  %v1367_v44 = vadd.f32 %v1351_v30, %v1312_v15  ;;  %v1510_v17 = vmul.f32 %v5461_v62, %v5372_v38  ;;  %v3583_v30 = vld [vmem:[%s5357_s14 + $0xf8] sm:$0xff] }
 0x1bf   : >> { %v1635_v41 = vadd.f32 %v1619_v39, %v1583_v59  ;;  %v1561_v18 = vmul.f32 %v5470_v51, %v5382_v45  ;;  %v1562_v48 = vmul.f32 %v5473_v53, %v5382_v45  ;;  %v1215_v34 = vmul.f32 %v5452_v35, %v5335_v16  ;;  %v3598_v20 = vld [vmem:[%s5357_s14 + $0xf2] sm:$0xff]  ;;  %v3599_v15 = vld [vmem:[%s5357_s14 + $0xfa] sm:$0xff] }
 0x1c0   : >> { %v1636_v26 = vadd.f32 %v1620_v43, %v1584_v19  ;;  %v1418_v56 = vadd.f32 %v1402_v10, %v1366_v29  ;;  %v1419_v33 = vadd.f32 %v1403_v58, %v1367_v44  ;;  %v1216_v7 = vmul.f32 %v5461_v62, %v5335_v16  ;;  %v3582_v43 = vld [vmem:[%s5357_s14 + $0xf0] sm:$0xff] }
 0x1c1   : >> { %v1251_v39 = vmul.f32 %v5470_v51, %v5339_v4  ;;  %v1252_v8 = vmul.f32 %v5473_v53, %v5339_v4  ;;  %v1303_v3 = vmul.f32 %v5480_v57, %v5343_v14  ;;  %v1304_v35 = vmul.f32 %v5483_v6, %v5343_v14 }
 0x1c2   : >> { %v1646_v25 = vpack.c.bf16 %v1636_v26, %v1635_v41  ;;  %v1470_v31 = vadd.f32 %v1454_v11, %v1418_v56  ;;  %v1471_v13 = vadd.f32 %v1455_v21, %v1419_v33  ;;  %v1358_v51 = vmul.f32 %v5490_v36, %v5349_v37  ;;  %v3614_v41 = vld [vmem:[%s5357_s14 + $0xf4] sm:$0xff]  ;;  %v3615_v26 = vld [vmem:[%s5357_s14 + $0xfc] sm:$0xff] }
 0x1c3   : >> { %v1267_v22 = vadd.f32 %v1251_v39, %v1215_v34  ;;  %v1268_v62 = vadd.f32 %v1252_v8, %v1216_v7  ;;  %v1359_v53 = vmul.f32 %v5493_v23, %v5349_v37  ;;  %v1613_v32 = vmul.f32 %v5480_v57, %v5409_v42  ;;  %v7368_v56 = vld [vmem:[#allocation40_spill] sm:$0xff]  ;;  %v7369_v34 = vld [vmem:[#allocation41_spill] sm:$0xff]  ;;  %v7370_v39 = vld [vmem:[#allocation42_spill] sm:$0xff] }
 0x1c4   : >> { %4010 = vmatmul.mubr.msk.bf16.vlgmr.msra.gmra.mxu1 %vm327_vm3, %v1646_v25  ;;  %v1525_v24 = vadd.f32 %v1509_v12, %v1470_v31  ;;  %v1526_v27 = vadd.f32 %v1510_v17, %v1471_v13  ;;  %v1614_v5 = vmul.f32 %v5483_v6, %v5409_v42  ;;  %v1410_v36 = vmul.f32 %v5500_v40, %v5364_v52 }
 0x1c5   : >> { %v1319_v10 = vadd.f32 %v1303_v3, %v1267_v22  ;;  %v1320_v1 = vadd.f32 %v1304_v35, %v1268_v62  ;;  %v1411_v23 = vmul.f32 %v5503_v46, %v5364_v52  ;;  %v1462_v57 = vmul.f32 %v5510_v61, %v5368_v54  ;;  %v7372_v22 = vld [vmem:[#allocation44_spill] sm:$0xff] }
 0x1c6   : >> { %v1577_v58 = vadd.f32 %v1561_v18, %v1525_v24  ;;  %v1578_v59 = vadd.f32 %v1562_v48, %v1526_v27  ;;  %v1463_v6 = vmul.f32 %v5538_v50, %v5368_v54  ;;  %v1517_v19 = vmul.f32 %v3582_v43, %v5372_v38 }
 0x1c7   : >> { %v1374_v11 = vadd.f32 %v1358_v51, %v1319_v10  ;;  %v1375_v21 = vadd.f32 %v1359_v53, %v1320_v1  ;;  %v1518_v40 = vmul.f32 %v3583_v30, %v5372_v38  ;;  %v1569_v46 = vmul.f32 %v3598_v20, %v5382_v45  ;;  %v7373_v51 = vld [vmem:[#allocation45_spill] sm:$0xff]  ;;  %v7375_v1 = vld [vmem:[#allocation47_spill] sm:$0xff] }
 0x1c8   : >> { %v1629_v29 = vadd.f32 %v1613_v32, %v1577_v58  ;;  %v1630_v44 = vadd.f32 %v1614_v5, %v1578_v59  ;;  %v1570_v12 = vmul.f32 %v3599_v15, %v5382_v45  ;;  %v1209_v61 = vmul.f32 %v5530_v55, %v5335_v16  ;;  %v7371_v55 = vld [vmem:[#allocation43_spill] sm:$0xff]  ;;  %v7374_v5 = vld [vmem:[#allocation46_spill] sm:$0xff]  ;;  %v7377_v59 = vld [vmem:[#allocation49_spill] sm:$0xff] }
 0x1c9   : >> { %v1426_v17 = vadd.f32 %v1410_v36, %v1374_v11  ;;  %v1427_v18 = vadd.f32 %v1411_v23, %v1375_v21  ;;  %v1210_v50 = vmul.f32 %v5535_v60, %v5335_v16  ;;  %v1245_v33 = vmul.f32 %v7368_v56, %v5339_v4  ;;  %v7376_v23 = vld [vmem:[#allocation48_spill] sm:$0xff] }
 0x1ca   : >> { %v1643_v48 = vpack.c.bf16 %v1630_v44, %v1629_v29  ;;  %v1246_v7 = vmul.f32 %v7369_v34, %v5339_v4  ;;  %v1297_v8 = vmul.f32 %v7370_v39, %v5343_v14  ;;  %v1621_v31 = vmul.f32 %v3614_v41, %v5409_v42  ;;  %v7380_v44 = vld [vmem:[#allocation52_spill] sm:$0xff]  ;;  %v7382_v39 = vld [vmem:[#allocation54_spill] sm:$0xff] }
 0x1cb   : >> { %v1478_v3 = vadd.f32 %v1462_v57, %v1426_v17  ;;  %v1479_v25 = vadd.f32 %v1463_v6, %v1427_v18  ;;  %v1298_v13 = vmul.f32 %v7371_v55, %v5343_v14  ;;  %v1261_v60 = vadd.f32 %v1245_v33, %v1209_v61  ;;  %v7378_v6 = vld [vmem:[#allocation50_spill] sm:$0xff]  ;;  %v7381_v61 = vld [vmem:[#allocation53_spill] sm:$0xff] }
 0x1cc   : >> { %4005 = vmatprep.mubr.msk.bf16.mxu0 %vm327_vm3, %v1643_v48  ;;  %v1262_v35 = vadd.f32 %v1246_v7, %v1210_v50  ;;  %v1352_v62 = vmul.f32 %v7372_v22, %v5349_v37  ;;  %v1353_v53 = vmul.f32 %v7373_v51, %v5349_v37  ;;  %v1622_v32 = vmul.f32 %v3615_v26, %v5409_v42 }
 0x1cd   : >> { %v1533_v24 = vadd.f32 %v1517_v19, %v1478_v3  ;;  %v1534_v27 = vadd.f32 %v1518_v40, %v1479_v25  ;;  %v1404_v43 = vmul.f32 %v7374_v5, %v5364_v52  ;;  %v1313_v30 = vadd.f32 %v1297_v8, %v1261_v60  ;;  %v7379_v40 = vld [vmem:[#allocation51_spill] sm:$0xff] }
 0x1ce   : >> { %v1314_v10 = vadd.f32 %v1298_v13, %v1262_v35  ;;  %v1405_v36 = vmul.f32 %v7375_v1, %v5364_v52  ;;  %v1456_v20 = vmul.f32 %v7376_v23, %v5368_v54  ;;  %v1457_v57 = vmul.f32 %v7377_v59, %v5368_v54  ;;  %v3616_v23 = vld [vmem:[%s5357_s14 + $0x10c] sm:$0xff] }
 0x1cf   : >> { %v1585_v15 = vadd.f32 %v1569_v46, %v1533_v24  ;;  %v1586_v58 = vadd.f32 %v1570_v12, %v1534_v27  ;;  %v1511_v11 = vmul.f32 %v7378_v6, %v5372_v38  ;;  %v1368_v21 = vadd.f32 %v1352_v62, %v1313_v30 }
 0x1d0   : >> { %v1369_v19 = vadd.f32 %v1353_v53, %v1314_v10  ;;  %v1512_v29 = vmul.f32 %v7379_v40, %v5372_v38  ;;  %v1563_v41 = vmul.f32 %v7380_v44, %v5382_v45  ;;  %v1564_v46 = vmul.f32 %v7381_v61, %v5382_v45 }
 0x1d1   : >> { %v1637_v17 = vadd.f32 %v1621_v31, %v1585_v15  ;;  %v1638_v18 = vadd.f32 %v1622_v32, %v1586_v58  ;;  %v1217_v12 = vmul.f32 %v7378_v6, %v5335_v16  ;;  %v1420_v50 = vadd.f32 %v1404_v43, %v1368_v21  ;;  %v3617_v58 = vld [vmem:[%s5357_s14 + $0x114] sm:$0xff] }
 0x1d2   : >> { %v1421_v48 = vadd.f32 %v1405_v36, %v1369_v19  ;;  %v1218_v26 = vmul.f32 %v7379_v40, %v5335_v16  ;;  %v1253_v56 = vmul.f32 %v7380_v44, %v5339_v4  ;;  %v1254_v34 = vmul.f32 %v7381_v61, %v5339_v4 }
 0x1d3   : >> { %v1647_v33 = vpack.c.bf16 %v1638_v18, %v1637_v17  ;;  %v1305_v7 = vmul.f32 %v5625_v2, %v5343_v14  ;;  %v1306_v8 = vmul.f32 %v7382_v39, %v5343_v14  ;;  %v1472_v3 = vadd.f32 %v1456_v20, %v1420_v50 }
 0x1d4   : >> { %v1473_v25 = vadd.f32 %v1457_v57, %v1421_v48  ;;  %v1269_v31 = vadd.f32 %v1253_v56, %v1217_v12  ;;  %v1360_v16 = vmul.f32 %v5636_v47, %v5349_v37  ;;  %v1615_v55 = vmul.f32 %v5625_v2, %v5409_v42  ;;  %v3584_v2 = vld [vmem:[%s5357_s14 + $0x108] sm:$0xff] }
 0x1d5   : >> { %4013 = vmatprep.mubr.msk.bf16.mxu1 %vm327_vm3, %v1647_v33  ;;  %v1616_v4 = vmul.f32 %v7382_v39, %v5409_v42  ;;  %v1270_v13 = vadd.f32 %v1254_v34, %v1218_v26  ;;  %v1361_v14 = vmul.f32 %v5639_v49, %v5349_v37  ;;  %v1527_v60 = vadd.f32 %v1511_v11, %v1472_v3  ;;  %v3585_v37 = vld [vmem:[%s5357_s14 + $0x110] sm:$0xff] }
 0x1d6   : >> { %v1528_v35 = vadd.f32 %v1512_v29, %v1473_v25  ;;  %v1321_v22 = vadd.f32 %v1305_v7, %v1269_v31  ;;  %v1412_v47 = vmul.f32 %v5646_v28, %v5364_v52  ;;  %v1413_v51 = vmul.f32 %v5649_v0, %v5364_v52  ;;  %v3600_v28 = vld [vmem:[%s5357_s14 + $0x10a] sm:$0xff]  ;;  %v3601_v0 = vld [vmem:[%s5357_s14 + $0x112] sm:$0xff] }
 0x1d7   : >> { %v1322_v62 = vadd.f32 %v1306_v8, %v1270_v13  ;;  %v1579_v53 = vadd.f32 %v1563_v41, %v1527_v60  ;;  %v1464_v32 = vmul.f32 %v5656_v9, %v5368_v54  ;;  %v1465_v5 = vmul.f32 %v5671_v63, %v5368_v54  ;;  %v7383_v41 = vld [vmem:[#allocation39_spill] sm:$0xff] }
 0x1d8   : >> { %v1580_v24 = vadd.f32 %v1564_v46, %v1528_v35  ;;  %v1376_v27 = vadd.f32 %v1360_v16, %v1321_v22  ;;  %v1519_v52 = vmul.f32 %v3584_v2, %v5372_v38  ;;  %v1520_v36 = vmul.f32 %v3585_v37, %v5372_v38 }
 0x1d9   : >> { %v1377_v49 = vadd.f32 %v1361_v14, %v1322_v62  ;;  %v1631_v43 = vadd.f32 %v1615_v55, %v1579_v53  ;;  %v1571_v9 = vmul.f32 %v3600_v28, %v5382_v45  ;;  %v1572_v57 = vmul.f32 %v3601_v0, %v5382_v45 }
 0x1da   : >> { %v1632_v30 = vadd.f32 %v1616_v4, %v1580_v24  ;;  %v1428_v10 = vadd.f32 %v1412_v47, %v1376_v27  ;;  %v1623_v63 = vmul.f32 %v3616_v23, %v5409_v42  ;;  %v1624_v11 = vmul.f32 %v3617_v58, %v5409_v42 }
 0x1db   : >> { %v1429_v1 = vadd.f32 %v1413_v51, %v1377_v49 }
 0x1dc   : >> { %v1644_v20 = vpack.c.bf16 %v1632_v30, %v1631_v43  ;;  %v1480_v15 = vadd.f32 %v1464_v32, %v1428_v10 }
 0x1dd   : >> { %v1481_v59 = vadd.f32 %v1465_v5, %v1429_v1 }
 0x1de   : >> { %4006 = vmatmul.mubr.msk.bf16.gmra.mxu0 %vm327_vm3, %v1644_v20  ;;  %v1535_v54 = vadd.f32 %v1519_v52, %v1480_v15 }
 0x1df   : >> { %v1536_v6 = vadd.f32 %v1520_v36, %v1481_v59 }
 0x1e0   : >> { %v1587_v21 = vadd.f32 %v1571_v9, %v1535_v54 }
 0x1e1   : >> { %v1588_v19 = vadd.f32 %v1572_v57, %v1536_v6 }
 0x1e2   : >> { %v1639_v38 = vadd.f32 %v1623_v63, %v1587_v21 }
 0x1e3   : >> { %v1640_v40 = vadd.f32 %v1624_v11, %v1588_v19 }
 0x1e5   : >> { %v1648_v29 = vpack.c.bf16 %v1640_v40, %v1639_v38 }
 0x1e7   : >> { %4014 = vmatmul.mubr.msk.bf16.gmra.mxu1 %vm327_vm3, %v1648_v29 }
 0x27b   : >> { %v4003_v44 = vpop.f32.mrf.mxu0 }
 0x27c   : >> { %v1746_v17 = vadd.f32 %v4003_v44, %v7383_v41 }
 0x27d   : >> { %v1737_v45 = vpop.f32.mrf.mxu0 }
 0x27e   : >> { %vm1802_vm0 = vcmp.ge.f32.partialorder %v1746_v17, 0.0  ;;  %v1818_v18 = vmul.f32 0.01, %v1746_v17  ;;  %v1738_v61 = vadd.f32 %v7383_v41, %v1737_v45  ;;  %v5886_v45 = vld [vmem:[%s7163_s4 + $0x10] sm:$0x7] (%p1176_p12) }
 0x27f   : >> { %v4004_v46 = vpop.f32.mrf.mxu0  ;;  %7385 = vst [vmem:[#allocation9_spill] sm:$0xff] (%p1176_p12), %v5886_v45 }
 0x280   : >> { %v1834_v12 = vsel %vm1802_vm0, %v1746_v17, %v1818_v18  ;;  %vm1800_vm9 = vcmp.ge.f32.partialorder %v1738_v61, 0.0  ;;  %v1816_v42 = vmul.f32 0.01, %v1738_v61  ;;  %v1749_v50 = vadd.f32 %v4004_v46, %v7383_v41  ;;  %v5881_v17 = vld [vmem:[%s7163_s4 + $0xc] sm:$0x7] (%p1176_p12) }
 0x281   : >> { %3635 = vst.msk [vmem:[%s5828_s15 + $0x4a] sm:$0xff] %vm327_vm3, %v1834_v12  ;;  %v1740_v48 = vpop.f32.mrf.mxu0  ;;  %7384 = vst [vmem:[#allocation8_spill] sm:$0xff] (%p1176_p12), %v5881_v17  ;;  %v5891_v18 = vld [vmem:[%s7163_s4 + $0x14] sm:$0x7] (%p1176_p12)  ;;  %v5906_v46 = vld [vmem:[%s7164_s5 + $0x28] sm:$0xf] (%p1176_p12) }
 0x282   : >> { %v1832_v26 = vsel %vm1800_vm9, %v1738_v61, %v1816_v42  ;;  %vm1803_vm10 = vcmp.ge.f32.partialorder %v1749_v50, 0.0  ;;  %v1819_v56 = vmul.f32 0.01, %v1749_v50  ;;  %v1741_v33 = vadd.f32 %v7383_v41, %v1740_v48  ;;  %7386 = vst [vmem:[#allocation10_spill] sm:$0xff] (%p1176_p12), %v5891_v18  ;;  %v5896_v61 = vld [vmem:[%s7164_s5 + $0x20] sm:$0xf] (%p1176_p12) }
 0x283   : >> { %3633 = vst.msk [vmem:[%s5828_s15 + $0x32] sm:$0xff] %vm327_vm3, %v1832_v26  ;;  %7387 = vst [vmem:[#allocation11_spill] sm:$0xff] (%p1176_p12), %v5896_v61  ;;  %v5911_v12 = vld [vmem:[%s7164_s5 + $0x2c] sm:$0xf] (%p1176_p12)  ;;  %v5916_v42 = vld [vmem:[%s7164_s5 + $0x30] sm:$0xf] (%p1176_p12) }
 0x284   : >> { %v4011_v34 = vpop.f32.mrf.mxu1  ;;  %v1835_v7 = vsel %vm1803_vm10, %v1749_v50, %v1819_v56  ;;  %vm1801_vm11 = vcmp.ge.f32.partialorder %v1741_v33, 0.0  ;;  %v1817_v39 = vmul.f32 0.01, %v1741_v33  ;;  %7389 = vst [vmem:[#allocation33_spill] sm:$0xff] (%p1176_p12), %v5906_v46  ;;  %7390 = vst [vmem:[#allocation34_spill] sm:$0xff] (%p1176_p12), %v5911_v12 }
 0x285   : >> { %v1778_v8 = vadd.f32 %v4011_v34, %v7383_v41  ;;  %3636 = vst.msk [vmem:[%s5828_s15 + $0x52] sm:$0xff] %vm327_vm3, %v1835_v7  ;;  %7391 = vst [vmem:[#allocation35_spill] sm:$0xff] (%p1176_p12), %v5916_v42  ;;  %v5921_v50 = vld [vmem:[%s7164_s5 + $0x34] sm:$0xf] (%p1176_p12)  ;;  %v5926_v48 = vld [vmem:[%s7164_s5 + $0x38] sm:$0xf] (%p1176_p12) }
 0x286   : >> { %v1769_v3 = vpop.f32.mrf.mxu1  ;;  %v1833_v25 = vsel %vm1801_vm11, %v1741_v33, %v1817_v39  ;;  %7392 = vst [vmem:[#allocation36_spill] sm:$0xff] (%p1176_p12), %v5921_v50  ;;  %7393 = vst [vmem:[#allocation37_spill] sm:$0xff] (%p1176_p12), %v5926_v48  ;;  %v5931_v26 = vld [vmem:[%s7164_s5 + $0x3c] sm:$0xf] (%p1176_p12)  ;;  %v5936_v56 = vld [vmem:[%s7165_s6 + $0x1] ss:$0 sm:$0xff] (%p1176_p12) }
 0x287   : >> { %vm1810_vm12 = vcmp.ge.f32.partialorder %v1778_v8, 0.0  ;;  %v1826_v31 = vmul.f32 0.01, %v1778_v8  ;;  %v1770_v16 = vadd.f32 %v7383_v41, %v1769_v3  ;;  %3634 = vst.msk [vmem:[%s5828_s15 + $0x3a] sm:$0xff] %vm327_vm3, %v1833_v25  ;;  %7394 = vst [vmem:[#allocation38_spill] sm:$0xff] (%p1176_p12), %v5931_v26 }
 0x288   : >> { %v4012_v55 = vpop.f32.mrf.mxu1  ;;  %7395 = vst [vmem:[#allocation39_spill] sm:$0xff] (%p1176_p12), %v5936_v56 }
 0x289   : >> { %v1842_v4 = vsel %vm1810_vm12, %v1778_v8, %v1826_v31  ;;  %vm1808_vm13 = vcmp.ge.f32.partialorder %v1770_v16, 0.0  ;;  %v1824_v13 = vmul.f32 0.01, %v1770_v16  ;;  %v1781_v14 = vadd.f32 %v4012_v55, %v7383_v41 }
 0x28a   : >> { %3643 = vst.msk [vmem:[%s5828_s15 + $0xaa] sm:$0xff] %vm327_vm3, %v1842_v4  ;;  %v1772_v60 = vpop.f32.mrf.mxu1 }
 0x28b   : >> { %v1840_v35 = vsel %vm1808_vm13, %v1770_v16, %v1824_v13  ;;  %vm1811_vm14 = vcmp.ge.f32.partialorder %v1781_v14, 0.0  ;;  %v1827_v22 = vmul.f32 0.01, %v1781_v14  ;;  %v1773_v47 = vadd.f32 %v7383_v41, %v1772_v60 }
 0x28c   : >> { %3641 = vst.msk [vmem:[%s5828_s15 + $0x92] sm:$0xff] %vm327_vm3, %v1840_v35 }
 0x28d   : >> { %v1843_v62 = vsel %vm1811_vm14, %v1781_v14, %v1827_v22  ;;  %vm1809_vm15 = vcmp.ge.f32.partialorder %v1773_v47, 0.0  ;;  %v1825_v51 = vmul.f32 0.01, %v1773_v47 }
 0x28e   : >> { %3644 = vst.msk [vmem:[%s5828_s15 + $0xb2] sm:$0xff] %vm327_vm3, %v1843_v62 }
 0x28f   : >> { %v1841_v2 = vsel %vm1809_vm15, %v1773_v47, %v1825_v51 }
 0x290   : >> { %3642 = vst.msk [vmem:[%s5828_s15 + $0x9a] sm:$0xff] %vm327_vm3, %v1841_v2 }
 0x29e   : >> { %v4007_v53 = vpop.f32.mrf.mxu0 }
 0x29f   : >> { %v1762_v24 = vadd.f32 %v4007_v53, %v7383_v41 }
 0x2a0   : >> { %v1753_v27 = vpop.f32.mrf.mxu0 }
 0x2a1   : >> { %vm1806_vm1 = vcmp.ge.f32.partialorder %v1762_v24, 0.0  ;;  %v1822_v32 = vmul.f32 0.01, %v1762_v24  ;;  %v1754_v37 = vadd.f32 %v7383_v41, %v1753_v27 }
 0x2a2   : >> { %v4008_v49 = vpop.f32.mrf.mxu0 }
 0x2a3   : >> { %v1838_v5 = vsel %vm1806_vm1, %v1762_v24, %v1822_v32  ;;  %vm1804_vm2 = vcmp.ge.f32.partialorder %v1754_v37, 0.0  ;;  %v1820_v28 = vmul.f32 0.01, %v1754_v37  ;;  %v1765_v43 = vadd.f32 %v4008_v49, %v7383_v41 }
 0x2a4   : >> { %3639 = vst.msk [vmem:[%s5828_s15 + $0x7a] sm:$0xff] %vm327_vm3, %v1838_v5  ;;  %v1756_v30 = vpop.f32.mrf.mxu0 }
 0x2a5   : >> { %v1836_v10 = vsel %vm1804_vm2, %v1754_v37, %v1820_v28  ;;  %vm1807_vm4 = vcmp.ge.f32.partialorder %v1765_v43, 0.0  ;;  %v1823_v52 = vmul.f32 0.01, %v1765_v43  ;;  %v1757_v0 = vadd.f32 %v7383_v41, %v1756_v30 }
 0x2a6   : >> { %3637 = vst.msk [vmem:[%s5828_s15 + $0x62] sm:$0xff] %vm327_vm3, %v1836_v10 }
 0x2a7   : >> { %v4015_v1 = vpop.f32.mrf.mxu1  ;;  %v1839_v36 = vsel %vm1807_vm4, %v1765_v43, %v1823_v52  ;;  %vm1805_vm5 = vcmp.ge.f32.partialorder %v1757_v0, 0.0  ;;  %v1821_v23 = vmul.f32 0.01, %v1757_v0 }
 0x2a8   : >> { %v1794_v20 = vadd.f32 %v4015_v1, %v7383_v41  ;;  %3640 = vst.msk [vmem:[%s5828_s15 + $0x82] sm:$0xff] %vm327_vm3, %v1839_v36 }
 0x2a9   : >> { %v1785_v15 = vpop.f32.mrf.mxu1  ;;  %v1837_v9 = vsel %vm1805_vm5, %v1757_v0, %v1821_v23 }
 0x2aa   : >> { %vm1814_vm6 = vcmp.ge.f32.partialorder %v1794_v20, 0.0  ;;  %v1830_v58 = vmul.f32 0.01, %v1794_v20  ;;  %v1786_v59 = vadd.f32 %v7383_v41, %v1785_v15  ;;  %3638 = vst.msk [vmem:[%s5828_s15 + $0x6a] sm:$0xff] %vm327_vm3, %v1837_v9 }
 0x2ab   : >> { %v4016_v57 = vpop.f32.mrf.mxu1 }
 0x2ac   : >> { %v1846_v54 = vsel %vm1814_vm6, %v1794_v20, %v1830_v58  ;;  %vm1812_vm7 = vcmp.ge.f32.partialorder %v1786_v59, 0.0  ;;  %v1828_v63 = vmul.f32 0.01, %v1786_v59  ;;  %v1797_v6 = vadd.f32 %v4016_v57, %v7383_v41 }
 0x2ad   : >> { %3647 = vst.msk [vmem:[%s5828_s15 + $0xda] sm:$0xff] %vm327_vm3, %v1846_v54  ;;  %v1788_v11 = vpop.f32.mrf.mxu1 }
 0x2ae   : >> { %v1844_v21 = vsel %vm1812_vm7, %v1786_v59, %v1828_v63  ;;  %vm1815_vm8 = vcmp.ge.f32.partialorder %v1797_v6, 0.0  ;;  %v1831_v19 = vmul.f32 0.01, %v1797_v6  ;;  %v1789_v38 = vadd.f32 %v7383_v41, %v1788_v11  ;;  %v5901_v41 = vld [vmem:[%s7164_s5 + $0x24] sm:$0xf] (%p1176_p12) }
 0x2af   : >> { %3645 = vst.msk [vmem:[%s5828_s15 + $0xc2] sm:$0xff] %vm327_vm3, %v1844_v21  ;;  %1178 = sbr.rel (!%p1176_p12) target bundleno = 398 (0x18e), region = 150  ;;  %7388 = vst [vmem:[#allocation12_spill] sm:$0xff] (%p1176_p12), %v5901_v41 }
 0x2b0   : >> { %v1847_v40 = vsel %vm1815_vm8, %v1797_v6, %v1831_v19  ;;  %vm1813_vm0 = vcmp.ge.f32.partialorder %v1789_v38, 0.0  ;;  %v1829_v29 = vmul.f32 0.01, %v1789_v38 }
 0x2b1   : >> { %3648 = vst.msk [vmem:[%s5828_s15 + $0xe2] sm:$0xff] %vm327_vm3, %v1847_v40 }
 0x2b2   : >> { %v1845_v44 = vsel %vm1813_vm0, %v1789_v38, %v1829_v29 }
 0x2b3   : >> { %3646 = vst.msk [vmem:[%s5828_s15 + $0xca] sm:$0xff] %vm327_vm3, %v1845_v44 }
 0x2b4 LB: >> { %v7396_v45 = vld [vmem:[#allocation9_spill] sm:$0xff]  ;;  %v7397_v18 = vld [vmem:[#allocation10_spill] sm:$0xff]  ;;  %v7398_v17 = vld [vmem:[#allocation8_spill] sm:$0xff]  ;;  %s3662_s21 = smul.u32 192, %s4255_s19  ;;  %s1885_s19 = sadd.s32 1, %s4255_s19   ;;  %s4255_s19 = sphi %s5938_s19, %s1885_s19  }
 0x2b5   : >> { %v7399_v26 = vld [vmem:[#allocation38_spill] sm:$0xff]  ;;  %v7400_v48 = vld [vmem:[#allocation37_spill] sm:$0xff]  ;;  %v7401_v50 = vld [vmem:[#allocation36_spill] sm:$0xff]  ;;  %p1882_p13 = scmp.ge.s32.totalorder %s1885_s19, 2  }
 0x2b6   : >> { %v3767_v33 = vcombine.low %v7400_v48, %v7399_v26  ;;  %v7402_v42 = vld [vmem:[#allocation35_spill] sm:$0xff]  ;;  %v7403_v7 = vld [vmem:[#allocation13_spill] sm:$0xff]  ;;  %v7405_v25 = vld [vmem:[#allocation15_spill] sm:$0xff]  ;;  %s5972_s22 = scalar_lea.vmem [#allocation4], %s3662_s21  ;;  %s6443_s23 = scalar_lea.vmem [#allocation3], %s3662_s21 }
 0x2b7   : >> { %v3766_v34 = vcombine.low %v7402_v42, %v7401_v50  ;;  %v5950_v39 = vrot.slane %v7398_v17, %v7403_v7  ;;  %v7404_v8 = vld [vmem:[#allocation14_spill] sm:$0xff]  ;;  %v5958_v31 = vrot.slane %v7398_v17, %v7405_v25  ;;  %v7406_v12 = vld [vmem:[#allocation34_spill] sm:$0xff]  ;;  %v7407_v46 = vld [vmem:[#allocation33_spill] sm:$0xff]  ;;  %v5964_v55 = vrot.slane %v7396_v45, %v7403_v7  ;;  %s6553_s8 = smov (%p1882_p13), 0  }
 0x2b8   : >> { %4017 = vmatprep.subr.bf16.mxu0 %v3767_v33  ;;  %4075 = vmatprep.subr.bf16.mxu1 %v3767_v33  ;;  %v5954_v3 = vrot.slane %v7398_v17, %v7404_v8  ;;  %v3765_v16 = vcombine.low %v7407_v46, %v7406_v12  ;;  %v7408_v41 = vld [vmem:[#allocation12_spill] sm:$0xff]  ;;  %v7409_v61 = vld [vmem:[#allocation11_spill] sm:$0xff]  ;;  %v5979_v35 = vrot.slane %v7396_v45, %v7404_v8 }
 0x2b9   : >> { %4018 = vmatpush3.bf16.msra.mxu0 %v3767_v33  ;;  %4079 = vmatpush3.bf16.msra.mxu1 %v3767_v33  ;;  %v5968_v4 = vcombine.low %v7409_v61, %v7408_v41  ;;  %v5983_v22 = vrot.slane %v7396_v45, %v7405_v25  ;;  %v5987_v47 = vrot.slane %v7397_v18, %v7403_v7 }
 0x2ba   : >> { %4019 = vmatprep.subr.bf16.mxu0 %v3766_v34  ;;  %4076 = vmatprep.subr.bf16.mxu1 %v3766_v34  ;;  %v1889_v13 = vld [vmem:[%s5972_s22] sm:$0xff]  ;;  %v1890_v14 = vld [vmem:[%s5972_s22 + $0x8] sm:$0xff]  ;;  %v5997_v32 = vrot.slane %v7397_v18, %v7404_v8  ;;  %v6003_v28 = vld [vmem:[%s5972_s22 + $0x30] sm:$0xff]  ;;  %v6024_v23 = vrot.slane %v7397_v18, %v7405_v25 }
 0x2bb   : >> { %v1925_v60 = vld [vmem:[%s5972_s22 + $0x2] sm:$0xff]  ;;  %v1909_v62 = vmul.f32 %v5950_v39, %v1889_v13  ;;  %v1910_v51 = vmul.f32 %v5950_v39, %v1890_v14  ;;  %v1926_v2 = vld [vmem:[%s5972_s22 + $0xa] sm:$0xff]  ;;  %v6006_v43 = vld [vmem:[%s5972_s22 + $0x38] sm:$0xff]  ;;  %v2052_v52 = vmul.f32 %v6003_v28, %v5964_v55 }
 0x2bc   : >> { %v1945_v53 = vmul.f32 %v5954_v3, %v1925_v60  ;;  %v1977_v24 = vld [vmem:[%s5972_s22 + $0x4] sm:$0xff]  ;;  %v1978_v27 = vld [vmem:[%s5972_s22 + $0xc] sm:$0xff]  ;;  %v1946_v37 = vmul.f32 %v5954_v3, %v1926_v2  ;;  %v6014_v0 = vld [vmem:[%s5972_s22 + $0x3a] sm:$0xff]  ;;  %v2053_v15 = vmul.f32 %v6006_v43, %v5964_v55 }
 0x2bd   : >> { %4020 = vmatpush3.bf16.msra.mxu0 %v3766_v34  ;;  %4080 = vmatpush3.bf16.msra.mxu1 %v3766_v34  ;;  %v1997_v49 = vmul.f32 %v5958_v31, %v1977_v24  ;;  %v1998_v5 = vmul.f32 %v5958_v31, %v1978_v27  ;;  %v6009_v30 = vld [vmem:[%s5972_s22 + $0x32] sm:$0xff]  ;;  %v6020_v36 = vld [vmem:[%s5972_s22 + $0x3c] sm:$0xff]  ;;  %v2105_v58 = vmul.f32 %v6014_v0, %v5979_v35  ;;  %v6040_v6 = vld [vmem:[%s5972_s22 + $0x68] sm:$0xff] }
 0x2be   : >> { %4021 = vmatprep.subr.bf16.mxu0 %v3765_v16  ;;  %4077 = vmatprep.subr.bf16.mxu1 %v3765_v16  ;;  %v1961_v10 = vadd.f32 %v1945_v53, %v1909_v62  ;;  %v6017_v1 = vld [vmem:[%s5972_s22 + $0x34] sm:$0xff]  ;;  %v1962_v20 = vadd.f32 %v1946_v37, %v1910_v51  ;;  %v2104_v9 = vmul.f32 %v6009_v30, %v5979_v35  ;;  %v6033_v59 = vld [vmem:[%s5972_s22 + $0x60] sm:$0xff]  ;;  %v6050_v40 = vld [vmem:[%s5972_s22 + $0x6a] sm:$0xff] }
 0x2bf   : >> { %v2156_v54 = vmul.f32 %v6017_v1, %v5983_v22  ;;  %v2157_v63 = vmul.f32 %v6020_v36, %v5983_v22  ;;  %v2211_v11 = vmul.f32 %v6033_v59, %v5987_v47  ;;  %v6045_v21 = vld [vmem:[%s5972_s22 + $0x62] sm:$0xff]  ;;  %v2212_v38 = vmul.f32 %v6040_v6, %v5987_v47  ;;  %v6058_v33 = vld [vmem:[%s5972_s22 + $0x6c] sm:$0xff]  ;;  %v6076_v62 = vld [vmem:[%s5972_s22 + $0x98] sm:$0xff] }
 0x2c0   : >> { %v2013_v57 = vadd.f32 %v1997_v49, %v1961_v10  ;;  %v2014_v19 = vadd.f32 %v1998_v5, %v1962_v20  ;;  %v2263_v29 = vmul.f32 %v6045_v21, %v5997_v32  ;;  %v6055_v44 = vld [vmem:[%s5972_s22 + $0x64] sm:$0xff]  ;;  %v2264_v7 = vmul.f32 %v6050_v40, %v5997_v32  ;;  %v6067_v25 = vld [vmem:[%s5972_s22 + $0x90] sm:$0xff]  ;;  %v6088_v37 = vld [vmem:[%s5972_s22 + $0x9a] sm:$0xff] }
 0x2c1   : >> { %4022 = vmatpush3.bf16.msra.mxu0 %v3765_v16  ;;  %4081 = vmatpush3.bf16.msra.mxu1 %v3765_v16  ;;  %v2315_v8 = vmul.f32 %v6055_v44, %v6024_v23  ;;  %v1917_v13 = vmul.f32 %v6033_v59, %v5950_v39  ;;  %v1918_v14 = vmul.f32 %v6040_v6, %v5950_v39  ;;  %v6085_v27 = vld [vmem:[%s5972_s22 + $0x92] sm:$0xff]  ;;  %v6098_v20 = vld [vmem:[%s5972_s22 + $0x9c] sm:$0xff]  ;;  %v6158_v56 = vld [vmem:[%s5972_s22 + $0x4a] sm:$0xff] }
 0x2c2   : >> { %4023 = vmatprep.subr.bf16.mxu0 %v5968_v4  ;;  %4078 = vmatprep.subr.bf16.mxu1 %v5968_v4  ;;  %v2068_v34 = vadd.f32 %v2052_v52, %v2013_v57  ;;  %v2069_v16 = vadd.f32 %v2053_v15, %v2014_v19  ;;  %v1953_v60 = vmul.f32 %v6045_v21, %v5954_v3  ;;  %v6095_v52 = vld [vmem:[%s5972_s22 + $0x94] sm:$0xff]  ;;  %v6108_v19 = vld [vmem:[%s5972_s22 + $0xc8] sm:$0xff] }
 0x2c3   : >> { %v1954_v2 = vmul.f32 %v6050_v40, %v5954_v3  ;;  %v2005_v53 = vmul.f32 %v6055_v44, %v5958_v31  ;;  %v2006_v24 = vmul.f32 %v6058_v33, %v5958_v31  ;;  %v2060_v10 = vmul.f32 %v6067_v25, %v5964_v55  ;;  %v6150_v61 = vld [vmem:[%s5972_s22 + $0x50] sm:$0xff]  ;;  %7410 = vst [vmem:[#allocation55_spill] sm:$0xff] %v6158_v56 }
 0x2c4   : >> { %v2120_v51 = vadd.f32 %v2104_v9, %v2068_v34  ;;  %v2121_v49 = vadd.f32 %v2105_v58, %v2069_v16  ;;  %v1969_v5 = vadd.f32 %v1953_v60, %v1917_v13  ;;  %v2316_v9 = vmul.f32 %v6058_v33, %v6024_v23  ;;  %v6105_v58 = vld [vmem:[%s5972_s22 + $0xc0] sm:$0xff] }
 0x2c5   : >> { %4024 = vmatpush3.bf16.msra.mxu0 %v5968_v4  ;;  %4082 = vmatpush3.bf16.msra.mxu1 %v5968_v4  ;;  %v1970_v57 = vadd.f32 %v1954_v2, %v1918_v14  ;;  %v2061_v4 = vmul.f32 %v6076_v62, %v5964_v55  ;;  %v2113_v13 = vmul.f32 %v6088_v37, %v5979_v35  ;;  %v6115_v60 = vld [vmem:[%s5972_s22 + $0xc2] sm:$0xff]  ;;  %v6118_v14 = vld [vmem:[%s5972_s22 + $0xca] sm:$0xff] }
 0x2c6   : >> { %v2172_v15 = vadd.f32 %v2156_v54, %v2120_v51  ;;  %v2173_v34 = vadd.f32 %v2157_v63, %v2121_v49  ;;  %v2021_v16 = vadd.f32 %v2005_v53, %v1969_v5  ;;  %v2112_v54 = vmul.f32 %v6085_v27, %v5979_v35  ;;  %v6125_v49 = vld [vmem:[%s5972_s22 + $0xc4] sm:$0xff]  ;;  %v1891_v5 = vld [vmem:[%s5972_s22 + $0x18] sm:$0xff] }
 0x2c7   : >> { %v2022_v2 = vadd.f32 %v2006_v24, %v1970_v57  ;;  %v2164_v63 = vmul.f32 %v6095_v52, %v5983_v22  ;;  %v2165_v53 = vmul.f32 %v6098_v20, %v5983_v22  ;;  %v2219_v18 = vmul.f32 %v6105_v58, %v5987_v47  ;;  %v1892_v24 = vld [vmem:[%s5972_s22 + $0x20] sm:$0xff] }
 0x2c8   : >> { %v2227_v51 = vadd.f32 %v2211_v11, %v2172_v15  ;;  %v2228_v12 = vadd.f32 %v2212_v38, %v2173_v34  ;;  %v2076_v17 = vadd.f32 %v2060_v10, %v2021_v16  ;;  %v2220_v11 = vmul.f32 %v6108_v19, %v5987_v47  ;;  %v1927_v15 = vld [vmem:[%s5972_s22 + $0x1a] sm:$0xff]  ;;  %v1928_v10 = vld [vmem:[%s5972_s22 + $0x22] sm:$0xff] }
 0x2c9   : >> { %v2077_v26 = vadd.f32 %v2061_v4, %v2022_v2  ;;  %v2271_v41 = vmul.f32 %v6115_v60, %v5997_v32  ;;  %v2272_v38 = vmul.f32 %v6118_v14, %v5997_v32  ;;  %v1979_v34 = vld [vmem:[%s5972_s22 + $0x1c] sm:$0xff]  ;;  %v2323_v45 = vmul.f32 %v6125_v49, %v6024_v23 }
 0x2ca   : >> { %v2279_v57 = vadd.f32 %v2263_v29, %v2227_v51  ;;  %v2280_v16 = vadd.f32 %v2264_v7, %v2228_v12  ;;  %v2128_v42 = vadd.f32 %v2112_v54, %v2076_v17  ;;  %v1911_v46 = vmul.f32 %v5950_v39, %v1891_v5  ;;  %v1980_v29 = vld [vmem:[%s5972_s22 + $0x24] sm:$0xff]  ;;  %v6153_v7 = vld [vmem:[%s5972_s22 + $0xcc] sm:$0xff] }
 0x2cb   : >> { %v6145_v51 = vld [vmem:[%s5972_s22 + $0x48] sm:$0xff]  ;;  %v2129_v2 = vadd.f32 %v2113_v13, %v2077_v26  ;;  %v1912_v48 = vmul.f32 %v5950_v39, %v1892_v24  ;;  %v1947_v50 = vmul.f32 %v5954_v3, %v1927_v15  ;;  %v1948_v54 = vmul.f32 %v5954_v3, %v1928_v10  ;;  %v6164_v24 = vld [vmem:[%s5972_s22 + $0x52] sm:$0xff] }
 0x2cc   : >> { %v2331_v4 = vadd.f32 %v2315_v8, %v2279_v57  ;;  %v2332_v12 = vadd.f32 %v2316_v9, %v2280_v16  ;;  %v2180_v17 = vadd.f32 %v2164_v63, %v2128_v42  ;;  %v1999_v5 = vmul.f32 %v5958_v31, %v1979_v34  ;;  %7411 = vst [vmem:[#allocation56_spill] sm:$0xff] %v6164_v24  ;;  %v6167_v9 = vld [vmem:[%s5972_s22 + $0x4c] sm:$0xff]  ;;  %v6172_v34 = vld [vmem:[%s5972_s22 + $0x54] sm:$0xff] }
 0x2cd   : >> { %v2181_v8 = vadd.f32 %v2165_v53, %v2129_v2  ;;  %v1963_v57 = vadd.f32 %v1947_v50, %v1911_v46  ;;  %v2000_v26 = vmul.f32 %v5958_v31, %v1980_v29  ;;  %v2054_v13 = vmul.f32 %v6145_v51, %v5964_v55  ;;  %7412 = vst [vmem:[#allocation57_spill] sm:$0xff] %v6167_v9 }
 0x2ce   : >> { %v2347_v42 = vpack.c.bf16 %v2332_v12, %v2331_v4  ;;  %v2235_v63 = vadd.f32 %v2219_v18, %v2180_v17  ;;  %v1964_v15 = vadd.f32 %v1948_v54, %v1912_v48  ;;  %v2055_v10 = vmul.f32 %v6150_v61, %v5964_v55  ;;  %7413 = vst [vmem:[#allocation58_spill] sm:$0xff] %v6172_v34  ;;  %v6189_v54 = vld [vmem:[%s5972_s22 + $0x80] sm:$0xff] }
 0x2cf   : >> { %v2236_v46 = vadd.f32 %v2220_v11, %v2181_v8  ;;  %v2324_v50 = vmul.f32 %v6153_v7, %v6024_v23  ;;  %v2015_v53 = vadd.f32 %v1999_v5, %v1963_v57  ;;  %v2106_v16 = vmul.f32 %v6158_v56, %v5979_v35  ;;  %v6184_v11 = vld [vmem:[%s5972_s22 + $0x78] sm:$0xff]  ;;  %7415 = vst [vmem:[#allocation60_spill] sm:$0xff] %v6189_v54 }
 0x2d0   : >> { %4025 = vmatprep.mubr.msk.bf16.mxu0 %vm327_vm3, %v2347_v42  ;;  %v2287_v18 = vadd.f32 %v2271_v41, %v2235_v63  ;;  %v2016_v48 = vadd.f32 %v2000_v26, %v1964_v15  ;;  %v2107_v29 = vmul.f32 %v6164_v24, %v5979_v35  ;;  %v2158_v4 = vmul.f32 %v6167_v9, %v5983_v22  ;;  %v6194_v5 = vld [vmem:[%s5972_s22 + $0x7a] sm:$0xff]  ;;  %v6199_v42 = vld [vmem:[%s5972_s22 + $0x82] sm:$0xff] }
 0x2d1   : >> { %7414 = vst [vmem:[#allocation59_spill] sm:$0xff] %v6184_v11  ;;  %v2288_v2 = vadd.f32 %v2272_v38, %v2236_v46  ;;  %v2070_v12 = vadd.f32 %v2054_v13, %v2015_v53  ;;  %v2159_v17 = vmul.f32 %v6172_v34, %v5983_v22  ;;  %v2213_v41 = vmul.f32 %v6184_v11, %v5987_v47  ;;  %v6204_v13 = vld [vmem:[%s5972_s22 + $0x7c] sm:$0xff]  ;;  %v6214_v53 = vld [vmem:[%s5972_s22 + $0xa8] sm:$0xff] }
 0x2d2   : >> { %7416 = vst [vmem:[#allocation61_spill] sm:$0xff] %v6194_v5  ;;  %v2339_v8 = vadd.f32 %v2323_v45, %v2287_v18  ;;  %v2071_v57 = vadd.f32 %v2055_v10, %v2016_v48  ;;  %v2214_v26 = vmul.f32 %v6189_v54, %v5987_v47  ;;  %7417 = vst [vmem:[#allocation62_spill] sm:$0xff] %v6199_v42  ;;  %v6209_v45 = vld [vmem:[%s5972_s22 + $0x84] sm:$0xff] }
 0x2d3   : >> { %v2265_v38 = vmul.f32 %v6194_v5, %v5997_v32  ;;  %7418 = vst [vmem:[#allocation63_spill] sm:$0xff] %v6204_v13  ;;  %v2340_v63 = vadd.f32 %v2324_v50, %v2288_v2  ;;  %v2122_v15 = vadd.f32 %v2106_v16, %v2070_v12  ;;  %v2266_v46 = vmul.f32 %v6199_v42, %v5997_v32  ;;  %v6223_v2 = vld [vmem:[%s5972_s22 + $0xb0] sm:$0xff] }
 0x2d4   : >> { %7419 = vst [vmem:[#allocation64_spill] sm:$0xff] %v6209_v45  ;;  %v2317_v10 = vmul.f32 %v6204_v13, %v6024_v23  ;;  %7420 = vst [vmem:[#allocation65_spill] sm:$0xff] %v6214_v53  ;;  %v2123_v18 = vadd.f32 %v2107_v29, %v2071_v57  ;;  %v1919_v48 = vmul.f32 %v6184_v11, %v5950_v39  ;;  %v6230_v57 = vld [vmem:[%s5972_s22 + $0xaa] sm:$0xff]  ;;  %v6233_v11 = vld [vmem:[%s5972_s22 + $0xb2] sm:$0xff] }
 0x2d5   : >> { %v1920_v50 = vmul.f32 %v6189_v54, %v5950_v39  ;;  %v1955_v16 = vmul.f32 %v6194_v5, %v5954_v3  ;;  %7421 = vst [vmem:[#allocation66_spill] sm:$0xff] %v6223_v2  ;;  %v2351_v12 = vpack.c.bf16 %v2340_v63, %v2339_v8  ;;  %v2174_v34 = vadd.f32 %v2158_v4, %v2122_v15  ;;  %v6240_v8 = vld [vmem:[%s5972_s22 + $0xac] sm:$0xff]  ;;  %v6243_v63 = vld [vmem:[%s5972_s22 + $0xb4] sm:$0xff] }
 0x2d6   : >> { %v1956_v9 = vmul.f32 %v6199_v42, %v5954_v3  ;;  %v2007_v29 = vmul.f32 %v6204_v13, %v5958_v31  ;;  %7422 = vst [vmem:[#allocation67_spill] sm:$0xff] %v6230_v57  ;;  %7423 = vst [vmem:[#allocation68_spill] sm:$0xff] %v6233_v11  ;;  %v2175_v54 = vadd.f32 %v2159_v17, %v2123_v18  ;;  %v6254_v13 = vld [vmem:[%s5972_s22 + $0xe0] sm:$0xff] }
 0x2d7   : >> { %v1971_v24 = vadd.f32 %v1955_v16, %v1919_v48  ;;  %v2008_v5 = vmul.f32 %v6209_v45, %v5958_v31  ;;  %v2062_v4 = vmul.f32 %v6214_v53, %v5964_v55  ;;  %7424 = vst [vmem:[#allocation69_spill] sm:$0xff] %v6243_v63  ;;  %4033 = vmatprep.mubr.msk.bf16.mxu1 %vm327_vm3, %v2351_v12  ;;  %v6251_v16 = vld [vmem:[%s5972_s22 + $0xd8] sm:$0xff]  ;;  %v6264_v12 = vld [vmem:[%s5972_s22 + $0xe2] sm:$0xff] }
 0x2d8   : >> { %v2229_v15 = vadd.f32 %v2213_v41, %v2174_v34  ;;  %v2318_v17 = vmul.f32 %v6209_v45, %v6024_v23  ;;  %v1972_v18 = vadd.f32 %v1956_v9, %v1920_v50  ;;  %v2063_v48 = vmul.f32 %v6223_v2, %v5964_v55  ;;  %v6261_v41 = vld [vmem:[%s5972_s22 + $0xda] sm:$0xff] }
 0x2d9   : >> { %v2230_v53 = vadd.f32 %v2214_v26, %v2175_v54  ;;  %v2023_v42 = vadd.f32 %v2007_v29, %v1971_v24  ;;  %v2114_v56 = vmul.f32 %v6230_v57, %v5979_v35  ;;  %v2115_v34 = vmul.f32 %v6233_v11, %v5979_v35  ;;  %v6271_v24 = vld [vmem:[%s5972_s22 + $0xdc] sm:$0xff] }
 0x2da   : >> { %v2281_v9 = vadd.f32 %v2265_v38, %v2229_v15  ;;  %v2024_v50 = vadd.f32 %v2008_v5, %v1972_v18  ;;  %v2166_v2 = vmul.f32 %v6240_v8, %v5983_v22  ;;  %v2167_v54 = vmul.f32 %v6243_v63, %v5983_v22 }
 0x2db   : >> { %v2282_v26 = vadd.f32 %v2266_v46, %v2230_v53  ;;  %v2078_v29 = vadd.f32 %v2062_v4, %v2023_v42  ;;  %v2221_v11 = vmul.f32 %v6251_v16, %v5987_v47  ;;  %v2222_v57 = vmul.f32 %v6254_v13, %v5987_v47  ;;  %v6286_v4 = vld [vmem:[%s5972_s22 + $0xe4] sm:$0xff] }
 0x2dc   : >> { %v2333_v45 = vadd.f32 %v2317_v10, %v2281_v9  ;;  %v2079_v38 = vadd.f32 %v2063_v48, %v2024_v50  ;;  %v2273_v5 = vmul.f32 %v6261_v41, %v5997_v32  ;;  %v2274_v15 = vmul.f32 %v6264_v12, %v5997_v32 }
 0x2dd   : >> { %v2334_v18 = vadd.f32 %v2318_v17, %v2282_v26  ;;  %v2130_v63 = vadd.f32 %v2114_v56, %v2078_v29  ;;  %v2325_v46 = vmul.f32 %v6271_v24, %v6024_v23  ;;  %v1913_v42 = vmul.f32 %v6003_v28, %v5950_v39 }
 0x2de   : >> { %v2131_v53 = vadd.f32 %v2115_v34, %v2079_v38  ;;  %v1914_v10 = vmul.f32 %v6006_v43, %v5950_v39  ;;  %v1949_v48 = vmul.f32 %v6009_v30, %v5954_v3  ;;  %v1950_v9 = vmul.f32 %v6014_v0, %v5954_v3 }
 0x2df   : >> { %v2348_v17 = vpack.c.bf16 %v2334_v18, %v2333_v45  ;;  %v2182_v56 = vadd.f32 %v2166_v2, %v2130_v63  ;;  %v2001_v50 = vmul.f32 %v6017_v1, %v5958_v31  ;;  %v2002_v28 = vmul.f32 %v6020_v36, %v5958_v31 }
 0x2e0   : >> { %v2183_v34 = vadd.f32 %v2167_v54, %v2131_v53  ;;  %v1965_v26 = vadd.f32 %v1949_v48, %v1913_v42  ;;  %v1966_v29 = vadd.f32 %v1950_v9, %v1914_v10  ;;  %v2056_v43 = vmul.f32 %v6033_v59, %v5964_v55 }
 0x2e1   : >> { %4026 = vmatmul.mubr.msk.bf16.vlgmr.msra.gmra.mxu0 %vm327_vm3, %v2348_v17  ;;  %v2237_v30 = vadd.f32 %v2221_v11, %v2182_v56  ;;  %v2326_v0 = vmul.f32 %v6286_v4, %v6024_v23  ;;  %v2057_v45 = vmul.f32 %v6040_v6, %v5964_v55  ;;  %v2108_v1 = vmul.f32 %v6045_v21, %v5979_v35 }
 0x2e2   : >> { %v2238_v2 = vadd.f32 %v2222_v57, %v2183_v34  ;;  %v2017_v36 = vadd.f32 %v2001_v50, %v1965_v26  ;;  %v2018_v63 = vadd.f32 %v2002_v28, %v1966_v29  ;;  %v2109_v54 = vmul.f32 %v6050_v40, %v5979_v35 }
 0x2e3   : >> { %v2289_v38 = vadd.f32 %v2273_v5, %v2237_v30  ;;  %v2160_v59 = vmul.f32 %v6055_v44, %v5983_v22  ;;  %v2161_v11 = vmul.f32 %v6058_v33, %v5983_v22  ;;  %v2215_v6 = vmul.f32 %v6067_v25, %v5987_v47 }
 0x2e4   : >> { %v2290_v18 = vadd.f32 %v2274_v15, %v2238_v2  ;;  %v2072_v42 = vadd.f32 %v2056_v43, %v2017_v36  ;;  %v2073_v53 = vadd.f32 %v2057_v45, %v2018_v63  ;;  %v2216_v57 = vmul.f32 %v6076_v62, %v5987_v47  ;;  %v3728_v45 = vld [vmem:[%s5972_s22 + $0xf8] sm:$0xff] }
 0x2e5   : >> { %v2341_v21 = vadd.f32 %v2325_v46, %v2289_v38  ;;  %v2267_v40 = vmul.f32 %v6085_v27, %v5997_v32  ;;  %v2268_v5 = vmul.f32 %v6088_v37, %v5997_v32  ;;  %v1921_v33 = vmul.f32 %v6067_v25, %v5950_v39  ;;  %v3743_v36 = vld [vmem:[%s5972_s22 + $0xf2] sm:$0xff]  ;;  %v3744_v63 = vld [vmem:[%s5972_s22 + $0xfa] sm:$0xff] }
 0x2e6   : >> { %v2342_v44 = vadd.f32 %v2326_v0, %v2290_v18  ;;  %v2124_v10 = vadd.f32 %v2108_v1, %v2072_v42  ;;  %v2125_v48 = vadd.f32 %v2109_v54, %v2073_v53  ;;  %v1922_v15 = vmul.f32 %v6076_v62, %v5950_v39  ;;  %v3727_v0 = vld [vmem:[%s5972_s22 + $0xf0] sm:$0xff] }
 0x2e7   : >> { %v1957_v46 = vmul.f32 %v6085_v27, %v5954_v3  ;;  %v1958_v9 = vmul.f32 %v6088_v37, %v5954_v3  ;;  %v2009_v17 = vmul.f32 %v6095_v52, %v5958_v31  ;;  %v2010_v25 = vmul.f32 %v6098_v20, %v5958_v31 }
 0x2e8   : >> { %v2352_v56 = vpack.c.bf16 %v2342_v44, %v2341_v21  ;;  %v2176_v50 = vadd.f32 %v2160_v59, %v2124_v10  ;;  %v2177_v28 = vadd.f32 %v2161_v11, %v2125_v48  ;;  %v2064_v27 = vmul.f32 %v6105_v58, %v5964_v55  ;;  %v3759_v21 = vld [vmem:[%s5972_s22 + $0xf4] sm:$0xff]  ;;  %v3760_v44 = vld [vmem:[%s5972_s22 + $0xfc] sm:$0xff] }
 0x2e9   : >> { %v1973_v34 = vadd.f32 %v1957_v46, %v1921_v33  ;;  %v1974_v62 = vadd.f32 %v1958_v9, %v1922_v15  ;;  %v2065_v37 = vmul.f32 %v6108_v19, %v5964_v55  ;;  %v2319_v43 = vmul.f32 %v6095_v52, %v6024_v23  ;;  %v7425_v10 = vld [vmem:[#allocation55_spill] sm:$0xff]  ;;  %v7426_v33 = vld [vmem:[#allocation56_spill] sm:$0xff]  ;;  %v7427_v46 = vld [vmem:[#allocation57_spill] sm:$0xff] }
 0x2ea   : >> { %4034 = vmatmul.mubr.msk.bf16.vlgmr.msra.gmra.mxu1 %vm327_vm3, %v2352_v56  ;;  %v2231_v26 = vadd.f32 %v2215_v6, %v2176_v50  ;;  %v2232_v29 = vadd.f32 %v2216_v57, %v2177_v28  ;;  %v2320_v30 = vmul.f32 %v6098_v20, %v6024_v23  ;;  %v2116_v58 = vmul.f32 %v6115_v60, %v5979_v35 }
 0x2eb   : >> { %v2025_v1 = vadd.f32 %v2009_v17, %v1973_v34  ;;  %v2026_v2 = vadd.f32 %v2010_v25, %v1974_v62  ;;  %v2117_v19 = vmul.f32 %v6118_v14, %v5979_v35  ;;  %v2168_v52 = vmul.f32 %v6125_v49, %v5983_v22  ;;  %v7429_v34 = vld [vmem:[#allocation59_spill] sm:$0xff] }
 0x2ec   : >> { %v2283_v54 = vadd.f32 %v2267_v40, %v2231_v26  ;;  %v2284_v38 = vadd.f32 %v2268_v5, %v2232_v29  ;;  %v2169_v20 = vmul.f32 %v6153_v7, %v5983_v22  ;;  %v2223_v18 = vmul.f32 %v3727_v0, %v5987_v47 }
 0x2ed   : >> { %v2080_v59 = vadd.f32 %v2064_v27, %v2025_v1  ;;  %v2081_v11 = vadd.f32 %v2065_v37, %v2026_v2  ;;  %v2224_v60 = vmul.f32 %v3728_v45, %v5987_v47  ;;  %v2275_v14 = vmul.f32 %v3743_v36, %v5997_v32  ;;  %v7430_v27 = vld [vmem:[#allocation60_spill] sm:$0xff]  ;;  %v7432_v2 = vld [vmem:[#allocation62_spill] sm:$0xff] }
 0x2ee   : >> { %v2335_v42 = vadd.f32 %v2319_v43, %v2283_v54  ;;  %v2336_v53 = vadd.f32 %v2320_v30, %v2284_v38  ;;  %v2276_v6 = vmul.f32 %v3744_v63, %v5997_v32  ;;  %v1915_v49 = vmul.f32 %v6145_v51, %v5950_v39  ;;  %v7428_v51 = vld [vmem:[#allocation58_spill] sm:$0xff]  ;;  %v7431_v30 = vld [vmem:[#allocation61_spill] sm:$0xff]  ;;  %v7434_v38 = vld [vmem:[#allocation64_spill] sm:$0xff] }
 0x2ef   : >> { %v2132_v57 = vadd.f32 %v2116_v58, %v2080_v59  ;;  %v2133_v40 = vadd.f32 %v2117_v19, %v2081_v11  ;;  %v1916_v7 = vmul.f32 %v6150_v61, %v5950_v39  ;;  %v1951_v48 = vmul.f32 %v7425_v10, %v5954_v3  ;;  %v7433_v19 = vld [vmem:[#allocation63_spill] sm:$0xff] }
 0x2f0   : >> { %v2349_v5 = vpack.c.bf16 %v2336_v53, %v2335_v42  ;;  %v1952_v15 = vmul.f32 %v7426_v33, %v5954_v3  ;;  %v2003_v9 = vmul.f32 %v7427_v46, %v5958_v31  ;;  %v2327_v50 = vmul.f32 %v3759_v21, %v6024_v23  ;;  %v7437_v53 = vld [vmem:[#allocation67_spill] sm:$0xff]  ;;  %v7439_v46 = vld [vmem:[#allocation69_spill] sm:$0xff] }
 0x2f1   : >> { %v2184_v17 = vadd.f32 %v2168_v52, %v2132_v57  ;;  %v2185_v56 = vadd.f32 %v2169_v20, %v2133_v40  ;;  %v2004_v28 = vmul.f32 %v7428_v51, %v5958_v31  ;;  %v1967_v61 = vadd.f32 %v1951_v48, %v1915_v49  ;;  %v7435_v20 = vld [vmem:[#allocation65_spill] sm:$0xff]  ;;  %v7438_v49 = vld [vmem:[#allocation68_spill] sm:$0xff] }
 0x2f2   : >> { %4029 = vmatprep.mubr.msk.bf16.mxu0 %vm327_vm3, %v2349_v5  ;;  %v1968_v25 = vadd.f32 %v1952_v15, %v1916_v7  ;;  %v2058_v62 = vmul.f32 %v7429_v34, %v5964_v55  ;;  %v2059_v37 = vmul.f32 %v7430_v27, %v5964_v55  ;;  %v2328_v43 = vmul.f32 %v3760_v44, %v6024_v23 }
 0x2f3   : >> { %v2239_v26 = vadd.f32 %v2223_v18, %v2184_v17  ;;  %v2240_v29 = vadd.f32 %v2224_v60, %v2185_v56  ;;  %v2110_v0 = vmul.f32 %v7431_v30, %v5979_v35  ;;  %v2019_v45 = vadd.f32 %v2003_v9, %v1967_v61  ;;  %v7436_v60 = vld [vmem:[#allocation66_spill] sm:$0xff] }
 0x2f4   : >> { %v2020_v1 = vadd.f32 %v2004_v28, %v1968_v25  ;;  %v2111_v58 = vmul.f32 %v7432_v2, %v5979_v35  ;;  %v2162_v36 = vmul.f32 %v7433_v19, %v5983_v22  ;;  %v2163_v52 = vmul.f32 %v7434_v38, %v5983_v22  ;;  %v3761_v19 = vld [vmem:[%s5972_s22 + $0x10c] sm:$0xff] }
 0x2f5   : >> { %v2291_v63 = vadd.f32 %v2275_v14, %v2239_v26  ;;  %v2292_v54 = vadd.f32 %v2276_v6, %v2240_v29  ;;  %v2217_v59 = vmul.f32 %v7435_v20, %v5987_v47  ;;  %v2074_v11 = vadd.f32 %v2058_v62, %v2019_v45 }
 0x2f6   : >> { %v2075_v18 = vadd.f32 %v2059_v37, %v2020_v1  ;;  %v2218_v42 = vmul.f32 %v7436_v60, %v5987_v47  ;;  %v2269_v21 = vmul.f32 %v7437_v53, %v5997_v32  ;;  %v2270_v14 = vmul.f32 %v7438_v49, %v5997_v32 }
 0x2f7   : >> { %v2343_v57 = vadd.f32 %v2327_v50, %v2291_v63  ;;  %v2344_v40 = vadd.f32 %v2328_v43, %v2292_v54  ;;  %v1923_v6 = vmul.f32 %v7435_v20, %v5950_v39  ;;  %v2126_v7 = vadd.f32 %v2110_v0, %v2074_v11  ;;  %v3762_v54 = vld [vmem:[%s5972_s22 + $0x114] sm:$0xff] }
 0x2f8   : >> { %v2127_v5 = vadd.f32 %v2111_v58, %v2075_v18  ;;  %v1924_v44 = vmul.f32 %v7436_v60, %v5950_v39  ;;  %v1959_v10 = vmul.f32 %v7437_v53, %v5954_v3  ;;  %v1960_v33 = vmul.f32 %v7438_v49, %v5954_v3 }
 0x2f9   : >> { %v2353_v48 = vpack.c.bf16 %v2344_v40, %v2343_v57  ;;  %v2011_v15 = vmul.f32 %v6240_v8, %v5958_v31  ;;  %v2012_v9 = vmul.f32 %v7439_v46, %v5958_v31  ;;  %v2178_v17 = vadd.f32 %v2162_v36, %v2126_v7 }
 0x2fa   : >> { %v2179_v56 = vadd.f32 %v2163_v52, %v2127_v5  ;;  %v1975_v50 = vadd.f32 %v1959_v10, %v1923_v6  ;;  %v2066_v39 = vmul.f32 %v6251_v16, %v5964_v55  ;;  %v2321_v51 = vmul.f32 %v6240_v8, %v6024_v23  ;;  %v3729_v8 = vld [vmem:[%s5972_s22 + $0x108] sm:$0xff] }
 0x2fb   : >> { %4037 = vmatprep.mubr.msk.bf16.mxu1 %vm327_vm3, %v2353_v48  ;;  %v2322_v3 = vmul.f32 %v7439_v46, %v6024_v23  ;;  %v1976_v28 = vadd.f32 %v1960_v33, %v1924_v44  ;;  %v2067_v31 = vmul.f32 %v6254_v13, %v5964_v55  ;;  %v2233_v61 = vadd.f32 %v2217_v59, %v2178_v17  ;;  %v3730_v55 = vld [vmem:[%s5972_s22 + $0x110] sm:$0xff] }
 0x2fc   : >> { %v2234_v25 = vadd.f32 %v2218_v42, %v2179_v56  ;;  %v2027_v34 = vadd.f32 %v2011_v15, %v1975_v50  ;;  %v2118_v16 = vmul.f32 %v6261_v41, %v5979_v35  ;;  %v2119_v27 = vmul.f32 %v6264_v12, %v5979_v35  ;;  %v3745_v41 = vld [vmem:[%s5972_s22 + $0x10a] sm:$0xff]  ;;  %v3746_v12 = vld [vmem:[%s5972_s22 + $0x112] sm:$0xff] }
 0x2fd   : >> { %v2028_v62 = vadd.f32 %v2012_v9, %v1976_v28  ;;  %v2285_v37 = vadd.f32 %v2269_v21, %v2233_v61  ;;  %v2170_v43 = vmul.f32 %v6271_v24, %v5983_v22  ;;  %v2171_v30 = vmul.f32 %v6286_v4, %v5983_v22  ;;  %v7440_v21 = vld [vmem:[#allocation39_spill] sm:$0xff] }
 0x2fe   : >> { %v2286_v26 = vadd.f32 %v2270_v14, %v2234_v25  ;;  %v2082_v29 = vadd.f32 %v2066_v39, %v2027_v34  ;;  %v2225_v35 = vmul.f32 %v3729_v8, %v5987_v47  ;;  %v2226_v58 = vmul.f32 %v3730_v55, %v5987_v47 }
 0x2ff   : >> { %v2083_v13 = vadd.f32 %v2067_v31, %v2028_v62  ;;  %v2337_v0 = vadd.f32 %v2321_v51, %v2285_v37  ;;  %v2277_v24 = vmul.f32 %v3745_v41, %v5997_v32  ;;  %v2278_v52 = vmul.f32 %v3746_v12, %v5997_v32 }
 0x300   : >> { %v2338_v45 = vadd.f32 %v2322_v3, %v2286_v26  ;;  %v2134_v1 = vadd.f32 %v2118_v16, %v2082_v29  ;;  %v2329_v4 = vmul.f32 %v3761_v19, %v6024_v23  ;;  %v2330_v59 = vmul.f32 %v3762_v54, %v6024_v23 }
 0x301   : >> { %v2135_v2 = vadd.f32 %v2119_v27, %v2083_v13 }
 0x302   : >> { %v2350_v36 = vpack.c.bf16 %v2338_v45, %v2337_v0  ;;  %v2186_v63 = vadd.f32 %v2170_v43, %v2134_v1 }
 0x303   : >> { %v2187_v38 = vadd.f32 %v2171_v30, %v2135_v2 }
 0x304   : >> { %4030 = vmatmul.mubr.msk.bf16.gmra.mxu0 %vm327_vm3, %v2350_v36  ;;  %v2241_v22 = vadd.f32 %v2225_v35, %v2186_v63 }
 0x305   : >> { %v2242_v20 = vadd.f32 %v2226_v58, %v2187_v38 }
 0x306   : >> { %v2293_v11 = vadd.f32 %v2277_v24, %v2241_v22 }
 0x307   : >> { %v2294_v18 = vadd.f32 %v2278_v52, %v2242_v20 }
 0x308   : >> { %v2345_v47 = vadd.f32 %v2329_v4, %v2293_v11 }
 0x309   : >> { %v2346_v60 = vadd.f32 %v2330_v59, %v2294_v18 }
 0x30b   : >> { %v2354_v42 = vpack.c.bf16 %v2346_v60, %v2345_v47 }
 0x30d   : >> { %4038 = vmatmul.mubr.msk.bf16.gmra.mxu1 %vm327_vm3, %v2354_v42 }
 0x3a1   : >> { %v4027_v53 = vpop.f32.mrf.mxu0 }
 0x3a2   : >> { %v2452_v57 = vadd.f32 %v4027_v53, %v7440_v21 }
 0x3a3   : >> { %v2443_v32 = vpop.f32.mrf.mxu0 }
 0x3a4   : >> { %vm2508_vm9 = vcmp.ge.f32.partialorder %v2452_v57, 0.0  ;;  %v2524_v40 = vmul.f32 0.01, %v2452_v57  ;;  %v2444_v49 = vadd.f32 %v7440_v21, %v2443_v32  ;;  %v6501_v32 = vld [vmem:[%s7163_s4 + $0x1c] sm:$0x7] (%p1882_p13) }
 0x3a5   : >> { %v4028_v14 = vpop.f32.mrf.mxu0  ;;  %7442 = vst [vmem:[#allocation9_spill] sm:$0xff] (%p1882_p13), %v6501_v32 }
 0x3a6   : >> { %v2540_v6 = vsel %vm2508_vm9, %v2452_v57, %v2524_v40  ;;  %vm2506_vm10 = vcmp.ge.f32.partialorder %v2444_v49, 0.0  ;;  %v2522_v23 = vmul.f32 0.01, %v2444_v49  ;;  %v2455_v7 = vadd.f32 %v4028_v14, %v7440_v21  ;;  %v6496_v57 = vld [vmem:[%s7163_s4 + $0x18] sm:$0x7] (%p1882_p13) }
 0x3a7   : >> { %3780 = vst.msk [vmem:[%s6443_s23 + $0x4a] sm:$0xff] %vm327_vm3, %v2540_v6  ;;  %v2446_v5 = vpop.f32.mrf.mxu0  ;;  %7441 = vst [vmem:[#allocation8_spill] sm:$0xff] (%p1882_p13), %v6496_v57  ;;  %v6506_v40 = vld [vmem:[%s7163_s4 + $0x20] sm:$0x7] (%p1882_p13)  ;;  %v6521_v14 = vld [vmem:[%s7164_s5 + $0x48] sm:$0xf] (%p1882_p13) }
 0x3a8   : >> { %v2538_v44 = vsel %vm2506_vm10, %v2444_v49, %v2522_v23  ;;  %vm2509_vm11 = vcmp.ge.f32.partialorder %v2455_v7, 0.0  ;;  %v2525_v10 = vmul.f32 0.01, %v2455_v7  ;;  %v2447_v48 = vadd.f32 %v7440_v21, %v2446_v5  ;;  %7443 = vst [vmem:[#allocation10_spill] sm:$0xff] (%p1882_p13), %v6506_v40  ;;  %v6511_v49 = vld [vmem:[%s7164_s5 + $0x40] sm:$0xf] (%p1882_p13) }
 0x3a9   : >> { %3778 = vst.msk [vmem:[%s6443_s23 + $0x32] sm:$0xff] %vm327_vm3, %v2538_v44  ;;  %7444 = vst [vmem:[#allocation11_spill] sm:$0xff] (%p1882_p13), %v6511_v49  ;;  %v6526_v6 = vld [vmem:[%s7164_s5 + $0x4c] sm:$0xf] (%p1882_p13)  ;;  %v6531_v23 = vld [vmem:[%s7164_s5 + $0x50] sm:$0xf] (%p1882_p13) }
 0x3aa   : >> { %v4035_v33 = vpop.f32.mrf.mxu1  ;;  %v2541_v15 = vsel %vm2509_vm11, %v2455_v7, %v2525_v10  ;;  %vm2507_vm12 = vcmp.ge.f32.partialorder %v2447_v48, 0.0  ;;  %v2523_v46 = vmul.f32 0.01, %v2447_v48  ;;  %7446 = vst [vmem:[#allocation33_spill] sm:$0xff] (%p1882_p13), %v6521_v14  ;;  %7447 = vst [vmem:[#allocation34_spill] sm:$0xff] (%p1882_p13), %v6526_v6 }
 0x3ab   : >> { %v2484_v9 = vadd.f32 %v4035_v33, %v7440_v21  ;;  %3781 = vst.msk [vmem:[%s6443_s23 + $0x52] sm:$0xff] %vm327_vm3, %v2541_v15  ;;  %7448 = vst [vmem:[#allocation35_spill] sm:$0xff] (%p1882_p13), %v6531_v23  ;;  %v6536_v7 = vld [vmem:[%s7164_s5 + $0x54] sm:$0xf] (%p1882_p13)  ;;  %v6541_v5 = vld [vmem:[%s7164_s5 + $0x58] sm:$0xf] (%p1882_p13) }
 0x3ac   : >> { %v2475_v17 = vpop.f32.mrf.mxu1  ;;  %v2539_v56 = vsel %vm2507_vm12, %v2447_v48, %v2523_v46  ;;  %7449 = vst [vmem:[#allocation36_spill] sm:$0xff] (%p1882_p13), %v6536_v7  ;;  %7450 = vst [vmem:[#allocation37_spill] sm:$0xff] (%p1882_p13), %v6541_v5  ;;  %v6546_v44 = vld [vmem:[%s7164_s5 + $0x5c] sm:$0xf] (%p1882_p13)  ;;  %v6551_v10 = vld [vmem:[%s7165_s6 + $0x2] ss:$0 sm:$0xff] (%p1882_p13) }
 0x3ad   : >> { %vm2516_vm13 = vcmp.ge.f32.partialorder %v2484_v9, 0.0  ;;  %v2532_v50 = vmul.f32 0.01, %v2484_v9  ;;  %v2476_v39 = vadd.f32 %v7440_v21, %v2475_v17  ;;  %3779 = vst.msk [vmem:[%s6443_s23 + $0x3a] sm:$0xff] %vm327_vm3, %v2539_v56  ;;  %7451 = vst [vmem:[#allocation38_spill] sm:$0xff] (%p1882_p13), %v6546_v44 }
 0x3ae   : >> { %v4036_v51 = vpop.f32.mrf.mxu1  ;;  %7452 = vst [vmem:[#allocation39_spill] sm:$0xff] (%p1882_p13), %v6551_v10 }
 0x3af   : >> { %v2548_v3 = vsel %vm2516_vm13, %v2484_v9, %v2532_v50  ;;  %vm2514_vm14 = vcmp.ge.f32.partialorder %v2476_v39, 0.0  ;;  %v2530_v28 = vmul.f32 0.01, %v2476_v39  ;;  %v2487_v31 = vadd.f32 %v4036_v51, %v7440_v21 }
 0x3b0   : >> { %3788 = vst.msk [vmem:[%s6443_s23 + $0xaa] sm:$0xff] %vm327_vm3, %v2548_v3  ;;  %v2478_v61 = vpop.f32.mrf.mxu1 }
 0x3b1   : >> { %v2546_v25 = vsel %vm2514_vm14, %v2476_v39, %v2530_v28  ;;  %vm2517_vm15 = vcmp.ge.f32.partialorder %v2487_v31, 0.0  ;;  %v2533_v34 = vmul.f32 0.01, %v2487_v31  ;;  %v2479_v16 = vadd.f32 %v7440_v21, %v2478_v61 }
 0x3b2   : >> { %3786 = vst.msk [vmem:[%s6443_s23 + $0x92] sm:$0xff] %vm327_vm3, %v2546_v25 }
 0x3b3   : >> { %v2549_v62 = vsel %vm2517_vm15, %v2487_v31, %v2533_v34  ;;  %vm2515_vm1 = vcmp.ge.f32.partialorder %v2479_v16, 0.0  ;;  %v2531_v27 = vmul.f32 0.01, %v2479_v16 }
 0x3b4   : >> { %3789 = vst.msk [vmem:[%s6443_s23 + $0xb2] sm:$0xff] %vm327_vm3, %v2549_v62 }
 0x3b5   : >> { %v2547_v8 = vsel %vm2515_vm1, %v2479_v16, %v2531_v27 }
 0x3b6   : >> { %3787 = vst.msk [vmem:[%s6443_s23 + $0x9a] sm:$0xff] %vm327_vm3, %v2547_v8 }
 0x3c4   : >> { %v4031_v37 = vpop.f32.mrf.mxu0 }
 0x3c5   : >> { %v2468_v26 = vadd.f32 %v4031_v37, %v7440_v21 }
 0x3c6   : >> { %v2459_v29 = vpop.f32.mrf.mxu0 }
 0x3c7   : >> { %vm2512_vm2 = vcmp.ge.f32.partialorder %v2468_v26, 0.0  ;;  %v2528_v43 = vmul.f32 0.01, %v2468_v26  ;;  %v2460_v55 = vadd.f32 %v7440_v21, %v2459_v29 }
 0x3c8   : >> { %v4032_v13 = vpop.f32.mrf.mxu0 }
 0x3c9   : >> { %v2544_v30 = vsel %vm2512_vm2, %v2468_v26, %v2528_v43  ;;  %vm2510_vm4 = vcmp.ge.f32.partialorder %v2460_v55, 0.0  ;;  %v2526_v41 = vmul.f32 0.01, %v2460_v55  ;;  %v2471_v0 = vadd.f32 %v4032_v13, %v7440_v21 }
 0x3ca   : >> { %3784 = vst.msk [vmem:[%s6443_s23 + $0x7a] sm:$0xff] %vm327_vm3, %v2544_v30  ;;  %v2462_v45 = vpop.f32.mrf.mxu0 }
 0x3cb   : >> { %v2542_v1 = vsel %vm2510_vm4, %v2460_v55, %v2526_v41  ;;  %vm2513_vm5 = vcmp.ge.f32.partialorder %v2471_v0, 0.0  ;;  %v2529_v35 = vmul.f32 0.01, %v2471_v0  ;;  %v2463_v12 = vadd.f32 %v7440_v21, %v2462_v45 }
 0x3cc   : >> { %3782 = vst.msk [vmem:[%s6443_s23 + $0x62] sm:$0xff] %vm327_vm3, %v2542_v1 }
 0x3cd   : >> { %v4039_v2 = vpop.f32.mrf.mxu1  ;;  %v2545_v58 = vsel %vm2513_vm5, %v2471_v0, %v2529_v35  ;;  %vm2511_vm6 = vcmp.ge.f32.partialorder %v2463_v12, 0.0  ;;  %v2527_v19 = vmul.f32 0.01, %v2463_v12 }
 0x3ce   : >> { %v2500_v36 = vadd.f32 %v4039_v2, %v7440_v21  ;;  %3785 = vst.msk [vmem:[%s6443_s23 + $0x82] sm:$0xff] %vm327_vm3, %v2545_v58 }
 0x3cf   : >> { %v2491_v63 = vpop.f32.mrf.mxu1  ;;  %v2543_v24 = vsel %vm2511_vm6, %v2463_v12, %v2527_v19 }
 0x3d0   : >> { %vm2520_vm7 = vcmp.ge.f32.partialorder %v2500_v36, 0.0  ;;  %v2536_v54 = vmul.f32 0.01, %v2500_v36  ;;  %v2492_v38 = vadd.f32 %v7440_v21, %v2491_v63  ;;  %3783 = vst.msk [vmem:[%s6443_s23 + $0x6a] sm:$0xff] %vm327_vm3, %v2543_v24 }
 0x3d1   : >> { %v4040_v52 = vpop.f32.mrf.mxu1 }
 0x3d2   : >> { %v2552_v22 = vsel %vm2520_vm7, %v2500_v36, %v2536_v54  ;;  %vm2518_vm8 = vcmp.ge.f32.partialorder %v2492_v38, 0.0  ;;  %v2534_v4 = vmul.f32 0.01, %v2492_v38  ;;  %v2503_v20 = vadd.f32 %v4040_v52, %v7440_v21 }
 0x3d3   : >> { %3792 = vst.msk [vmem:[%s6443_s23 + $0xda] sm:$0xff] %vm327_vm3, %v2552_v22  ;;  %v2494_v59 = vpop.f32.mrf.mxu1 }
 0x3d4   : >> { %v2550_v11 = vsel %vm2518_vm8, %v2492_v38, %v2534_v4  ;;  %vm2521_vm0 = vcmp.ge.f32.partialorder %v2503_v20, 0.0  ;;  %v2537_v18 = vmul.f32 0.01, %v2503_v20  ;;  %v2495_v47 = vadd.f32 %v7440_v21, %v2494_v59  ;;  %v6516_v21 = vld [vmem:[%s7164_s5 + $0x44] sm:$0xf] (%p1882_p13) }
 0x3d5   : >> { %3790 = vst.msk [vmem:[%s6443_s23 + $0xc2] sm:$0xff] %vm327_vm3, %v2550_v11  ;;  %1884 = sbr.rel (!%p1882_p13) target bundleno = 692 (0x2b4), region = 161  ;;  %7445 = vst [vmem:[#allocation12_spill] sm:$0xff] (%p1882_p13), %v6516_v21 }
 0x3d6   : >> { %v2553_v60 = vsel %vm2521_vm0, %v2503_v20, %v2537_v18  ;;  %vm2519_vm9 = vcmp.ge.f32.partialorder %v2495_v47, 0.0  ;;  %v2535_v42 = vmul.f32 0.01, %v2495_v47 }
 0x3d7   : >> { %3793 = vst.msk [vmem:[%s6443_s23 + $0xe2] sm:$0xff] %vm327_vm3, %v2553_v60 }
 0x3d8   : >> { %v2551_v53 = vsel %vm2519_vm9, %v2495_v47, %v2535_v42 }
 0x3d9   : >> { %3791 = vst.msk [vmem:[%s6443_s23 + $0xca] sm:$0xff] %vm327_vm3, %v2551_v53 }
 0x3da LB: >> { %v7453_v57 = vld [vmem:[#allocation8_spill] sm:$0xff]  ;;  %v7454_v40 = vld [vmem:[#allocation10_spill] sm:$0xff]  ;;  %v7455_v32 = vld [vmem:[#allocation9_spill] sm:$0xff]  ;;  %s3807_s14 = smul.u32 192, %s4259_s8  ;;  %s3928_s17 = sshll.u32 %s4259_s8, 7  ;;  %s4259_s8 = sphi %s6553_s8, %s2591_s8  }
 0x3db   : >> { %v7456_v44 = vld [vmem:[#allocation38_spill] sm:$0xff]  ;;  %v7457_v5 = vld [vmem:[#allocation37_spill] sm:$0xff]  ;;  %v7458_v7 = vld [vmem:[#allocation36_spill] sm:$0xff]  ;;  %s7054_s20 = scalar_lea.vmem %s271_s18, %s3928_s17 [#allocation5]  ;;  %s2591_s8 = sadd.s32 1, %s4259_s8  }
 0x3dc   : >> { %v3912_v48 = vcombine.low %v7457_v5, %v7456_v44  ;;  %v7459_v23 = vld [vmem:[#allocation35_spill] sm:$0xff]  ;;  %v7460_v15 = vld [vmem:[#allocation13_spill] sm:$0xff]  ;;  %v7462_v56 = vld [vmem:[#allocation15_spill] sm:$0xff]  ;;  %s6585_s15 = scalar_lea.vmem [#allocation3], %s3807_s14  ;;  %p2588_p0 = scmp.ge.s32.totalorder %s2591_s8, 2  }
 0x3dd   : >> { %v3911_v33 = vcombine.low %v7459_v23, %v7458_v7  ;;  %v6565_v46 = vrot.slane %v7453_v57, %v7460_v15  ;;  %v7461_v9 = vld [vmem:[#allocation14_spill] sm:$0xff]  ;;  %v6573_v50 = vrot.slane %v7453_v57, %v7462_v56  ;;  %v7463_v6 = vld [vmem:[#allocation34_spill] sm:$0xff]  ;;  %v7464_v14 = vld [vmem:[#allocation33_spill] sm:$0xff]  ;;  %v6579_v51 = vrot.slane %v7455_v32, %v7460_v15  ;;  %s3929_s21 = sshll.u32 (%p2588_p0), %s4326_s28, 12  ;;  %s3244_s29 = sshll.u32 (%p2588_p0), %s271_s18, 4  ;;  %s7115_s29 = int_to_ptr.vmem [resolvable:$true] %s3244_s29 }
 0x3de   : >> { %4041 = vmatprep.subr.bf16.mxu0 %v3912_v48  ;;  %4083 = vmatprep.subr.bf16.mxu1 %v3912_v48  ;;  %v6569_v17 = vrot.slane %v7453_v57, %v7461_v9  ;;  %v3910_v39 = vcombine.low %v7464_v14, %v7463_v6  ;;  %v7465_v21 = vld [vmem:[#allocation12_spill] sm:$0xff]  ;;  %v7466_v49 = vld [vmem:[#allocation11_spill] sm:$0xff]  ;;  %v6592_v25 = vrot.slane %v7455_v32, %v7461_v9  ;;  %s7111_s23 = scalar_lea.hbm (%p2588_p0), %s7166_s7, %s3929_s21  ;;  %s7119_s9 = scalar_lea.sflag (%p2588_p0), [#allocation6], %s269_s13 }
 0x3df   : >> { %4042 = vmatpush3.bf16.msra.mxu0 %v3912_v48  ;;  %4087 = vmatpush3.bf16.msra.mxu1 %v3912_v48  ;;  %v6583_v3 = vcombine.low %v7466_v49, %v7465_v21  ;;  %v6596_v34 = vrot.slane %v7455_v32, %v7462_v56  ;;  %v6600_v16 = vrot.slane %v7454_v40, %v7460_v15  ;;  %s4167_s8 = scalar_lea.vmem (%p2588_p0), %s7115_s29, 4096  ;;  %s4262_s28 = smov (%p2588_p0), [#allocation5]  }
 0x3e0   : >> { %4043 = vmatprep.subr.bf16.mxu0 %v3911_v33  ;;  %4084 = vmatprep.subr.bf16.mxu1 %v3911_v33  ;;  %v2595_v28 = vld [vmem:[%s6585_s15] sm:$0xff]  ;;  %v2596_v31 = vld [vmem:[%s6585_s15 + $0x8] sm:$0xff]  ;;  %v6610_v43 = vrot.slane %v7454_v40, %v7461_v9  ;;  %v6616_v41 = vld [vmem:[%s6585_s15 + $0x30] sm:$0xff]  ;;  %v6637_v19 = vrot.slane %v7454_v40, %v7462_v56  ;;  %p4168_p1 = scmp.ne.s32.totalorder (%p2588_p0), %s7115_s29, %s4167_s8  ;;  %s4171_s14 = sshll.u32 (%p2588_p0), %s4262_s28, 4  ;;  %s4172_s14 = int_to_ptr.vmem [resolvable:$false] %s4171_s14 }
 0x3e1   : >> { %v2631_v61 = vld [vmem:[%s6585_s15 + $0x2] sm:$0xff]  ;;  %v2615_v62 = vmul.f32 %v6565_v46, %v2595_v28  ;;  %v2616_v27 = vmul.f32 %v6565_v46, %v2596_v31  ;;  %v2632_v8 = vld [vmem:[%s6585_s15 + $0xa] sm:$0xff]  ;;  %v6619_v0 = vld [vmem:[%s6585_s15 + $0x38] sm:$0xff]  ;;  %v2758_v35 = vmul.f32 %v6616_v41, %v6579_v51  ;;  %p4174_p4 = scmp.lt.s32.totalorder (%p2588_p0), %s7115_s29, %s4172_s14 }
 0x3e2   : >> { %v2651_v37 = vmul.f32 %v6569_v17, %v2631_v61  ;;  %v2683_v26 = vld [vmem:[%s6585_s15 + $0x4] sm:$0xff]  ;;  %v2684_v29 = vld [vmem:[%s6585_s15 + $0xc] sm:$0xff]  ;;  %v2652_v55 = vmul.f32 %v6569_v17, %v2632_v8  ;;  %v6627_v12 = vld [vmem:[%s6585_s15 + $0x3a] sm:$0xff]  ;;  %v2759_v63 = vmul.f32 %v6619_v0, %v6579_v51  ;;  %p4169_p2 = pnand (%p2588_p0), %p4168_p1, %p4343_p5 }
 0x3e3   : >> { %4044 = vmatpush3.bf16.msra.mxu0 %v3911_v33  ;;  %4088 = vmatpush3.bf16.msra.mxu1 %v3911_v33  ;;  %v2703_v13 = vmul.f32 %v6573_v50, %v2683_v26  ;;  %v2704_v30 = vmul.f32 %v6573_v50, %v2684_v29  ;;  %v6622_v45 = vld [vmem:[%s6585_s15 + $0x32] sm:$0xff]  ;;  %v6633_v58 = vld [vmem:[%s6585_s15 + $0x3c] sm:$0xff]  ;;  %v2811_v54 = vmul.f32 %v6627_v12, %v6592_v25  ;;  %v6653_v20 = vld [vmem:[%s6585_s15 + $0x68] sm:$0xff] }
 0x3e4   : >> { %4045 = vmatprep.subr.bf16.mxu0 %v3910_v39  ;;  %4085 = vmatprep.subr.bf16.mxu1 %v3910_v39  ;;  %v2667_v1 = vadd.f32 %v2651_v37, %v2615_v62  ;;  %v6630_v2 = vld [vmem:[%s6585_s15 + $0x34] sm:$0xff]  ;;  %v2668_v36 = vadd.f32 %v2652_v55, %v2616_v27  ;;  %v2810_v24 = vmul.f32 %v6622_v45, %v6592_v25  ;;  %v6646_v38 = vld [vmem:[%s6585_s15 + $0x60] sm:$0xff]  ;;  %v6663_v60 = vld [vmem:[%s6585_s15 + $0x6a] sm:$0xff]  ;;  %p4170_p3 = pneg (%p2588_p0), %p4169_p2 }
 0x3e5   : >> { %v2862_v22 = vmul.f32 %v6630_v2, %v6596_v34  ;;  %v2863_v4 = vmul.f32 %v6633_v58, %v6596_v34  ;;  %v2917_v59 = vmul.f32 %v6646_v38, %v6600_v16  ;;  %v6658_v11 = vld [vmem:[%s6585_s15 + $0x62] sm:$0xff]  ;;  %v2918_v47 = vmul.f32 %v6653_v20, %v6600_v16  ;;  %v6671_v48 = vld [vmem:[%s6585_s15 + $0x6c] sm:$0xff]  ;;  %v6689_v62 = vld [vmem:[%s6585_s15 + $0x98] sm:$0xff] }
 0x3e6   : >> { %v2719_v52 = vadd.f32 %v2703_v13, %v2667_v1  ;;  %v2720_v18 = vadd.f32 %v2704_v30, %v2668_v36  ;;  %v2969_v42 = vmul.f32 %v6658_v11, %v6610_v43  ;;  %v6668_v53 = vld [vmem:[%s6585_s15 + $0x64] sm:$0xff]  ;;  %v2970_v15 = vmul.f32 %v6663_v60, %v6610_v43  ;;  %v6680_v56 = vld [vmem:[%s6585_s15 + $0x90] sm:$0xff]  ;;  %v6701_v55 = vld [vmem:[%s6585_s15 + $0x9a] sm:$0xff] }
 0x3e7   : >> { %4046 = vmatpush3.bf16.msra.mxu0 %v3910_v39  ;;  %4089 = vmatpush3.bf16.msra.mxu1 %v3910_v39  ;;  %v3021_v9 = vmul.f32 %v6668_v53, %v6637_v19  ;;  %v2623_v28 = vmul.f32 %v6646_v38, %v6565_v46  ;;  %v2624_v31 = vmul.f32 %v6653_v20, %v6565_v46  ;;  %v6698_v29 = vld [vmem:[%s6585_s15 + $0x92] sm:$0xff]  ;;  %v6711_v36 = vld [vmem:[%s6585_s15 + $0x9c] sm:$0xff]  ;;  %v6771_v10 = vld [vmem:[%s6585_s15 + $0x4a] sm:$0xff] }
 0x3e8   : >> { %4047 = vmatprep.subr.bf16.mxu0 %v6583_v3  ;;  %4086 = vmatprep.subr.bf16.mxu1 %v6583_v3  ;;  %v2774_v33 = vadd.f32 %v2758_v35, %v2719_v52  ;;  %v2775_v39 = vadd.f32 %v2759_v63, %v2720_v18  ;;  %v2659_v61 = vmul.f32 %v6658_v11, %v6569_v17  ;;  %v6708_v35 = vld [vmem:[%s6585_s15 + $0x94] sm:$0xff]  ;;  %v6721_v18 = vld [vmem:[%s6585_s15 + $0xc8] sm:$0xff] }
 0x3e9   : >> { %v2660_v8 = vmul.f32 %v6663_v60, %v6569_v17  ;;  %v2711_v37 = vmul.f32 %v6668_v53, %v6573_v50  ;;  %v2712_v26 = vmul.f32 %v6671_v48, %v6573_v50  ;;  %v2766_v1 = vmul.f32 %v6680_v56, %v6579_v51  ;;  %v6763_v57 = vld [vmem:[%s6585_s15 + $0x50] sm:$0xff]  ;;  %7467 = vst [vmem:[#allocation70_spill] sm:$0xff] %v6771_v10 }
 0x3ea   : >> { %v2826_v27 = vadd.f32 %v2810_v24, %v2774_v33  ;;  %v2827_v13 = vadd.f32 %v2811_v54, %v2775_v39  ;;  %v2675_v30 = vadd.f32 %v2659_v61, %v2623_v28  ;;  %v3022_v24 = vmul.f32 %v6671_v48, %v6637_v19  ;;  %v6718_v54 = vld [vmem:[%s6585_s15 + $0xc0] sm:$0xff] }
 0x3eb   : >> { %4048 = vmatpush3.bf16.msra.mxu0 %v6583_v3  ;;  %4090 = vmatpush3.bf16.msra.mxu1 %v6583_v3  ;;  %v2676_v52 = vadd.f32 %v2660_v8, %v2624_v31  ;;  %v2767_v3 = vmul.f32 %v6689_v62, %v6579_v51  ;;  %v2819_v28 = vmul.f32 %v6701_v55, %v6592_v25  ;;  %v6728_v61 = vld [vmem:[%s6585_s15 + $0xc2] sm:$0xff]  ;;  %v6731_v31 = vld [vmem:[%s6585_s15 + $0xca] sm:$0xff] }
 0x3ec   : >> { %v2878_v63 = vadd.f32 %v2862_v22, %v2826_v27  ;;  %v2879_v33 = vadd.f32 %v2863_v4, %v2827_v13  ;;  %v2727_v39 = vadd.f32 %v2711_v37, %v2675_v30  ;;  %v2818_v22 = vmul.f32 %v6698_v29, %v6592_v25  ;;  %v6738_v13 = vld [vmem:[%s6585_s15 + $0xc4] sm:$0xff]  ;;  %v2597_v30 = vld [vmem:[%s6585_s15 + $0x18] sm:$0xff] }
 0x3ed   : >> { %v2728_v8 = vadd.f32 %v2712_v26, %v2676_v52  ;;  %v2870_v4 = vmul.f32 %v6708_v35, %v6596_v34  ;;  %v2871_v37 = vmul.f32 %v6711_v36, %v6596_v34  ;;  %v2925_v7 = vmul.f32 %v6718_v54, %v6600_v16  ;;  %v2598_v26 = vld [vmem:[%s6585_s15 + $0x20] sm:$0xff] }
 0x3ee   : >> { %v2933_v27 = vadd.f32 %v2917_v59, %v2878_v63  ;;  %v2934_v5 = vadd.f32 %v2918_v47, %v2879_v33  ;;  %v2782_v6 = vadd.f32 %v2766_v1, %v2727_v39  ;;  %v2926_v59 = vmul.f32 %v6721_v18, %v6600_v16  ;;  %v2633_v63 = vld [vmem:[%s6585_s15 + $0x1a] sm:$0xff]  ;;  %v2634_v1 = vld [vmem:[%s6585_s15 + $0x22] sm:$0xff] }
 0x3ef   : >> { %v2783_v14 = vadd.f32 %v2767_v3, %v2728_v8  ;;  %v2977_v21 = vmul.f32 %v6728_v61, %v6610_v43  ;;  %v2978_v47 = vmul.f32 %v6731_v31, %v6610_v43  ;;  %v2685_v33 = vld [vmem:[%s6585_s15 + $0x1c] sm:$0xff]  ;;  %v3029_v32 = vmul.f32 %v6738_v13, %v6637_v19 }
 0x3f0   : >> { %v2985_v52 = vadd.f32 %v2969_v42, %v2933_v27  ;;  %v2986_v39 = vadd.f32 %v2970_v15, %v2934_v5  ;;  %v2834_v23 = vadd.f32 %v2818_v22, %v2782_v6  ;;  %v2617_v40 = vmul.f32 %v6565_v46, %v2597_v30  ;;  %v2686_v42 = vld [vmem:[%s6585_s15 + $0x24] sm:$0xff]  ;;  %v6766_v15 = vld [vmem:[%s6585_s15 + $0xcc] sm:$0xff] }
 0x3f1   : >> { %v6758_v27 = vld [vmem:[%s6585_s15 + $0x48] sm:$0xff]  ;;  %v2835_v8 = vadd.f32 %v2819_v28, %v2783_v14  ;;  %v2618_v44 = vmul.f32 %v6565_v46, %v2598_v26  ;;  %v2653_v49 = vmul.f32 %v6569_v17, %v2633_v63  ;;  %v2654_v22 = vmul.f32 %v6569_v17, %v2634_v1  ;;  %v6777_v26 = vld [vmem:[%s6585_s15 + $0x52] sm:$0xff] }
 0x3f2   : >> { %v3037_v3 = vadd.f32 %v3021_v9, %v2985_v52  ;;  %v3038_v5 = vadd.f32 %v3022_v24, %v2986_v39  ;;  %v2886_v6 = vadd.f32 %v2870_v4, %v2834_v23  ;;  %v2705_v30 = vmul.f32 %v6573_v50, %v2685_v33  ;;  %7468 = vst [vmem:[#allocation71_spill] sm:$0xff] %v6777_v26  ;;  %v6780_v24 = vld [vmem:[%s6585_s15 + $0x4c] sm:$0xff]  ;;  %v6785_v33 = vld [vmem:[%s6585_s15 + $0x54] sm:$0xff] }
 0x3f3   : >> { %v2887_v9 = vadd.f32 %v2871_v37, %v2835_v8  ;;  %v2669_v52 = vadd.f32 %v2653_v49, %v2617_v40  ;;  %v2706_v14 = vmul.f32 %v6573_v50, %v2686_v42  ;;  %v2760_v28 = vmul.f32 %v6758_v27, %v6579_v51  ;;  %7469 = vst [vmem:[#allocation72_spill] sm:$0xff] %v6780_v24 }
 0x3f4   : >> { %v3053_v23 = vpack.c.bf16 %v3038_v5, %v3037_v3  ;;  %v2941_v4 = vadd.f32 %v2925_v7, %v2886_v6  ;;  %v2670_v63 = vadd.f32 %v2654_v22, %v2618_v44  ;;  %v2761_v1 = vmul.f32 %v6763_v57, %v6579_v51  ;;  %7470 = vst [vmem:[#allocation73_spill] sm:$0xff] %v6785_v33  ;;  %v6802_v22 = vld [vmem:[%s6585_s15 + $0x80] sm:$0xff] }
 0x3f5   : >> { %v2942_v40 = vadd.f32 %v2926_v59, %v2887_v9  ;;  %v3030_v49 = vmul.f32 %v6766_v15, %v6637_v19  ;;  %v2721_v37 = vadd.f32 %v2705_v30, %v2669_v52  ;;  %v2812_v39 = vmul.f32 %v6771_v10, %v6592_v25  ;;  %v6797_v59 = vld [vmem:[%s6585_s15 + $0x78] sm:$0xff]  ;;  %7472 = vst [vmem:[#allocation75_spill] sm:$0xff] %v6802_v22 }
 0x3f6   : >> { %4049 = vmatprep.mubr.msk.bf16.mxu0 %vm327_vm3, %v3053_v23  ;;  %v2993_v7 = vadd.f32 %v2977_v21, %v2941_v4  ;;  %v2722_v44 = vadd.f32 %v2706_v14, %v2670_v63  ;;  %v2813_v42 = vmul.f32 %v6777_v26, %v6592_v25  ;;  %v2864_v3 = vmul.f32 %v6780_v24, %v6596_v34  ;;  %v6807_v30 = vld [vmem:[%s6585_s15 + $0x7a] sm:$0xff]  ;;  %v6812_v23 = vld [vmem:[%s6585_s15 + $0x82] sm:$0xff] }
 0x3f7   : >> { %7471 = vst [vmem:[#allocation74_spill] sm:$0xff] %v6797_v59  ;;  %v2994_v8 = vadd.f32 %v2978_v47, %v2942_v40  ;;  %v2776_v5 = vadd.f32 %v2760_v28, %v2721_v37  ;;  %v2865_v6 = vmul.f32 %v6785_v33, %v6596_v34  ;;  %v2919_v21 = vmul.f32 %v6797_v59, %v6600_v16  ;;  %v6817_v28 = vld [vmem:[%s6585_s15 + $0x7c] sm:$0xff]  ;;  %v6827_v37 = vld [vmem:[%s6585_s15 + $0xa8] sm:$0xff] }
 0x3f8   : >> { %7473 = vst [vmem:[#allocation76_spill] sm:$0xff] %v6807_v30  ;;  %v3045_v9 = vadd.f32 %v3029_v32, %v2993_v7  ;;  %v2777_v52 = vadd.f32 %v2761_v1, %v2722_v44  ;;  %v2920_v14 = vmul.f32 %v6802_v22, %v6600_v16  ;;  %7474 = vst [vmem:[#allocation77_spill] sm:$0xff] %v6812_v23  ;;  %v6822_v32 = vld [vmem:[%s6585_s15 + $0x84] sm:$0xff] }
 0x3f9   : >> { %v2971_v47 = vmul.f32 %v6807_v30, %v6610_v43  ;;  %7475 = vst [vmem:[#allocation78_spill] sm:$0xff] %v6817_v28  ;;  %v3046_v4 = vadd.f32 %v3030_v49, %v2994_v8  ;;  %v2828_v63 = vadd.f32 %v2812_v39, %v2776_v5  ;;  %v2972_v40 = vmul.f32 %v6812_v23, %v6610_v43  ;;  %v6836_v8 = vld [vmem:[%s6585_s15 + $0xb0] sm:$0xff] }
 0x3fa   : >> { %7476 = vst [vmem:[#allocation79_spill] sm:$0xff] %v6822_v32  ;;  %v3023_v1 = vmul.f32 %v6817_v28, %v6637_v19  ;;  %7477 = vst [vmem:[#allocation80_spill] sm:$0xff] %v6827_v37  ;;  %v2829_v7 = vadd.f32 %v2813_v42, %v2777_v52  ;;  %v2625_v44 = vmul.f32 %v6797_v59, %v6565_v46  ;;  %v6843_v52 = vld [vmem:[%s6585_s15 + $0xaa] sm:$0xff]  ;;  %v6846_v59 = vld [vmem:[%s6585_s15 + $0xb2] sm:$0xff] }
 0x3fb   : >> { %v2626_v49 = vmul.f32 %v6802_v22, %v6565_v46  ;;  %v2661_v39 = vmul.f32 %v6807_v30, %v6569_v17  ;;  %7478 = vst [vmem:[#allocation81_spill] sm:$0xff] %v6836_v8  ;;  %v3057_v5 = vpack.c.bf16 %v3046_v4, %v3045_v9  ;;  %v2880_v33 = vadd.f32 %v2864_v3, %v2828_v63  ;;  %v6853_v9 = vld [vmem:[%s6585_s15 + $0xac] sm:$0xff]  ;;  %v6856_v4 = vld [vmem:[%s6585_s15 + $0xb4] sm:$0xff] }
 0x3fc   : >> { %v2662_v24 = vmul.f32 %v6812_v23, %v6569_v17  ;;  %v2713_v42 = vmul.f32 %v6817_v28, %v6573_v50  ;;  %7479 = vst [vmem:[#allocation82_spill] sm:$0xff] %v6843_v52  ;;  %7480 = vst [vmem:[#allocation83_spill] sm:$0xff] %v6846_v59  ;;  %v2881_v22 = vadd.f32 %v2865_v6, %v2829_v7  ;;  %v6867_v28 = vld [vmem:[%s6585_s15 + $0xe0] sm:$0xff] }
 0x3fd   : >> { %v2677_v26 = vadd.f32 %v2661_v39, %v2625_v44  ;;  %v2714_v30 = vmul.f32 %v6822_v32, %v6573_v50  ;;  %v2768_v3 = vmul.f32 %v6827_v37, %v6579_v51  ;;  %7481 = vst [vmem:[#allocation84_spill] sm:$0xff] %v6856_v4  ;;  %4057 = vmatprep.mubr.msk.bf16.mxu1 %vm327_vm3, %v3057_v5  ;;  %v6864_v39 = vld [vmem:[%s6585_s15 + $0xd8] sm:$0xff]  ;;  %v6877_v5 = vld [vmem:[%s6585_s15 + $0xe2] sm:$0xff] }
 0x3fe   : >> { %v2935_v63 = vadd.f32 %v2919_v21, %v2880_v33  ;;  %v3024_v6 = vmul.f32 %v6822_v32, %v6637_v19  ;;  %v2678_v7 = vadd.f32 %v2662_v24, %v2626_v49  ;;  %v2769_v44 = vmul.f32 %v6836_v8, %v6579_v51  ;;  %v6874_v21 = vld [vmem:[%s6585_s15 + $0xda] sm:$0xff] }
 0x3ff   : >> { %v2936_v37 = vadd.f32 %v2920_v14, %v2881_v22  ;;  %v2729_v23 = vadd.f32 %v2713_v42, %v2677_v26  ;;  %v2820_v10 = vmul.f32 %v6843_v52, %v6592_v25  ;;  %v2821_v33 = vmul.f32 %v6846_v59, %v6592_v25  ;;  %v6884_v26 = vld [vmem:[%s6585_s15 + $0xdc] sm:$0xff] }
 0x400   : >> { %v2987_v24 = vadd.f32 %v2971_v47, %v2935_v63  ;;  %v2730_v49 = vadd.f32 %v2714_v30, %v2678_v7  ;;  %v2872_v8 = vmul.f32 %v6853_v9, %v6596_v34  ;;  %v2873_v22 = vmul.f32 %v6856_v4, %v6596_v34 }
 0x401   : >> { %v2988_v14 = vadd.f32 %v2972_v40, %v2936_v37  ;;  %v2784_v42 = vadd.f32 %v2768_v3, %v2729_v23  ;;  %v2927_v59 = vmul.f32 %v6864_v39, %v6600_v16  ;;  %v2928_v52 = vmul.f32 %v6867_v28, %v6600_v16  ;;  %v6899_v3 = vld [vmem:[%s6585_s15 + $0xe4] sm:$0xff] }
 0x402   : >> { %v3039_v32 = vadd.f32 %v3023_v1, %v2987_v24  ;;  %v2785_v47 = vadd.f32 %v2769_v44, %v2730_v49  ;;  %v2979_v30 = vmul.f32 %v6874_v21, %v6610_v43  ;;  %v2980_v63 = vmul.f32 %v6877_v5, %v6610_v43 }
 0x403   : >> { %v3040_v7 = vadd.f32 %v3024_v6, %v2988_v14  ;;  %v2836_v4 = vadd.f32 %v2820_v10, %v2784_v42  ;;  %v3031_v40 = vmul.f32 %v6884_v26, %v6637_v19  ;;  %v2619_v23 = vmul.f32 %v6616_v41, %v6565_v46 }
 0x404   : >> { %v2837_v37 = vadd.f32 %v2821_v33, %v2785_v47  ;;  %v2620_v1 = vmul.f32 %v6619_v0, %v6565_v46  ;;  %v2655_v44 = vmul.f32 %v6622_v45, %v6569_v17  ;;  %v2656_v24 = vmul.f32 %v6627_v12, %v6569_v17 }
 0x405   : >> { %v3054_v6 = vpack.c.bf16 %v3040_v7, %v3039_v32  ;;  %v2888_v10 = vadd.f32 %v2872_v8, %v2836_v4  ;;  %v2707_v49 = vmul.f32 %v6630_v2, %v6573_v50  ;;  %v2708_v41 = vmul.f32 %v6633_v58, %v6573_v50 }
 0x406   : >> { %v2889_v33 = vadd.f32 %v2873_v22, %v2837_v37  ;;  %v2671_v14 = vadd.f32 %v2655_v44, %v2619_v23  ;;  %v2672_v42 = vadd.f32 %v2656_v24, %v2620_v1  ;;  %v2762_v0 = vmul.f32 %v6646_v38, %v6579_v51 }
 0x407   : >> { %4050 = vmatmul.mubr.msk.bf16.vlgmr.msra.gmra.mxu0 %vm327_vm3, %v3054_v6  ;;  %v2943_v45 = vadd.f32 %v2927_v59, %v2888_v10  ;;  %v3032_v12 = vmul.f32 %v6899_v3, %v6637_v19  ;;  %v2763_v32 = vmul.f32 %v6653_v20, %v6579_v51  ;;  %v2814_v2 = vmul.f32 %v6658_v11, %v6592_v25 }
 0x408   : >> { %v2944_v8 = vadd.f32 %v2928_v52, %v2889_v33  ;;  %v2723_v58 = vadd.f32 %v2707_v49, %v2671_v14  ;;  %v2724_v4 = vadd.f32 %v2708_v41, %v2672_v42  ;;  %v2815_v22 = vmul.f32 %v6663_v60, %v6592_v25 }
 0x409   : >> { %v2995_v47 = vadd.f32 %v2979_v30, %v2943_v45  ;;  %v2866_v38 = vmul.f32 %v6668_v53, %v6596_v34  ;;  %v2867_v59 = vmul.f32 %v6671_v48, %v6596_v34  ;;  %v2921_v20 = vmul.f32 %v6680_v56, %v6600_v16 }
 0x40a   : >> { %v2996_v7 = vadd.f32 %v2980_v63, %v2944_v8  ;;  %v2778_v23 = vadd.f32 %v2762_v0, %v2723_v58  ;;  %v2779_v37 = vadd.f32 %v2763_v32, %v2724_v4  ;;  %v2922_v52 = vmul.f32 %v6689_v62, %v6600_v16  ;;  %v3873_v32 = vld [vmem:[%s6585_s15 + $0xf8] sm:$0xff] }
 0x40b   : >> { %v3047_v11 = vadd.f32 %v3031_v40, %v2995_v47  ;;  %v2973_v60 = vmul.f32 %v6698_v29, %v6610_v43  ;;  %v2974_v30 = vmul.f32 %v6701_v55, %v6610_v43  ;;  %v2627_v48 = vmul.f32 %v6680_v56, %v6565_v46  ;;  %v3888_v58 = vld [vmem:[%s6585_s15 + $0xf2] sm:$0xff]  ;;  %v3889_v4 = vld [vmem:[%s6585_s15 + $0xfa] sm:$0xff] }
 0x40c   : >> { %v3048_v53 = vadd.f32 %v3032_v12, %v2996_v7  ;;  %v2830_v1 = vadd.f32 %v2814_v2, %v2778_v23  ;;  %v2831_v44 = vadd.f32 %v2815_v22, %v2779_v37  ;;  %v2628_v63 = vmul.f32 %v6689_v62, %v6565_v46  ;;  %v3872_v12 = vld [vmem:[%s6585_s15 + $0xf0] sm:$0xff] }
 0x40d   : >> { %v2663_v40 = vmul.f32 %v6698_v29, %v6569_v17  ;;  %v2664_v24 = vmul.f32 %v6701_v55, %v6569_v17  ;;  %v2715_v6 = vmul.f32 %v6708_v35, %v6573_v50  ;;  %v2716_v56 = vmul.f32 %v6711_v36, %v6573_v50 }
 0x40e   : >> { %v3058_v10 = vpack.c.bf16 %v3048_v53, %v3047_v11  ;;  %v2882_v49 = vadd.f32 %v2866_v38, %v2830_v1  ;;  %v2883_v41 = vadd.f32 %v2867_v59, %v2831_v44  ;;  %v2770_v29 = vmul.f32 %v6718_v54, %v6579_v51  ;;  %v3904_v11 = vld [vmem:[%s6585_s15 + $0xf4] sm:$0xff]  ;;  %v3905_v53 = vld [vmem:[%s6585_s15 + $0xfc] sm:$0xff] }
 0x40f   : >> { %v2679_v33 = vadd.f32 %v2663_v40, %v2627_v48  ;;  %v2680_v62 = vadd.f32 %v2664_v24, %v2628_v63  ;;  %v2771_v55 = vmul.f32 %v6721_v18, %v6579_v51  ;;  %v3025_v0 = vmul.f32 %v6708_v35, %v6637_v19  ;;  %v7482_v1 = vld [vmem:[#allocation70_spill] sm:$0xff]  ;;  %v7483_v48 = vld [vmem:[#allocation71_spill] sm:$0xff]  ;;  %v7484_v40 = vld [vmem:[#allocation72_spill] sm:$0xff] }
 0x410   : >> { %4058 = vmatmul.mubr.msk.bf16.vlgmr.msra.gmra.mxu1 %vm327_vm3, %v3058_v10  ;;  %v2937_v14 = vadd.f32 %v2921_v20, %v2882_v49  ;;  %v2938_v42 = vadd.f32 %v2922_v52, %v2883_v41  ;;  %v3026_v45 = vmul.f32 %v6711_v36, %v6637_v19  ;;  %v2822_v54 = vmul.f32 %v6728_v61, %v6592_v25 }
 0x411   : >> { %v2731_v2 = vadd.f32 %v2715_v6, %v2679_v33  ;;  %v2732_v8 = vadd.f32 %v2716_v56, %v2680_v62  ;;  %v2823_v18 = vmul.f32 %v6731_v31, %v6592_v25  ;;  %v2874_v35 = vmul.f32 %v6738_v13, %v6596_v34  ;;  %v7486_v33 = vld [vmem:[#allocation74_spill] sm:$0xff] }
 0x412   : >> { %v2989_v22 = vadd.f32 %v2973_v60, %v2937_v14  ;;  %v2990_v47 = vadd.f32 %v2974_v30, %v2938_v42  ;;  %v2875_v36 = vmul.f32 %v6766_v15, %v6596_v34  ;;  %v2929_v7 = vmul.f32 %v3872_v12, %v6600_v16 }
 0x413   : >> { %v2786_v38 = vadd.f32 %v2770_v29, %v2731_v2  ;;  %v2787_v59 = vadd.f32 %v2771_v55, %v2732_v8  ;;  %v2930_v61 = vmul.f32 %v3873_v32, %v6600_v16  ;;  %v2981_v31 = vmul.f32 %v3888_v58, %v6610_v43  ;;  %v7487_v29 = vld [vmem:[#allocation75_spill] sm:$0xff]  ;;  %v7489_v8 = vld [vmem:[#allocation77_spill] sm:$0xff] }
 0x414   : >> { %v3041_v23 = vadd.f32 %v3025_v0, %v2989_v22  ;;  %v3042_v37 = vadd.f32 %v3026_v45, %v2990_v47  ;;  %v2982_v20 = vmul.f32 %v3889_v4, %v6610_v43  ;;  %v2621_v13 = vmul.f32 %v6758_v27, %v6565_v46  ;;  %v7485_v27 = vld [vmem:[#allocation73_spill] sm:$0xff]  ;;  %v7488_v45 = vld [vmem:[#allocation76_spill] sm:$0xff]  ;;  %v7491_v47 = vld [vmem:[#allocation79_spill] sm:$0xff] }
 0x415   : >> { %v2838_v52 = vadd.f32 %v2822_v54, %v2786_v38  ;;  %v2839_v60 = vadd.f32 %v2823_v18, %v2787_v59  ;;  %v2622_v15 = vmul.f32 %v6763_v57, %v6565_v46  ;;  %v2657_v44 = vmul.f32 %v7482_v1, %v6569_v17  ;;  %v7490_v18 = vld [vmem:[#allocation78_spill] sm:$0xff] }
 0x416   : >> { %v3055_v30 = vpack.c.bf16 %v3042_v37, %v3041_v23  ;;  %v2658_v63 = vmul.f32 %v7483_v48, %v6569_v17  ;;  %v2709_v24 = vmul.f32 %v7484_v40, %v6573_v50  ;;  %v3033_v49 = vmul.f32 %v3904_v11, %v6637_v19  ;;  %v7494_v37 = vld [vmem:[#allocation82_spill] sm:$0xff]  ;;  %v7496_v40 = vld [vmem:[#allocation84_spill] sm:$0xff] }
 0x417   : >> { %v2890_v6 = vadd.f32 %v2874_v35, %v2838_v52  ;;  %v2891_v10 = vadd.f32 %v2875_v36, %v2839_v60  ;;  %v2710_v41 = vmul.f32 %v7485_v27, %v6573_v50  ;;  %v2673_v57 = vadd.f32 %v2657_v44, %v2621_v13  ;;  %v7492_v36 = vld [vmem:[#allocation80_spill] sm:$0xff]  ;;  %v7495_v13 = vld [vmem:[#allocation83_spill] sm:$0xff] }
 0x418   : >> { %4053 = vmatprep.mubr.msk.bf16.mxu0 %vm327_vm3, %v3055_v30  ;;  %v2674_v56 = vadd.f32 %v2658_v63, %v2622_v15  ;;  %v2764_v62 = vmul.f32 %v7486_v33, %v6579_v51  ;;  %v2765_v55 = vmul.f32 %v7487_v29, %v6579_v51  ;;  %v3034_v0 = vmul.f32 %v3905_v53, %v6637_v19 }
 0x419   : >> { %v2945_v14 = vadd.f32 %v2929_v7, %v2890_v6  ;;  %v2946_v42 = vadd.f32 %v2930_v61, %v2891_v10  ;;  %v2816_v12 = vmul.f32 %v7488_v45, %v6592_v25  ;;  %v2725_v32 = vadd.f32 %v2709_v24, %v2673_v57  ;;  %v7493_v61 = vld [vmem:[#allocation81_spill] sm:$0xff] }
 0x41a   : >> { %v2726_v2 = vadd.f32 %v2710_v41, %v2674_v56  ;;  %v2817_v54 = vmul.f32 %v7489_v8, %v6592_v25  ;;  %v2868_v58 = vmul.f32 %v7490_v18, %v6596_v34  ;;  %v2869_v35 = vmul.f32 %v7491_v47, %v6596_v34  ;;  %v3906_v18 = vld [vmem:[%s6585_s15 + $0x10c] sm:$0xff] }
 0x41b   : >> { %v2997_v4 = vadd.f32 %v2981_v31, %v2945_v14  ;;  %v2998_v22 = vadd.f32 %v2982_v20, %v2946_v42  ;;  %v2923_v38 = vmul.f32 %v7492_v36, %v6600_v16  ;;  %v2780_v59 = vadd.f32 %v2764_v62, %v2725_v32 }
 0x41c   : >> { %v2781_v7 = vadd.f32 %v2765_v55, %v2726_v2  ;;  %v2924_v23 = vmul.f32 %v7493_v61, %v6600_v16  ;;  %v2975_v11 = vmul.f32 %v7494_v37, %v6610_v43  ;;  %v2976_v31 = vmul.f32 %v7495_v13, %v6610_v43 }
 0x41d   : >> { %v3049_v52 = vadd.f32 %v3033_v49, %v2997_v4  ;;  %v3050_v60 = vadd.f32 %v3034_v0, %v2998_v22  ;;  %v2629_v20 = vmul.f32 %v7492_v36, %v6565_v46  ;;  %v2832_v15 = vadd.f32 %v2816_v12, %v2780_v59  ;;  %v3907_v22 = vld [vmem:[%s6585_s15 + $0x114] sm:$0xff] }
 0x41e   : >> { %v2833_v30 = vadd.f32 %v2817_v54, %v2781_v7  ;;  %v2630_v53 = vmul.f32 %v7493_v61, %v6565_v46  ;;  %v2665_v1 = vmul.f32 %v7494_v37, %v6569_v17  ;;  %v2666_v48 = vmul.f32 %v7495_v13, %v6569_v17 }
 0x41f   : >> { %v3059_v44 = vpack.c.bf16 %v3050_v60, %v3049_v52  ;;  %v2717_v63 = vmul.f32 %v6853_v9, %v6573_v50  ;;  %v2718_v24 = vmul.f32 %v7496_v40, %v6573_v50  ;;  %v2884_v6 = vadd.f32 %v2868_v58, %v2832_v15 }
 0x420   : >> { %v2885_v10 = vadd.f32 %v2869_v35, %v2833_v30  ;;  %v2681_v49 = vadd.f32 %v2665_v1, %v2629_v20  ;;  %v2772_v46 = vmul.f32 %v6864_v39, %v6579_v51  ;;  %v3027_v27 = vmul.f32 %v6853_v9, %v6637_v19  ;;  %v3874_v9 = vld [vmem:[%s6585_s15 + $0x108] sm:$0xff] }
 0x421   : >> { %4061 = vmatprep.mubr.msk.bf16.mxu1 %vm327_vm3, %v3059_v44  ;;  %v3028_v17 = vmul.f32 %v7496_v40, %v6637_v19  ;;  %v2682_v41 = vadd.f32 %v2666_v48, %v2630_v53  ;;  %v2773_v50 = vmul.f32 %v6867_v28, %v6579_v51  ;;  %v2939_v57 = vadd.f32 %v2923_v38, %v2884_v6  ;;  %v3875_v51 = vld [vmem:[%s6585_s15 + $0x110] sm:$0xff] }
 0x422   : >> { %v2940_v56 = vadd.f32 %v2924_v23, %v2885_v10  ;;  %v2733_v33 = vadd.f32 %v2717_v63, %v2681_v49  ;;  %v2824_v39 = vmul.f32 %v6874_v21, %v6592_v25  ;;  %v2825_v29 = vmul.f32 %v6877_v5, %v6592_v25  ;;  %v3890_v21 = vld [vmem:[%s6585_s15 + $0x10a] sm:$0xff]  ;;  %v3891_v5 = vld [vmem:[%s6585_s15 + $0x112] sm:$0xff]  ;;  %s4173_s15 = scalar_lea.vmem (%p2588_p0), %s4172_s14, 8192 }
 0x423   : >> { %v2734_v62 = vadd.f32 %v2718_v24, %v2682_v41  ;;  %v2991_v55 = vadd.f32 %v2975_v11, %v2939_v57  ;;  %v2876_v0 = vmul.f32 %v6884_v26, %v6596_v34  ;;  %v2877_v45 = vmul.f32 %v6899_v3, %v6596_v34  ;;  %p4175_p7 = scmp.lt.s32.totalorder (%p2588_p0), %s4173_s15, %s4167_s8 }
 0x424   : >> { %v2992_v14 = vadd.f32 %v2976_v31, %v2940_v56  ;;  %v2788_v42 = vadd.f32 %v2772_v46, %v2733_v33  ;;  %v2931_v25 = vmul.f32 %v3874_v9, %v6600_v16  ;;  %v2932_v54 = vmul.f32 %v3875_v51, %v6600_v16 }
 0x425   : >> { %v2789_v28 = vadd.f32 %v2773_v50, %v2734_v62  ;;  %v3043_v12 = vadd.f32 %v3027_v27, %v2991_v55  ;;  %v2983_v26 = vmul.f32 %v3890_v21, %v6610_v43  ;;  %v2984_v34 = vmul.f32 %v3891_v5, %v6610_v43  ;;  %v7497_v43 = vld [vmem:[#allocation39_spill] sm:$0xff]  ;;  %p4176_p8 = por (%p2588_p0), %p4175_p7, %p4174_p4 }
 0x426   : >> { %v3044_v32 = vadd.f32 %v3028_v17, %v2992_v14  ;;  %v2840_v2 = vadd.f32 %v2824_v39, %v2788_v42  ;;  %v3035_v35 = vmul.f32 %v3906_v18, %v6637_v19  ;;  %v3036_v38 = vmul.f32 %v3907_v22, %v6637_v19 }
 0x427   : >> { %v2841_v8 = vadd.f32 %v2825_v29, %v2789_v28  ;;  %p4177_p9 = pnand (%p2588_p0), %p4176_p8, %p4170_p3 }
 0x428   : >> { %v3056_v58 = vpack.c.bf16 %v3044_v32, %v3043_v12  ;;  %v2892_v4 = vadd.f32 %v2876_v0, %v2840_v2 }
 0x429   : >> { %v2893_v47 = vadd.f32 %v2877_v45, %v2841_v8 }
 0x42a   : >> { %4054 = vmatmul.mubr.msk.bf16.gmra.mxu0 %vm327_vm3, %v3056_v58  ;;  %v2947_v3 = vadd.f32 %v2931_v25, %v2892_v4 }
 0x42b   : >> { %v2948_v36 = vadd.f32 %v2932_v54, %v2893_v47 }
 0x42c   : >> { %v2999_v16 = vadd.f32 %v2983_v26, %v2947_v3 }
 0x42d   : >> { %v3000_v59 = vadd.f32 %v2984_v34, %v2948_v36 }
 0x42e   : >> { %v3051_v7 = vadd.f32 %v3035_v35, %v2999_v16 }
 0x42f   : >> { %v3052_v61 = vadd.f32 %v3036_v38, %v3000_v59 }
 0x431   : >> { %v3060_v23 = vpack.c.bf16 %v3052_v61, %v3051_v7 }
 0x433   : >> { %4062 = vmatmul.mubr.msk.bf16.gmra.mxu1 %vm327_vm3, %v3060_v23 }
 0x4c7   : >> { %v4051_v37 = vpop.f32.mrf.mxu0 }
 0x4c8   : >> { %v3158_v11 = vadd.f32 %v4051_v37, %v7497_v43 }
 0x4c9   : >> { %v3149_v19 = vpop.f32.mrf.mxu0 }
 0x4ca   : >> { %3216 = vst.msk [vmem:[%s7054_s20 + $0x10] sm:$0xff] %vm327_vm3, %v3158_v11  ;;  %v3150_v52 = vadd.f32 %v7497_v43, %v3149_v19 }
 0x4cb   : >> { %v4052_v60 = vpop.f32.mrf.mxu0 }
 0x4cc   : >> { %3214 = vst.msk [vmem:[%s7054_s20] sm:$0xff] %vm327_vm3, %v3150_v52  ;;  %v3161_v13 = vadd.f32 %v4052_v60, %v7497_v43 }
 0x4cd   : >> { %v3152_v31 = vpop.f32.mrf.mxu0 }
 0x4ce   : >> { %3217 = vst.msk [vmem:[%s7054_s20 + $0x18] sm:$0xff] %vm327_vm3, %v3161_v13  ;;  %v3153_v20 = vadd.f32 %v7497_v43, %v3152_v31 }
 0x4d0   : >> { %v4059_v15 = vpop.f32.mrf.mxu1  ;;  %3215 = vst.msk [vmem:[%s7054_s20 + $0x8] sm:$0xff] %vm327_vm3, %v3153_v20 }
 0x4d1   : >> { %v3190_v30 = vadd.f32 %v4059_v15, %v7497_v43 }
 0x4d2   : >> { %v3181_v53 = vpop.f32.mrf.mxu1 }
 0x4d3   : >> { %3224 = vst.msk [vmem:[%s7054_s20 + $0x50] sm:$0xff] %vm327_vm3, %v3190_v30  ;;  %v3182_v1 = vadd.f32 %v7497_v43, %v3181_v53 }
 0x4d4   : >> { %v4060_v44 = vpop.f32.mrf.mxu1 }
 0x4d5   : >> { %3222 = vst.msk [vmem:[%s7054_s20 + $0x40] sm:$0xff] %vm327_vm3, %v3182_v1  ;;  %v3193_v48 = vadd.f32 %v4060_v44, %v7497_v43 }
 0x4d6   : >> { %v3184_v63 = vpop.f32.mrf.mxu1 }
 0x4d7   : >> { %3225 = vst.msk [vmem:[%s7054_s20 + $0x58] sm:$0xff] %vm327_vm3, %v3193_v48  ;;  %v3185_v40 = vadd.f32 %v7497_v43, %v3184_v63 }
 0x4d9   : >> { %3223 = vst.msk [vmem:[%s7054_s20 + $0x48] sm:$0xff] %vm327_vm3, %v3185_v40 }
 0x4ea   : >> { %v4055_v24 = vpop.f32.mrf.mxu0 }
 0x4eb   : >> { %v3174_v6 = vadd.f32 %v4055_v24, %v7497_v43 }
 0x4ec   : >> { %v3165_v10 = vpop.f32.mrf.mxu0 }
 0x4ed   : >> { %3220 = vst.msk [vmem:[%s7054_s20 + $0x30] sm:$0xff] %vm327_vm3, %v3174_v6  ;;  %v3166_v49 = vadd.f32 %v7497_v43, %v3165_v10 }
 0x4ee   : >> { %v4056_v46 = vpop.f32.mrf.mxu0 }
 0x4ef   : >> { %3218 = vst.msk [vmem:[%s7054_s20 + $0x20] sm:$0xff] %vm327_vm3, %v3166_v49  ;;  %v3177_v27 = vadd.f32 %v4056_v46, %v7497_v43 }
 0x4f0   : >> { %v3168_v17 = vpop.f32.mrf.mxu0 }
 0x4f1   : >> { %3221 = vst.msk [vmem:[%s7054_s20 + $0x38] sm:$0xff] %vm327_vm3, %v3177_v27  ;;  %v3169_v41 = vadd.f32 %v7497_v43, %v3168_v17 }
 0x4f3   : >> { %v4063_v50 = vpop.f32.mrf.mxu1  ;;  %3219 = vst.msk [vmem:[%s7054_s20 + $0x28] sm:$0xff] %vm327_vm3, %v3169_v41 }
 0x4f4   : >> { %v3206_v57 = vadd.f32 %v4063_v50, %v7497_v43 }
 0x4f5   : >> { %v3197_v56 = vpop.f32.mrf.mxu1 }
 0x4f6   : >> { %3228 = vst.msk [vmem:[%s7054_s20 + $0x70] sm:$0xff] %vm327_vm3, %v3206_v57  ;;  %v3198_v33 = vadd.f32 %v7497_v43, %v3197_v56 }
 0x4f7   : >> { %v4064_v39 = vpop.f32.mrf.mxu1 }
 0x4f8   : >> { %3226 = vst.msk [vmem:[%s7054_s20 + $0x60] sm:$0xff] %vm327_vm3, %v3198_v33  ;;  %v3209_v62 = vadd.f32 %v4064_v39, %v7497_v43  ;;  %2590 = sbr.rel (!%p2588_p0) target bundleno = 986 (0x3da), region = 172 }
 0x4f9   : >> { %v3200_v29 = vpop.f32.mrf.mxu1 }
 0x4fa   : >> { %3229 = vst.msk [vmem:[%s7054_s20 + $0x78] sm:$0xff] %vm327_vm3, %v3209_v62  ;;  %v3201_v9 = vadd.f32 %v7497_v43, %v3200_v29 }
 0x4fc   : >> { %3227 = vst.msk [vmem:[%s7054_s20 + $0x68] sm:$0xff] %vm327_vm3, %v3201_v9 }
 0x4fd   : > { %4180 = shalt.err (!%p4177_p9)
}
 0x4fe   : > { %s4181_s13 = scalar_lea.hbm %s7111_s23, 4096  ;;  %s4185_s17 = scalar_lea.hbm %s7166_s7, 8192 }
 0x4ff   : > { %p4182_p10 = scmp.ne.s32.totalorder %s7111_s23, %s4181_s13  ;;  %p4186_p13 = scmp.lt.s32.totalorder %s7111_s23, %s7166_s7 }
 0x500   : > { %p4187_p0 = scmp.lt.s32.totalorder %s4185_s17, %s4181_s13 }
 0x501   : > { %p4183_p11 = pnand %p4182_p10, %p4343_p5 }
 0x502   : > { %p4188_p1 = por %p4187_p0, %p4186_p13 }
 0x503   : > { %p4184_p12 = pneg %p4183_p11 }
 0x505   : > { %p4189_p2 = pnand %p4188_p1, %p4184_p12 }
 0x507   : > { %4192 = shalt.err (!%p4189_p2)
}
 0x508   : > { %s4263_s19 = smov 128   ;;  %s4264_s22 = smov 8  }
 0x509   : > { %4093 = dma.vmem_to_hbm [thread:$0]  (%p4343_p5), %s7115_s29, 4096, %s7111_s23, %s7119_s9, %s4263_s19, %s4263_s19, %s4264_s22  }
 0x50a PF: > { %p4099_p3 = scmp.ge.s32.totalorder %s4243_s27, 2  ;;  %s3259_s8 = sand.u32 1, %s4231_s24  }
 0x50b   : > { %s3260_s28 = scalar_lea.sflag [#allocation6], %s3259_s8 }
 0x50c   : > { %p4096_p4 = pnand %p4099_p3, %p4347_p6 }
 0x50e   : > { %p4097_p7 = pneg %p4096_p4 }
 0x510   : > { %4226 = dma.done.wait (%p4097_p7), %s3260_s28, 4096  }
 0x511   : > { %4228 = vsyncadd (%p4097_p7), %s3260_s28, 4294963200  ;;  %p17_p8 = scmp.ge.s32.totalorder %s4330_s30, 4   ;;  %s7498_s24 = smov %s4235_s25 }
 0x512   : > { %s7499_s25 = smov %s4239_s26  ;;  %s7500_s26 = smov %s4341_s10 }
 0x513   : > { %s7501_s27 = smov %s4330_s30  ;;  %19 = sbr.rel (!%p17_p8) target bundleno = 3 (0x3), region = 183 }
 0x518   :  { %3265 = vsyncpa [#allocation6], 1 }
 0x519   :  { %3267 = vsyncpa [#allocation6 + $0x1], 1 }

</bundles_post_ra>
